<compile_context>
chip_gen: v5e
topology: v5e:2x2
jax: 0.10.0
libtpu: 0.0.40
codegen_flags: <defaults>
</compile_context>

<pallas_src>
import jax
import jax.numpy as jnp
from jax import lax
from jax.experimental import pallas as pl
from jax.experimental.pallas import tpu as pltpu

EPS_IN = 1e-5    # nn.InstanceNorm1d eps
EPS_LOG = 1e-6   # log-mask eps in scalar_dot_att


# ----------------------------- fused Pallas kernel -----------------------------

def _decoder_kernel(num_layers, alpha, L, C):
    def kernel(x_ref, f_ref, m_ref, mc_ref,
               wi_ref, bi_ref, wo_ref, bo_ref,
               ffw_ref, ffb_ref, qkw_ref, qkb_ref,
               vw_ref, vb_ref, ow_ref, ob_ref, cw_ref, cb_ref,
               out_ref, feat_ref):
        x_in = x_ref[0]                                   # (Cin, L)
        f = f_ref[0]                                      # (C, L)   encoder feature
        msk = m_ref[0]                                    # (1, L)   key/query mask (lanes)
        msk_col = mc_ref[0]                               # (L, 1)   same mask on sublanes

        # ---- hoisted layer-invariants (reused by every unrolled layer) ----
        log_mask_col = jnp.log(msk_col + EPS_LOG)         # (L, 1)
        lane = lax.broadcasted_iota(jnp.int32, (1, L), 1)  # lane index

        cq = qkw_ref.shape[1] // 2
        cv = ow_ref.shape[2]
        inv_sqrt_cq = 1.0 / (cq ** 0.5)

        # Value projections of ALL layers at once: encoder feature f never
        # changes across layers, so one stacked (NL*cv, C)@(C, L) matmul.
        v_all = (jnp.dot(vw_ref[...], f, preferred_element_type=jnp.float32)
                 + vb_ref[...])                            # (NL*cv, L)

        # ---- input 1x1 conv ----
        feat = jnp.dot(wi_ref[...], x_in, preferred_element_type=jnp.float32) + bi_ref[...]

        # ---- statically unrolled decoder layers ----
        for layer in range(num_layers):
            d = 2 ** layer
            ffw = ffw_ref[layer]                          # (C, 3C)  merged 3-tap weights
            ffb = ffb_ref[layer]                          # (C, 1)
            qkw = qkw_ref[layer]                          # (2cq, C) stacked q|k weights
            qkb = qkb_ref[layer]                          # (2cq, 1)
            ow = ow_ref[layer]                            # (C, cv)
            ob = ob_ref[layer]                            # (C, 1)
            cw = cw_ref[layer]                            # (C, C)
            cb = cb_ref[layer]                            # (C, 1)
            v = v_all[layer * cv:(layer + 1) * cv]        # (cv, L)

            xcur = feat

            # --- ConvFeedForward: 3-tap dilated conv (padding=d) as ONE matmul ---
            keep_m = (lane >= d).astype(jnp.float32)                  # valid for x[l-d]
            keep_p = (lane < L - d).astype(jnp.float32)               # valid for x[l+d]
            x_m = pltpu.roll(xcur, shift=d, axis=1) * keep_m          # x[:, l-d]
            x_p = pltpu.roll(xcur, shift=L - d, axis=1) * keep_p      # x[:, l+d]
            x_stack = jnp.concatenate([x_m, xcur, x_p], axis=0)       # (3C, L)
            ff = jnp.dot(ffw, x_stack, preferred_element_type=jnp.float32) + ffb
            ff = jnp.maximum(ff, 0.0)

            # --- InstanceNorm1d (affine=False, biased variance over L) ---
            mean = jnp.mean(ff, axis=1, keepdims=True)
            var = jnp.mean((ff - mean) ** 2, axis=1, keepdims=True)
            xn = (ff - mean) * lax.rsqrt(var + EPS_IN)

            # --- AttLayer (normal_att; decoder: value comes from encoder feature f) ---
            qk = jnp.dot(qkw, xn, preferred_element_type=jnp.float32) + qkb   # (2cq, L)
            q = qk[:cq] * inv_sqrt_cq                                         # (cq, L)
            k = qk[cq:]                                                       # (cq, L)

            # Transposed attention: A_t[j, i] = softmax_j( (k^T q)_{j,i} + log m[j] ) * m[j]
            energy_t = lax.dot_general(k, q, (((0,), (0,)), ((), ())),
                                       preferred_element_type=jnp.float32)    # (Lj, Li)
            energy_t = energy_t + log_mask_col
            emax = jnp.max(energy_t, axis=0, keepdims=True)                   # (1, Li)
            p = jnp.exp(energy_t - emax)
            denom = jnp.sum(p, axis=0, keepdims=True)                         # (1, Li)
            att = p * pl.reciprocal(denom, approx=True) * msk_col             # (Lj, Li)

            att_out = jnp.dot(v, att, preferred_element_type=jnp.float32)     # (cv, Li)
            att_out = jnp.maximum(att_out, 0.0)
            att_out = (jnp.dot(ow, att_out, preferred_element_type=jnp.float32) + ob) * msk

            # --- residual + 1x1 conv + residual + mask ---
            out = alpha * att_out + ff
            out = jnp.dot(cw, out, preferred_element_type=jnp.float32) + cb
            # TODO(synk): nn.Dropout is a no-op here (eval-mode semantics).
            feat = (xcur + out) * msk

        feat_ref[0] = feat
        out_ref[0] = (jnp.dot(wo_ref[...], feat, preferred_element_type=jnp.float32)
                      + bo_ref[...]) * msk

    return kernel


def decoder_forward(params, x, fencoder, mask, alpha):
    """Decoder.forward(x, fencoder, mask) -> (out, feature).  One fused pallas_call."""
    B, cin, L = x.shape
    C = params['w_in'].shape[0]
    num_classes = params['w_out'].shape[0]
    layers = params['layers']
    num_layers = len(layers)
    assert 2 ** (num_layers - 1) < L, "dilation must stay below sequence length"

    # --- stack per-layer weights along a leading layer axis ---
    ffw = jnp.stack([jnp.concatenate([lp[0][0], lp[0][1], lp[0][2]], axis=1)
                     for lp in layers])                                   # (NL, C, 3C)
    ffb = jnp.stack([lp[1] for lp in layers])                             # (NL, C, 1)
    qkw = jnp.stack([jnp.concatenate([lp[2], lp[4]], axis=0)
                     for lp in layers])                                   # (NL, 2cq, C)
    qkb = jnp.stack([jnp.concatenate([lp[3], lp[5]], axis=0)
                     for lp in layers])                                   # (NL, 2cq, 1)
    # value projections of all layers, flattened so the kernel does ONE matmul
    vw = jnp.concatenate([lp[6] for lp in layers], axis=0)                # (NL*cv, C)
    vb = jnp.concatenate([lp[7] for lp in layers], axis=0)                # (NL*cv, 1)
    ow = jnp.stack([lp[8] for lp in layers])                              # (NL, C, cv)
    ob = jnp.stack([lp[9] for lp in layers])                              # (NL, C, 1)
    cw = jnp.stack([lp[10] for lp in layers])                             # (NL, C, C)
    cb = jnp.stack([lp[11] for lp in layers])                             # (NL, C, 1)

    cq2 = qkw.shape[1]
    cv = layers[0][6].shape[0]

    mask1 = mask[:, 0:1, :]                                               # (B, 1, L)
    mask_col = jnp.transpose(mask1, (0, 2, 1))                            # (B, L, 1)

    def full(shape):
        zeros = (0,) * len(shape)
        return pl.BlockSpec(shape, lambda b_, z=zeros: z)

    out, feature = pl.pallas_call(
        _decoder_kernel(num_layers, float(alpha), L, C),
        out_shape=(jax.ShapeDtypeStruct((B, num_classes, L), jnp.float32),
                   jax.ShapeDtypeStruct((B, C, L), jnp.float32)),
        grid=(B,),
        in_specs=[
            pl.BlockSpec((1, cin, L), lambda b_: (b_, 0, 0)),             # x
            pl.BlockSpec((1, C, L), lambda b_: (b_, 0, 0)),               # fencoder
            pl.BlockSpec((1, 1, L), lambda b_: (b_, 0, 0)),               # mask (lanes)
            pl.BlockSpec((1, L, 1), lambda b_: (b_, 0, 0)),               # mask (sublanes)
            full((C, cin)), full((C, 1)),                                 # input 1x1 conv
            full((num_classes, C)), full((num_classes, 1)),               # output 1x1 conv
            full((num_layers, C, 3 * C)), full((num_layers, C, 1)),       # feed-forward conv
            full((num_layers, cq2, C)), full((num_layers, cq2, 1)),       # fused q|k conv
            full((num_layers * cv, C)), full((num_layers * cv, 1)),       # stacked value conv
            full((num_layers, C, cv)), full((num_layers, C, 1)),          # att conv_out
            full((num_layers, C, C)), full((num_layers, C, 1)),           # module conv_1x1
        ],
        out_specs=(pl.BlockSpec((1, num_classes, L), lambda b_: (b_, 0, 0)),
                   pl.BlockSpec((1, C, L), lambda b_: (b_, 0, 0))),
        compiler_params=pltpu.CompilerParams(dimension_semantics=("parallel",)),
    )(x, fencoder, mask1, mask_col,
      params['w_in'], params['b_in'], params['w_out'], params['b_out'],
      ffw, ffb, qkw, qkb, vw, vb, ow, ob, cw, cb)
    return out, feature


# --------------------- deterministic parameter init -----------------------

def init_params(key, num_layers, r1, r2, num_f_maps, input_dim, num_classes):
    keys = jax.random.split(key, 4 + num_layers)

    def w(k, shape, scale):
        return jax.random.normal(k, shape, jnp.float32) * scale

    params = {
        'w_in': w(keys[0], (num_f_maps, input_dim), 0.1),
        'b_in': w(keys[1], (num_f_maps, 1), 0.01),
        'w_out': w(keys[2], (num_classes, num_f_maps), 0.1),
        'b_out': w(keys[3], (num_classes, 1), 0.01),
    }
    cq = num_f_maps // r1
    cv = num_f_maps // r2
    layers = []
    for i in range(num_layers):
        lk = jax.random.split(keys[4 + i], 12)
        layers.append((
            w(lk[0], (3, num_f_maps, num_f_maps), 0.05),    # ff conv (tap, out, in)
            w(lk[1], (num_f_maps, 1), 0.01),
            w(lk[2], (cq, num_f_maps), 0.1), w(lk[3], (cq, 1), 0.01),   # query
            w(lk[4], (cq, num_f_maps), 0.1), w(lk[5], (cq, 1), 0.01),   # key
            w(lk[6], (cv, num_f_maps), 0.1), w(lk[7], (cv, 1), 0.01),   # value
            w(lk[8], (num_f_maps, cv), 0.1), w(lk[9], (num_f_maps, 1), 0.01),   # att conv_out
            w(lk[10], (num_f_maps, num_f_maps), 0.1), w(lk[11], (num_f_maps, 1), 0.01),  # 1x1
        ))
    params['layers'] = layers
    return params


# ----------------------- pure-JAX reference (check) ------------------------

def _ref_attmodule(x, f, mask, lp, d, alpha):
    ffw, ffb, qw, qb, kw, kb, vw, vb, ow, ob, cw, cb = lp
    B, C, L = x.shape
    m1 = mask[:, 0:1, :]
    xp = jnp.pad(x, ((0, 0), (0, 0), (d, d)))
    ff = (jnp.einsum('oc,bcl->bol', ffw[0], xp[:, :, 0:L])
          + jnp.einsum('oc,bcl->bol', ffw[1], xp[:, :, d:d + L])
          + jnp.einsum('oc,bcl->bol', ffw[2], xp[:, :, 2 * d:2 * d + L])
          + ffb[None])
    ff = jnp.maximum(ff, 0.0)
    mean = ff.mean(axis=2, keepdims=True)
    var = ((ff - mean) ** 2).mean(axis=2, keepdims=True)
    xn = (ff - mean) / jnp.sqrt(var + EPS_IN)
    q = jnp.einsum('oc,bcl->bol', qw, xn) + qb[None]
    k = jnp.einsum('oc,bcl->bol', kw, xn) + kb[None]
    v = jnp.einsum('oc,bcl->bol', vw, f) + vb[None]
    energy = jnp.einsum('bci,bcj->bij', q, k) / (q.shape[1] ** 0.5)
    energy = energy + jnp.log(m1 + EPS_LOG)
    att = jax.nn.softmax(energy, axis=-1) * m1
    att_out = jnp.einsum('bcj,bij->bci', v, att)
    att_out = jnp.maximum(att_out, 0.0)
    att_out = (jnp.einsum('oc,bcl->bol', ow, att_out) + ob[None]) * m1
    out = alpha * att_out + ff
    out = jnp.einsum('oc,bcl->bol', cw, out) + cb[None]
    return (x + out) * m1


def _ref_decoder(params, x, fencoder, mask, alpha):
    def pw(w, b, t):
        return jnp.einsum('oc,bcl->bol', w, t) + b[None]
    feature = pw(params['w_in'], params['b_in'], x)
    for i, lp in enumerate(params['layers']):
        feature = _ref_attmodule(feature, fencoder, mask, lp, 2 ** i, alpha)
    out = pw(params['w_out'], params['b_out'], feature) * mask[:, 0:1, :]
    return out, feature


# --------------------------------- main ------------------------------------

if __name__ == "__main__":
    num_layers, r1, r2 = 3, 2, 2
    num_f_maps, input_dim, num_classes = 32, 24, 8
    alpha = 1.0
    B, L = 2, 128

    key = jax.random.PRNGKey(0)
    kp, kx, kf = jax.random.split(key, 3)
    params = init_params(kp, num_layers, r1, r2, num_f_maps, input_dim, num_classes)

    x = jax.random.normal(kx, (B, input_dim, L), jnp.float32)
    fencoder = jax.random.normal(kf, (B, num_f_maps, L), jnp.float32)
    lengths = jnp.array([L, 96])
    mask = (jnp.arange(L)[None, None, :] < lengths[:, None, None]).astype(jnp.float32)

    out, feature = decoder_forward(params, x, fencoder, mask, alpha)
    out = jax.block_until_ready(out)
    feature = jax.block_until_ready(feature)

    with jax.default_matmul_precision("highest"):
        ref_out, ref_feature = _ref_decoder(params, x, fencoder, mask, alpha)

    assert out.shape == (B, num_classes, L) and feature.shape == (B, num_f_maps, L)
    assert jnp.allclose(out, ref_out, atol=5e-2, rtol=5e-2), \
        float(jnp.max(jnp.abs(out - ref_out)))
    assert jnp.allclose(feature, ref_feature, atol=5e-2, rtol=5e-2), \
        float(jnp.max(jnp.abs(feature - ref_feature)))

    print("KERNEL_OK")
</pallas_src>

<mosaic_0001>
module attributes {stable_mosaic.version = 11 : i64} {
  func.func @kernel(%arg0: i32, %arg1: memref<1x24x128xf32, #tpu.memory_space<vmem>>, %arg2: memref<1x32x128xf32, #tpu.memory_space<vmem>>, %arg3: memref<1x1x128xf32, #tpu.memory_space<vmem>>, %arg4: memref<1x128x1xf32, #tpu.memory_space<vmem>>, %arg5: memref<32x24xf32, #tpu.memory_space<vmem>>, %arg6: memref<32x1xf32, #tpu.memory_space<vmem>>, %arg7: memref<8x32xf32, #tpu.memory_space<vmem>>, %arg8: memref<8x1xf32, #tpu.memory_space<vmem>>, %arg9: memref<3x32x96xf32, #tpu.memory_space<vmem>>, %arg10: memref<3x32x1xf32, #tpu.memory_space<vmem>>, %arg11: memref<3x32x32xf32, #tpu.memory_space<vmem>>, %arg12: memref<3x32x1xf32, #tpu.memory_space<vmem>>, %arg13: memref<48x32xf32, #tpu.memory_space<vmem>>, %arg14: memref<48x1xf32, #tpu.memory_space<vmem>>, %arg15: memref<3x32x16xf32, #tpu.memory_space<vmem>>, %arg16: memref<3x32x1xf32, #tpu.memory_space<vmem>>, %arg17: memref<3x32x32xf32, #tpu.memory_space<vmem>>, %arg18: memref<3x32x1xf32, #tpu.memory_space<vmem>>, %arg19: memref<1x8x128xf32, #tpu.memory_space<vmem>>, %arg20: memref<1x32x128xf32, #tpu.memory_space<vmem>>) attributes {dimension_semantics = [#tpu.dimension_semantics<parallel>], iteration_bounds = array<i64: 2>, scalar_prefetch = 0 : i64, scratch_operands = 0 : i64, tpu.core_type = #tpu.core_type<tc>, window_params = [{transform_indices = @transform_0, window_bounds = array<i64: 1, 24, 128>}, {transform_indices = @transform_1, window_bounds = array<i64: 1, 32, 128>}, {transform_indices = @transform_2, window_bounds = array<i64: 1, 1, 128>}, {transform_indices = @transform_3, window_bounds = array<i64: 1, 128, 1>}, {pipeline_mode = #tpu.pipeline_mode<synchronous>, transform_indices = @transform_4, window_bounds = array<i64: 32, 24>}, {pipeline_mode = #tpu.pipeline_mode<synchronous>, transform_indices = @transform_5, window_bounds = array<i64: 32, 1>}, {pipeline_mode = #tpu.pipeline_mode<synchronous>, transform_indices = @transform_6, window_bounds = array<i64: 8, 32>}, {pipeline_mode = #tpu.pipeline_mode<synchronous>, transform_indices = @transform_7, window_bounds = array<i64: 8, 1>}, {pipeline_mode = #tpu.pipeline_mode<synchronous>, transform_indices = @transform_8, window_bounds = array<i64: 3, 32, 96>}, {pipeline_mode = #tpu.pipeline_mode<synchronous>, transform_indices = @transform_9, window_bounds = array<i64: 3, 32, 1>}, {pipeline_mode = #tpu.pipeline_mode<synchronous>, transform_indices = @transform_10, window_bounds = array<i64: 3, 32, 32>}, {pipeline_mode = #tpu.pipeline_mode<synchronous>, transform_indices = @transform_11, window_bounds = array<i64: 3, 32, 1>}, {pipeline_mode = #tpu.pipeline_mode<synchronous>, transform_indices = @transform_12, window_bounds = array<i64: 48, 32>}, {pipeline_mode = #tpu.pipeline_mode<synchronous>, transform_indices = @transform_13, window_bounds = array<i64: 48, 1>}, {pipeline_mode = #tpu.pipeline_mode<synchronous>, transform_indices = @transform_14, window_bounds = array<i64: 3, 32, 16>}, {pipeline_mode = #tpu.pipeline_mode<synchronous>, transform_indices = @transform_15, window_bounds = array<i64: 3, 32, 1>}, {pipeline_mode = #tpu.pipeline_mode<synchronous>, transform_indices = @transform_16, window_bounds = array<i64: 3, 32, 32>}, {pipeline_mode = #tpu.pipeline_mode<synchronous>, transform_indices = @transform_17, window_bounds = array<i64: 3, 32, 1>}, {transform_indices = @transform_18, window_bounds = array<i64: 1, 8, 128>}, {transform_indices = @transform_19, window_bounds = array<i64: 1, 32, 128>}]} {
    %c0 = arith.constant 0 : index
    %c0_0 = arith.constant 0 : index
    %c0_1 = arith.constant 0 : index
    %0 = vector.load %arg1[%c0, %c0_0, %c0_1] : memref<1x24x128xf32, #tpu.memory_space<vmem>>, vector<1x24x128xf32>
    %1 = vector.shape_cast %0 : vector<1x24x128xf32> to vector<24x128xf32>
    %c0_2 = arith.constant 0 : index
    %c0_3 = arith.constant 0 : index
    %c0_4 = arith.constant 0 : index
    %2 = vector.load %arg2[%c0_2, %c0_3, %c0_4] : memref<1x32x128xf32, #tpu.memory_space<vmem>>, vector<1x32x128xf32>
    %3 = vector.shape_cast %2 : vector<1x32x128xf32> to vector<32x128xf32>
    %c0_5 = arith.constant 0 : index
    %c0_6 = arith.constant 0 : index
    %c0_7 = arith.constant 0 : index
    %4 = vector.load %arg3[%c0_5, %c0_6, %c0_7] : memref<1x1x128xf32, #tpu.memory_space<vmem>>, vector<1x1x128xf32>
    %5 = vector.shape_cast %4 : vector<1x1x128xf32> to vector<1x128xf32>
    %c0_8 = arith.constant 0 : index
    %c0_9 = arith.constant 0 : index
    %c0_10 = arith.constant 0 : index
    %6 = vector.load %arg4[%c0_8, %c0_9, %c0_10] : memref<1x128x1xf32, #tpu.memory_space<vmem>>, vector<1x128x1xf32>
    %7 = vector.shape_cast %6 : vector<1x128x1xf32> to vector<128x1xf32>
    %cst = arith.constant 9.99999997E-7 : f32
    %8 = vector.broadcast %cst : f32 to vector<128x1xf32>
    %9 = arith.addf %7, %8 : vector<128x1xf32>
    %10 = math.log %9 : vector<128x1xf32>
    %11 = tpu.iota {dimensions = array<i32: 1>} : vector<1x128xi32>
    %c0_11 = arith.constant 0 : index
    %c0_12 = arith.constant 0 : index
    %12 = vector.load %arg13[%c0_11, %c0_12] : memref<48x32xf32, #tpu.memory_space<vmem>>, vector<48x32xf32>
    %cst_13 = arith.constant dense<0.000000e+00> : vector<48x128xf32>
    %13 = tpu.matmul %12, %3, %cst_13 {dimension_numbers = #tpu.dot_dimension_numbers<[1], [0], [0], [1], [0, 0, 1, 1], [], []>} : vector<48x32xf32>, vector<32x128xf32>, vector<48x128xf32> -> vector<48x128xf32>
    %c0_14 = arith.constant 0 : index
    %c0_15 = arith.constant 0 : index
    %14 = vector.load %arg14[%c0_14, %c0_15] : memref<48x1xf32, #tpu.memory_space<vmem>>, vector<48x1xf32>
    %15 = vector.broadcast %14 : vector<48x1xf32> to vector<48x128xf32>
    %16 = arith.addf %13, %15 : vector<48x128xf32>
    %c0_16 = arith.constant 0 : index
    %c0_17 = arith.constant 0 : index
    %17 = vector.load %arg5[%c0_16, %c0_17] : memref<32x24xf32, #tpu.memory_space<vmem>>, vector<32x24xf32>
    %cst_18 = arith.constant dense<0.000000e+00> : vector<32x128xf32>
    %18 = tpu.matmul %17, %1, %cst_18 {dimension_numbers = #tpu.dot_dimension_numbers<[1], [0], [0], [1], [0, 0, 1, 1], [], []>} : vector<32x24xf32>, vector<24x128xf32>, vector<32x128xf32> -> vector<32x128xf32>
    %c0_19 = arith.constant 0 : index
    %c0_20 = arith.constant 0 : index
    %19 = vector.load %arg6[%c0_19, %c0_20] : memref<32x1xf32, #tpu.memory_space<vmem>>, vector<32x1xf32>
    %20 = vector.broadcast %19 : vector<32x1xf32> to vector<32x128xf32>
    %21 = arith.addf %18, %20 : vector<32x128xf32>
    %c0_21 = arith.constant 0 : index
    %c0_22 = arith.constant 0 : index
    %c0_23 = arith.constant 0 : index
    %22 = vector.load %arg9[%c0_21, %c0_22, %c0_23] : memref<3x32x96xf32, #tpu.memory_space<vmem>>, vector<1x32x96xf32>
    %23 = vector.shape_cast %22 : vector<1x32x96xf32> to vector<32x96xf32>
    %c0_24 = arith.constant 0 : index
    %c0_25 = arith.constant 0 : index
    %c0_26 = arith.constant 0 : index
    %24 = vector.load %arg10[%c0_24, %c0_25, %c0_26] : memref<3x32x1xf32, #tpu.memory_space<vmem>>, vector<1x32x1xf32>
    %25 = vector.shape_cast %24 : vector<1x32x1xf32> to vector<32x1xf32>
    %c0_27 = arith.constant 0 : index
    %c0_28 = arith.constant 0 : index
    %c0_29 = arith.constant 0 : index
    %26 = vector.load %arg11[%c0_27, %c0_28, %c0_29] : memref<3x32x32xf32, #tpu.memory_space<vmem>>, vector<1x32x32xf32>
    %27 = vector.shape_cast %26 : vector<1x32x32xf32> to vector<32x32xf32>
    %c0_30 = arith.constant 0 : index
    %c0_31 = arith.constant 0 : index
    %c0_32 = arith.constant 0 : index
    %28 = vector.load %arg12[%c0_30, %c0_31, %c0_32] : memref<3x32x1xf32, #tpu.memory_space<vmem>>, vector<1x32x1xf32>
    %29 = vector.shape_cast %28 : vector<1x32x1xf32> to vector<32x1xf32>
    %c0_33 = arith.constant 0 : index
    %c0_34 = arith.constant 0 : index
    %c0_35 = arith.constant 0 : index
    %30 = vector.load %arg15[%c0_33, %c0_34, %c0_35] : memref<3x32x16xf32, #tpu.memory_space<vmem>>, vector<1x32x16xf32>
    %31 = vector.shape_cast %30 : vector<1x32x16xf32> to vector<32x16xf32>
    %c0_36 = arith.constant 0 : index
    %c0_37 = arith.constant 0 : index
    %c0_38 = arith.constant 0 : index
    %32 = vector.load %arg16[%c0_36, %c0_37, %c0_38] : memref<3x32x1xf32, #tpu.memory_space<vmem>>, vector<1x32x1xf32>
    %33 = vector.shape_cast %32 : vector<1x32x1xf32> to vector<32x1xf32>
    %c0_39 = arith.constant 0 : index
    %c0_40 = arith.constant 0 : index
    %c0_41 = arith.constant 0 : index
    %34 = vector.load %arg17[%c0_39, %c0_40, %c0_41] : memref<3x32x32xf32, #tpu.memory_space<vmem>>, vector<1x32x32xf32>
    %35 = vector.shape_cast %34 : vector<1x32x32xf32> to vector<32x32xf32>
    %c0_42 = arith.constant 0 : index
    %c0_43 = arith.constant 0 : index
    %c0_44 = arith.constant 0 : index
    %36 = vector.load %arg18[%c0_42, %c0_43, %c0_44] : memref<3x32x1xf32, #tpu.memory_space<vmem>>, vector<1x32x1xf32>
    %37 = vector.shape_cast %36 : vector<1x32x1xf32> to vector<32x1xf32>
    %38 = vector.extract_strided_slice %16 {offsets = [0, 0], sizes = [16, 128], strides = [1, 1]} : vector<48x128xf32> to vector<16x128xf32>
    %c1_i32 = arith.constant 1 : i32
    %39 = vector.broadcast %c1_i32 : i32 to vector<1x128xi32>
    %40 = arith.cmpi sge, %11, %39 : vector<1x128xi32>
    %41 = arith.extui %40 : vector<1x128xi1> to vector<1x128xi32>
    %42 = arith.sitofp %41 : vector<1x128xi32> to vector<1x128xf32>
    %c127_i32 = arith.constant 127 : i32
    %43 = vector.broadcast %c127_i32 : i32 to vector<1x128xi32>
    %44 = arith.cmpi slt, %11, %43 : vector<1x128xi32>
    %45 = arith.extui %44 : vector<1x128xi1> to vector<1x128xi32>
    %46 = arith.sitofp %45 : vector<1x128xi32> to vector<1x128xf32>
    %c1_i32_45 = arith.constant 1 : i32
    %47 = tpu.dynamic_rotate %21 by %c1_i32_45 dim 1 : vector<32x128xf32>, i32 -> vector<32x128xf32>
    %48 = vector.broadcast %42 : vector<1x128xf32> to vector<32x128xf32>
    %49 = arith.mulf %47, %48 : vector<32x128xf32>
    %c127_i32_46 = arith.constant 127 : i32
    %50 = tpu.dynamic_rotate %21 by %c127_i32_46 dim 1 : vector<32x128xf32>, i32 -> vector<32x128xf32>
    %51 = vector.broadcast %46 : vector<1x128xf32> to vector<32x128xf32>
    %52 = arith.mulf %50, %51 : vector<32x128xf32>
    %53 = tpu.concatenate %49, %21, %52 in 0 : vector<32x128xf32>, vector<32x128xf32>, vector<32x128xf32> -> vector<96x128xf32>
    %cst_47 = arith.constant dense<0.000000e+00> : vector<32x128xf32>
    %54 = tpu.matmul %23, %53, %cst_47 {dimension_numbers = #tpu.dot_dimension_numbers<[1], [0], [0], [1], [0, 0, 1, 1], [], []>} : vector<32x96xf32>, vector<96x128xf32>, vector<32x128xf32> -> vector<32x128xf32>
    %55 = vector.broadcast %25 : vector<32x1xf32> to vector<32x128xf32>
    %56 = arith.addf %54, %55 : vector<32x128xf32>
    %cst_48 = arith.constant 0.000000e+00 : f32
    %57 = vector.broadcast %cst_48 : f32 to vector<32x128xf32>
    %58 = arith.maximumf %56, %57 : vector<32x128xf32>
    %cst_49 = arith.constant dense<0.000000e+00> : vector<32xf32>
    %59 = vector.multi_reduction <add>, %58, %cst_49 [1] : vector<32x128xf32> to vector<32xf32>
    %60 = vector.shape_cast %59 : vector<32xf32> to vector<32x1xf32>
    %cst_50 = arith.constant 1.280000e+02 : f32
    %61 = vector.broadcast %cst_50 : f32 to vector<32x1xf32>
    %62 = arith.divf %60, %61 : vector<32x1xf32>
    %63 = vector.broadcast %62 : vector<32x1xf32> to vector<32x128xf32>
    %64 = arith.subf %58, %63 : vector<32x128xf32>
    %65 = arith.mulf %64, %64 : vector<32x128xf32>
    %cst_51 = arith.constant dense<0.000000e+00> : vector<32xf32>
    %66 = vector.multi_reduction <add>, %65, %cst_51 [1] : vector<32x128xf32> to vector<32xf32>
    %67 = vector.shape_cast %66 : vector<32xf32> to vector<32x1xf32>
    %cst_52 = arith.constant 1.280000e+02 : f32
    %68 = vector.broadcast %cst_52 : f32 to vector<32x1xf32>
    %69 = arith.divf %67, %68 : vector<32x1xf32>
    %70 = vector.broadcast %62 : vector<32x1xf32> to vector<32x128xf32>
    %71 = arith.subf %58, %70 : vector<32x128xf32>
    %cst_53 = arith.constant 9.99999974E-6 : f32
    %72 = vector.broadcast %cst_53 : f32 to vector<32x1xf32>
    %73 = arith.addf %69, %72 : vector<32x1xf32>
    %74 = math.rsqrt %73 : vector<32x1xf32>
    %75 = vector.broadcast %74 : vector<32x1xf32> to vector<32x128xf32>
    %76 = arith.mulf %71, %75 : vector<32x128xf32>
    %cst_54 = arith.constant dense<0.000000e+00> : vector<32x128xf32>
    %77 = tpu.matmul %27, %76, %cst_54 {dimension_numbers = #tpu.dot_dimension_numbers<[1], [0], [0], [1], [0, 0, 1, 1], [], []>} : vector<32x32xf32>, vector<32x128xf32>, vector<32x128xf32> -> vector<32x128xf32>
    %78 = vector.broadcast %29 : vector<32x1xf32> to vector<32x128xf32>
    %79 = arith.addf %77, %78 : vector<32x128xf32>
    %80 = vector.extract_strided_slice %79 {offsets = [0, 0], sizes = [16, 128], strides = [1, 1]} : vector<32x128xf32> to vector<16x128xf32>
    %cst_55 = arith.constant 2.500000e-01 : f32
    %81 = vector.broadcast %cst_55 : f32 to vector<16x128xf32>
    %82 = arith.mulf %80, %81 : vector<16x128xf32>
    %83 = vector.extract_strided_slice %79 {offsets = [16, 0], sizes = [16, 128], strides = [1, 1]} : vector<32x128xf32> to vector<16x128xf32>
    %cst_56 = arith.constant dense<0.000000e+00> : vector<128x128xf32>
    %84 = tpu.matmul %83, %82, %cst_56 {dimension_numbers = #tpu.dot_dimension_numbers<[0], [0], [1], [1], [0, 1, 1, 1], [], []>} : vector<16x128xf32>, vector<16x128xf32>, vector<128x128xf32> -> vector<128x128xf32>
    %85 = vector.broadcast %10 : vector<128x1xf32> to vector<128x128xf32>
    %86 = arith.addf %84, %85 : vector<128x128xf32>
    %cst_57 = arith.constant dense<0xFF800000> : vector<128xf32>
    %87 = vector.multi_reduction <maximumf>, %86, %cst_57 [0] : vector<128x128xf32> to vector<128xf32>
    %88 = vector.shape_cast %87 : vector<128xf32> to vector<1x128xf32>
    %89 = vector.broadcast %88 : vector<1x128xf32> to vector<128x128xf32>
    %90 = arith.subf %86, %89 : vector<128x128xf32>
    %91 = math.exp %90 : vector<128x128xf32>
    %cst_58 = arith.constant dense<0.000000e+00> : vector<128xf32>
    %92 = vector.multi_reduction <add>, %91, %cst_58 [0] : vector<128x128xf32> to vector<128xf32>
    %93 = vector.shape_cast %92 : vector<128xf32> to vector<1x128xf32>
    %94 = tpu.reciprocal %93 {approx = true} : vector<1x128xf32> -> vector<1x128xf32>
    %95 = vector.broadcast %94 : vector<1x128xf32> to vector<128x128xf32>
    %96 = arith.mulf %91, %95 : vector<128x128xf32>
    %97 = vector.broadcast %7 : vector<128x1xf32> to vector<128x128xf32>
    %98 = arith.mulf %96, %97 : vector<128x128xf32>
    %cst_59 = arith.constant dense<0.000000e+00> : vector<16x128xf32>
    %99 = tpu.matmul %38, %98, %cst_59 {dimension_numbers = #tpu.dot_dimension_numbers<[1], [0], [0], [1], [0, 0, 1, 1], [], []>} : vector<16x128xf32>, vector<128x128xf32>, vector<16x128xf32> -> vector<16x128xf32>
    %cst_60 = arith.constant 0.000000e+00 : f32
    %100 = vector.broadcast %cst_60 : f32 to vector<16x128xf32>
    %101 = arith.maximumf %99, %100 : vector<16x128xf32>
    %cst_61 = arith.constant dense<0.000000e+00> : vector<32x128xf32>
    %102 = tpu.matmul %31, %101, %cst_61 {dimension_numbers = #tpu.dot_dimension_numbers<[1], [0], [0], [1], [0, 0, 1, 1], [], []>} : vector<32x16xf32>, vector<16x128xf32>, vector<32x128xf32> -> vector<32x128xf32>
    %103 = vector.broadcast %33 : vector<32x1xf32> to vector<32x128xf32>
    %104 = arith.addf %102, %103 : vector<32x128xf32>
    %105 = vector.broadcast %5 : vector<1x128xf32> to vector<32x128xf32>
    %106 = arith.mulf %104, %105 : vector<32x128xf32>
    %cst_62 = arith.constant 1.000000e+00 : f32
    %107 = vector.broadcast %cst_62 : f32 to vector<32x128xf32>
    %108 = arith.mulf %107, %106 : vector<32x128xf32>
    %109 = arith.addf %108, %58 : vector<32x128xf32>
    %cst_63 = arith.constant dense<0.000000e+00> : vector<32x128xf32>
    %110 = tpu.matmul %35, %109, %cst_63 {dimension_numbers = #tpu.dot_dimension_numbers<[1], [0], [0], [1], [0, 0, 1, 1], [], []>} : vector<32x32xf32>, vector<32x128xf32>, vector<32x128xf32> -> vector<32x128xf32>
    %111 = vector.broadcast %37 : vector<32x1xf32> to vector<32x128xf32>
    %112 = arith.addf %110, %111 : vector<32x128xf32>
    %113 = arith.addf %21, %112 : vector<32x128xf32>
    %114 = vector.broadcast %5 : vector<1x128xf32> to vector<32x128xf32>
    %115 = arith.mulf %113, %114 : vector<32x128xf32>
    %c1 = arith.constant 1 : index
    %c0_64 = arith.constant 0 : index
    %c0_65 = arith.constant 0 : index
    %116 = vector.load %arg9[%c1, %c0_64, %c0_65] : memref<3x32x96xf32, #tpu.memory_space<vmem>>, vector<1x32x96xf32>
    %117 = vector.shape_cast %116 : vector<1x32x96xf32> to vector<32x96xf32>
    %c1_66 = arith.constant 1 : index
    %c0_67 = arith.constant 0 : index
    %c0_68 = arith.constant 0 : index
    %118 = vector.load %arg10[%c1_66, %c0_67, %c0_68] : memref<3x32x1xf32, #tpu.memory_space<vmem>>, vector<1x32x1xf32>
    %119 = vector.shape_cast %118 : vector<1x32x1xf32> to vector<32x1xf32>
    %c1_69 = arith.constant 1 : index
    %c0_70 = arith.constant 0 : index
    %c0_71 = arith.constant 0 : index
    %120 = vector.load %arg11[%c1_69, %c0_70, %c0_71] : memref<3x32x32xf32, #tpu.memory_space<vmem>>, vector<1x32x32xf32>
    %121 = vector.shape_cast %120 : vector<1x32x32xf32> to vector<32x32xf32>
    %c1_72 = arith.constant 1 : index
    %c0_73 = arith.constant 0 : index
    %c0_74 = arith.constant 0 : index
    %122 = vector.load %arg12[%c1_72, %c0_73, %c0_74] : memref<3x32x1xf32, #tpu.memory_space<vmem>>, vector<1x32x1xf32>
    %123 = vector.shape_cast %122 : vector<1x32x1xf32> to vector<32x1xf32>
    %c1_75 = arith.constant 1 : index
    %c0_76 = arith.constant 0 : index
    %c0_77 = arith.constant 0 : index
    %124 = vector.load %arg15[%c1_75, %c0_76, %c0_77] : memref<3x32x16xf32, #tpu.memory_space<vmem>>, vector<1x32x16xf32>
    %125 = vector.shape_cast %124 : vector<1x32x16xf32> to vector<32x16xf32>
    %c1_78 = arith.constant 1 : index
    %c0_79 = arith.constant 0 : index
    %c0_80 = arith.constant 0 : index
    %126 = vector.load %arg16[%c1_78, %c0_79, %c0_80] : memref<3x32x1xf32, #tpu.memory_space<vmem>>, vector<1x32x1xf32>
    %127 = vector.shape_cast %126 : vector<1x32x1xf32> to vector<32x1xf32>
    %c1_81 = arith.constant 1 : index
    %c0_82 = arith.constant 0 : index
    %c0_83 = arith.constant 0 : index
    %128 = vector.load %arg17[%c1_81, %c0_82, %c0_83] : memref<3x32x32xf32, #tpu.memory_space<vmem>>, vector<1x32x32xf32>
    %129 = vector.shape_cast %128 : vector<1x32x32xf32> to vector<32x32xf32>
    %c1_84 = arith.constant 1 : index
    %c0_85 = arith.constant 0 : index
    %c0_86 = arith.constant 0 : index
    %130 = vector.load %arg18[%c1_84, %c0_85, %c0_86] : memref<3x32x1xf32, #tpu.memory_space<vmem>>, vector<1x32x1xf32>
    %131 = vector.shape_cast %130 : vector<1x32x1xf32> to vector<32x1xf32>
    %132 = vector.extract_strided_slice %16 {offsets = [16, 0], sizes = [16, 128], strides = [1, 1]} : vector<48x128xf32> to vector<16x128xf32>
    %c2_i32 = arith.constant 2 : i32
    %133 = vector.broadcast %c2_i32 : i32 to vector<1x128xi32>
    %134 = arith.cmpi sge, %11, %133 : vector<1x128xi32>
    %135 = arith.extui %134 : vector<1x128xi1> to vector<1x128xi32>
    %136 = arith.sitofp %135 : vector<1x128xi32> to vector<1x128xf32>
    %c126_i32 = arith.constant 126 : i32
    %137 = vector.broadcast %c126_i32 : i32 to vector<1x128xi32>
    %138 = arith.cmpi slt, %11, %137 : vector<1x128xi32>
    %139 = arith.extui %138 : vector<1x128xi1> to vector<1x128xi32>
    %140 = arith.sitofp %139 : vector<1x128xi32> to vector<1x128xf32>
    %c2_i32_87 = arith.constant 2 : i32
    %141 = tpu.dynamic_rotate %115 by %c2_i32_87 dim 1 : vector<32x128xf32>, i32 -> vector<32x128xf32>
    %142 = vector.broadcast %136 : vector<1x128xf32> to vector<32x128xf32>
    %143 = arith.mulf %141, %142 : vector<32x128xf32>
    %c126_i32_88 = arith.constant 126 : i32
    %144 = tpu.dynamic_rotate %115 by %c126_i32_88 dim 1 : vector<32x128xf32>, i32 -> vector<32x128xf32>
    %145 = vector.broadcast %140 : vector<1x128xf32> to vector<32x128xf32>
    %146 = arith.mulf %144, %145 : vector<32x128xf32>
    %147 = tpu.concatenate %143, %115, %146 in 0 : vector<32x128xf32>, vector<32x128xf32>, vector<32x128xf32> -> vector<96x128xf32>
    %cst_89 = arith.constant dense<0.000000e+00> : vector<32x128xf32>
    %148 = tpu.matmul %117, %147, %cst_89 {dimension_numbers = #tpu.dot_dimension_numbers<[1], [0], [0], [1], [0, 0, 1, 1], [], []>} : vector<32x96xf32>, vector<96x128xf32>, vector<32x128xf32> -> vector<32x128xf32>
    %149 = vector.broadcast %119 : vector<32x1xf32> to vector<32x128xf32>
    %150 = arith.addf %148, %149 : vector<32x128xf32>
    %cst_90 = arith.constant 0.000000e+00 : f32
    %151 = vector.broadcast %cst_90 : f32 to vector<32x128xf32>
    %152 = arith.maximumf %150, %151 : vector<32x128xf32>
    %cst_91 = arith.constant dense<0.000000e+00> : vector<32xf32>
    %153 = vector.multi_reduction <add>, %152, %cst_91 [1] : vector<32x128xf32> to vector<32xf32>
    %154 = vector.shape_cast %153 : vector<32xf32> to vector<32x1xf32>
    %cst_92 = arith.constant 1.280000e+02 : f32
    %155 = vector.broadcast %cst_92 : f32 to vector<32x1xf32>
    %156 = arith.divf %154, %155 : vector<32x1xf32>
    %157 = vector.broadcast %156 : vector<32x1xf32> to vector<32x128xf32>
    %158 = arith.subf %152, %157 : vector<32x128xf32>
    %159 = arith.mulf %158, %158 : vector<32x128xf32>
    %cst_93 = arith.constant dense<0.000000e+00> : vector<32xf32>
    %160 = vector.multi_reduction <add>, %159, %cst_93 [1] : vector<32x128xf32> to vector<32xf32>
    %161 = vector.shape_cast %160 : vector<32xf32> to vector<32x1xf32>
    %cst_94 = arith.constant 1.280000e+02 : f32
    %162 = vector.broadcast %cst_94 : f32 to vector<32x1xf32>
    %163 = arith.divf %161, %162 : vector<32x1xf32>
    %164 = vector.broadcast %156 : vector<32x1xf32> to vector<32x128xf32>
    %165 = arith.subf %152, %164 : vector<32x128xf32>
    %cst_95 = arith.constant 9.99999974E-6 : f32
    %166 = vector.broadcast %cst_95 : f32 to vector<32x1xf32>
    %167 = arith.addf %163, %166 : vector<32x1xf32>
    %168 = math.rsqrt %167 : vector<32x1xf32>
    %169 = vector.broadcast %168 : vector<32x1xf32> to vector<32x128xf32>
    %170 = arith.mulf %165, %169 : vector<32x128xf32>
    %cst_96 = arith.constant dense<0.000000e+00> : vector<32x128xf32>
    %171 = tpu.matmul %121, %170, %cst_96 {dimension_numbers = #tpu.dot_dimension_numbers<[1], [0], [0], [1], [0, 0, 1, 1], [], []>} : vector<32x32xf32>, vector<32x128xf32>, vector<32x128xf32> -> vector<32x128xf32>
    %172 = vector.broadcast %123 : vector<32x1xf32> to vector<32x128xf32>
    %173 = arith.addf %171, %172 : vector<32x128xf32>
    %174 = vector.extract_strided_slice %173 {offsets = [0, 0], sizes = [16, 128], strides = [1, 1]} : vector<32x128xf32> to vector<16x128xf32>
    %cst_97 = arith.constant 2.500000e-01 : f32
    %175 = vector.broadcast %cst_97 : f32 to vector<16x128xf32>
    %176 = arith.mulf %174, %175 : vector<16x128xf32>
    %177 = vector.extract_strided_slice %173 {offsets = [16, 0], sizes = [16, 128], strides = [1, 1]} : vector<32x128xf32> to vector<16x128xf32>
    %cst_98 = arith.constant dense<0.000000e+00> : vector<128x128xf32>
    %178 = tpu.matmul %177, %176, %cst_98 {dimension_numbers = #tpu.dot_dimension_numbers<[0], [0], [1], [1], [0, 1, 1, 1], [], []>} : vector<16x128xf32>, vector<16x128xf32>, vector<128x128xf32> -> vector<128x128xf32>
    %179 = vector.broadcast %10 : vector<128x1xf32> to vector<128x128xf32>
    %180 = arith.addf %178, %179 : vector<128x128xf32>
    %cst_99 = arith.constant dense<0xFF800000> : vector<128xf32>
    %181 = vector.multi_reduction <maximumf>, %180, %cst_99 [0] : vector<128x128xf32> to vector<128xf32>
    %182 = vector.shape_cast %181 : vector<128xf32> to vector<1x128xf32>
    %183 = vector.broadcast %182 : vector<1x128xf32> to vector<128x128xf32>
    %184 = arith.subf %180, %183 : vector<128x128xf32>
    %185 = math.exp %184 : vector<128x128xf32>
    %cst_100 = arith.constant dense<0.000000e+00> : vector<128xf32>
    %186 = vector.multi_reduction <add>, %185, %cst_100 [0] : vector<128x128xf32> to vector<128xf32>
    %187 = vector.shape_cast %186 : vector<128xf32> to vector<1x128xf32>
    %188 = tpu.reciprocal %187 {approx = true} : vector<1x128xf32> -> vector<1x128xf32>
    %189 = vector.broadcast %188 : vector<1x128xf32> to vector<128x128xf32>
    %190 = arith.mulf %185, %189 : vector<128x128xf32>
    %191 = vector.broadcast %7 : vector<128x1xf32> to vector<128x128xf32>
    %192 = arith.mulf %190, %191 : vector<128x128xf32>
    %cst_101 = arith.constant dense<0.000000e+00> : vector<16x128xf32>
    %193 = tpu.matmul %132, %192, %cst_101 {dimension_numbers = #tpu.dot_dimension_numbers<[1], [0], [0], [1], [0, 0, 1, 1], [], []>} : vector<16x128xf32>, vector<128x128xf32>, vector<16x128xf32> -> vector<16x128xf32>
    %cst_102 = arith.constant 0.000000e+00 : f32
    %194 = vector.broadcast %cst_102 : f32 to vector<16x128xf32>
    %195 = arith.maximumf %193, %194 : vector<16x128xf32>
    %cst_103 = arith.constant dense<0.000000e+00> : vector<32x128xf32>
    %196 = tpu.matmul %125, %195, %cst_103 {dimension_numbers = #tpu.dot_dimension_numbers<[1], [0], [0], [1], [0, 0, 1, 1], [], []>} : vector<32x16xf32>, vector<16x128xf32>, vector<32x128xf32> -> vector<32x128xf32>
    %197 = vector.broadcast %127 : vector<32x1xf32> to vector<32x128xf32>
    %198 = arith.addf %196, %197 : vector<32x128xf32>
    %199 = vector.broadcast %5 : vector<1x128xf32> to vector<32x128xf32>
    %200 = arith.mulf %198, %199 : vector<32x128xf32>
    %cst_104 = arith.constant 1.000000e+00 : f32
    %201 = vector.broadcast %cst_104 : f32 to vector<32x128xf32>
    %202 = arith.mulf %201, %200 : vector<32x128xf32>
    %203 = arith.addf %202, %152 : vector<32x128xf32>
    %cst_105 = arith.constant dense<0.000000e+00> : vector<32x128xf32>
    %204 = tpu.matmul %129, %203, %cst_105 {dimension_numbers = #tpu.dot_dimension_numbers<[1], [0], [0], [1], [0, 0, 1, 1], [], []>} : vector<32x32xf32>, vector<32x128xf32>, vector<32x128xf32> -> vector<32x128xf32>
    %205 = vector.broadcast %131 : vector<32x1xf32> to vector<32x128xf32>
    %206 = arith.addf %204, %205 : vector<32x128xf32>
    %207 = arith.addf %115, %206 : vector<32x128xf32>
    %208 = vector.broadcast %5 : vector<1x128xf32> to vector<32x128xf32>
    %209 = arith.mulf %207, %208 : vector<32x128xf32>
    %c2 = arith.constant 2 : index
    %c0_106 = arith.constant 0 : index
    %c0_107 = arith.constant 0 : index
    %210 = vector.load %arg9[%c2, %c0_106, %c0_107] : memref<3x32x96xf32, #tpu.memory_space<vmem>>, vector<1x32x96xf32>
    %211 = vector.shape_cast %210 : vector<1x32x96xf32> to vector<32x96xf32>
    %c2_108 = arith.constant 2 : index
    %c0_109 = arith.constant 0 : index
    %c0_110 = arith.constant 0 : index
    %212 = vector.load %arg10[%c2_108, %c0_109, %c0_110] : memref<3x32x1xf32, #tpu.memory_space<vmem>>, vector<1x32x1xf32>
    %213 = vector.shape_cast %212 : vector<1x32x1xf32> to vector<32x1xf32>
    %c2_111 = arith.constant 2 : index
    %c0_112 = arith.constant 0 : index
    %c0_113 = arith.constant 0 : index
    %214 = vector.load %arg11[%c2_111, %c0_112, %c0_113] : memref<3x32x32xf32, #tpu.memory_space<vmem>>, vector<1x32x32xf32>
    %215 = vector.shape_cast %214 : vector<1x32x32xf32> to vector<32x32xf32>
    %c2_114 = arith.constant 2 : index
    %c0_115 = arith.constant 0 : index
    %c0_116 = arith.constant 0 : index
    %216 = vector.load %arg12[%c2_114, %c0_115, %c0_116] : memref<3x32x1xf32, #tpu.memory_space<vmem>>, vector<1x32x1xf32>
    %217 = vector.shape_cast %216 : vector<1x32x1xf32> to vector<32x1xf32>
    %c2_117 = arith.constant 2 : index
    %c0_118 = arith.constant 0 : index
    %c0_119 = arith.constant 0 : index
    %218 = vector.load %arg15[%c2_117, %c0_118, %c0_119] : memref<3x32x16xf32, #tpu.memory_space<vmem>>, vector<1x32x16xf32>
    %219 = vector.shape_cast %218 : vector<1x32x16xf32> to vector<32x16xf32>
    %c2_120 = arith.constant 2 : index
    %c0_121 = arith.constant 0 : index
    %c0_122 = arith.constant 0 : index
    %220 = vector.load %arg16[%c2_120, %c0_121, %c0_122] : memref<3x32x1xf32, #tpu.memory_space<vmem>>, vector<1x32x1xf32>
    %221 = vector.shape_cast %220 : vector<1x32x1xf32> to vector<32x1xf32>
    %c2_123 = arith.constant 2 : index
    %c0_124 = arith.constant 0 : index
    %c0_125 = arith.constant 0 : index
    %222 = vector.load %arg17[%c2_123, %c0_124, %c0_125] : memref<3x32x32xf32, #tpu.memory_space<vmem>>, vector<1x32x32xf32>
    %223 = vector.shape_cast %222 : vector<1x32x32xf32> to vector<32x32xf32>
    %c2_126 = arith.constant 2 : index
    %c0_127 = arith.constant 0 : index
    %c0_128 = arith.constant 0 : index
    %224 = vector.load %arg18[%c2_126, %c0_127, %c0_128] : memref<3x32x1xf32, #tpu.memory_space<vmem>>, vector<1x32x1xf32>
    %225 = vector.shape_cast %224 : vector<1x32x1xf32> to vector<32x1xf32>
    %226 = vector.extract_strided_slice %16 {offsets = [32, 0], sizes = [16, 128], strides = [1, 1]} : vector<48x128xf32> to vector<16x128xf32>
    %c4_i32 = arith.constant 4 : i32
    %227 = vector.broadcast %c4_i32 : i32 to vector<1x128xi32>
    %228 = arith.cmpi sge, %11, %227 : vector<1x128xi32>
    %229 = arith.extui %228 : vector<1x128xi1> to vector<1x128xi32>
    %230 = arith.sitofp %229 : vector<1x128xi32> to vector<1x128xf32>
    %c124_i32 = arith.constant 124 : i32
    %231 = vector.broadcast %c124_i32 : i32 to vector<1x128xi32>
    %232 = arith.cmpi slt, %11, %231 : vector<1x128xi32>
    %233 = arith.extui %232 : vector<1x128xi1> to vector<1x128xi32>
    %234 = arith.sitofp %233 : vector<1x128xi32> to vector<1x128xf32>
    %c4_i32_129 = arith.constant 4 : i32
    %235 = tpu.dynamic_rotate %209 by %c4_i32_129 dim 1 : vector<32x128xf32>, i32 -> vector<32x128xf32>
    %236 = vector.broadcast %230 : vector<1x128xf32> to vector<32x128xf32>
    %237 = arith.mulf %235, %236 : vector<32x128xf32>
    %c124_i32_130 = arith.constant 124 : i32
    %238 = tpu.dynamic_rotate %209 by %c124_i32_130 dim 1 : vector<32x128xf32>, i32 -> vector<32x128xf32>
    %239 = vector.broadcast %234 : vector<1x128xf32> to vector<32x128xf32>
    %240 = arith.mulf %238, %239 : vector<32x128xf32>
    %241 = tpu.concatenate %237, %209, %240 in 0 : vector<32x128xf32>, vector<32x128xf32>, vector<32x128xf32> -> vector<96x128xf32>
    %cst_131 = arith.constant dense<0.000000e+00> : vector<32x128xf32>
    %242 = tpu.matmul %211, %241, %cst_131 {dimension_numbers = #tpu.dot_dimension_numbers<[1], [0], [0], [1], [0, 0, 1, 1], [], []>} : vector<32x96xf32>, vector<96x128xf32>, vector<32x128xf32> -> vector<32x128xf32>
    %243 = vector.broadcast %213 : vector<32x1xf32> to vector<32x128xf32>
    %244 = arith.addf %242, %243 : vector<32x128xf32>
    %cst_132 = arith.constant 0.000000e+00 : f32
    %245 = vector.broadcast %cst_132 : f32 to vector<32x128xf32>
    %246 = arith.maximumf %244, %245 : vector<32x128xf32>
    %cst_133 = arith.constant dense<0.000000e+00> : vector<32xf32>
    %247 = vector.multi_reduction <add>, %246, %cst_133 [1] : vector<32x128xf32> to vector<32xf32>
    %248 = vector.shape_cast %247 : vector<32xf32> to vector<32x1xf32>
    %cst_134 = arith.constant 1.280000e+02 : f32
    %249 = vector.broadcast %cst_134 : f32 to vector<32x1xf32>
    %250 = arith.divf %248, %249 : vector<32x1xf32>
    %251 = vector.broadcast %250 : vector<32x1xf32> to vector<32x128xf32>
    %252 = arith.subf %246, %251 : vector<32x128xf32>
    %253 = arith.mulf %252, %252 : vector<32x128xf32>
    %cst_135 = arith.constant dense<0.000000e+00> : vector<32xf32>
    %254 = vector.multi_reduction <add>, %253, %cst_135 [1] : vector<32x128xf32> to vector<32xf32>
    %255 = vector.shape_cast %254 : vector<32xf32> to vector<32x1xf32>
    %cst_136 = arith.constant 1.280000e+02 : f32
    %256 = vector.broadcast %cst_136 : f32 to vector<32x1xf32>
    %257 = arith.divf %255, %256 : vector<32x1xf32>
    %258 = vector.broadcast %250 : vector<32x1xf32> to vector<32x128xf32>
    %259 = arith.subf %246, %258 : vector<32x128xf32>
    %cst_137 = arith.constant 9.99999974E-6 : f32
    %260 = vector.broadcast %cst_137 : f32 to vector<32x1xf32>
    %261 = arith.addf %257, %260 : vector<32x1xf32>
    %262 = math.rsqrt %261 : vector<32x1xf32>
    %263 = vector.broadcast %262 : vector<32x1xf32> to vector<32x128xf32>
    %264 = arith.mulf %259, %263 : vector<32x128xf32>
    %cst_138 = arith.constant dense<0.000000e+00> : vector<32x128xf32>
    %265 = tpu.matmul %215, %264, %cst_138 {dimension_numbers = #tpu.dot_dimension_numbers<[1], [0], [0], [1], [0, 0, 1, 1], [], []>} : vector<32x32xf32>, vector<32x128xf32>, vector<32x128xf32> -> vector<32x128xf32>
    %266 = vector.broadcast %217 : vector<32x1xf32> to vector<32x128xf32>
    %267 = arith.addf %265, %266 : vector<32x128xf32>
    %268 = vector.extract_strided_slice %267 {offsets = [0, 0], sizes = [16, 128], strides = [1, 1]} : vector<32x128xf32> to vector<16x128xf32>
    %cst_139 = arith.constant 2.500000e-01 : f32
    %269 = vector.broadcast %cst_139 : f32 to vector<16x128xf32>
    %270 = arith.mulf %268, %269 : vector<16x128xf32>
    %271 = vector.extract_strided_slice %267 {offsets = [16, 0], sizes = [16, 128], strides = [1, 1]} : vector<32x128xf32> to vector<16x128xf32>
    %cst_140 = arith.constant dense<0.000000e+00> : vector<128x128xf32>
    %272 = tpu.matmul %271, %270, %cst_140 {dimension_numbers = #tpu.dot_dimension_numbers<[0], [0], [1], [1], [0, 1, 1, 1], [], []>} : vector<16x128xf32>, vector<16x128xf32>, vector<128x128xf32> -> vector<128x128xf32>
    %273 = vector.broadcast %10 : vector<128x1xf32> to vector<128x128xf32>
    %274 = arith.addf %272, %273 : vector<128x128xf32>
    %cst_141 = arith.constant dense<0xFF800000> : vector<128xf32>
    %275 = vector.multi_reduction <maximumf>, %274, %cst_141 [0] : vector<128x128xf32> to vector<128xf32>
    %276 = vector.shape_cast %275 : vector<128xf32> to vector<1x128xf32>
    %277 = vector.broadcast %276 : vector<1x128xf32> to vector<128x128xf32>
    %278 = arith.subf %274, %277 : vector<128x128xf32>
    %279 = math.exp %278 : vector<128x128xf32>
    %cst_142 = arith.constant dense<0.000000e+00> : vector<128xf32>
    %280 = vector.multi_reduction <add>, %279, %cst_142 [0] : vector<128x128xf32> to vector<128xf32>
    %281 = vector.shape_cast %280 : vector<128xf32> to vector<1x128xf32>
    %282 = tpu.reciprocal %281 {approx = true} : vector<1x128xf32> -> vector<1x128xf32>
    %283 = vector.broadcast %282 : vector<1x128xf32> to vector<128x128xf32>
    %284 = arith.mulf %279, %283 : vector<128x128xf32>
    %285 = vector.broadcast %7 : vector<128x1xf32> to vector<128x128xf32>
    %286 = arith.mulf %284, %285 : vector<128x128xf32>
    %cst_143 = arith.constant dense<0.000000e+00> : vector<16x128xf32>
    %287 = tpu.matmul %226, %286, %cst_143 {dimension_numbers = #tpu.dot_dimension_numbers<[1], [0], [0], [1], [0, 0, 1, 1], [], []>} : vector<16x128xf32>, vector<128x128xf32>, vector<16x128xf32> -> vector<16x128xf32>
    %cst_144 = arith.constant 0.000000e+00 : f32
    %288 = vector.broadcast %cst_144 : f32 to vector<16x128xf32>
    %289 = arith.maximumf %287, %288 : vector<16x128xf32>
    %cst_145 = arith.constant dense<0.000000e+00> : vector<32x128xf32>
    %290 = tpu.matmul %219, %289, %cst_145 {dimension_numbers = #tpu.dot_dimension_numbers<[1], [0], [0], [1], [0, 0, 1, 1], [], []>} : vector<32x16xf32>, vector<16x128xf32>, vector<32x128xf32> -> vector<32x128xf32>
    %291 = vector.broadcast %221 : vector<32x1xf32> to vector<32x128xf32>
    %292 = arith.addf %290, %291 : vector<32x128xf32>
    %293 = vector.broadcast %5 : vector<1x128xf32> to vector<32x128xf32>
    %294 = arith.mulf %292, %293 : vector<32x128xf32>
    %cst_146 = arith.constant 1.000000e+00 : f32
    %295 = vector.broadcast %cst_146 : f32 to vector<32x128xf32>
    %296 = arith.mulf %295, %294 : vector<32x128xf32>
    %297 = arith.addf %296, %246 : vector<32x128xf32>
    %cst_147 = arith.constant dense<0.000000e+00> : vector<32x128xf32>
    %298 = tpu.matmul %223, %297, %cst_147 {dimension_numbers = #tpu.dot_dimension_numbers<[1], [0], [0], [1], [0, 0, 1, 1], [], []>} : vector<32x32xf32>, vector<32x128xf32>, vector<32x128xf32> -> vector<32x128xf32>
    %299 = vector.broadcast %225 : vector<32x1xf32> to vector<32x128xf32>
    %300 = arith.addf %298, %299 : vector<32x128xf32>
    %301 = arith.addf %209, %300 : vector<32x128xf32>
    %302 = vector.broadcast %5 : vector<1x128xf32> to vector<32x128xf32>
    %303 = arith.mulf %301, %302 : vector<32x128xf32>
    %c0_148 = arith.constant 0 : index
    %c0_149 = arith.constant 0 : index
    %c0_150 = arith.constant 0 : index
    %304 = vector.load %arg20[%c0_148, %c0_149, %c0_150] : memref<1x32x128xf32, #tpu.memory_space<vmem>>, vector<1x32x128xf32>
    %305 = vector.shape_cast %304 : vector<1x32x128xf32> to vector<32x128xf32>
    %306 = vector.shape_cast %303 : vector<32x128xf32> to vector<1x32x128xf32>
    tpu.vector_store %arg20[%c0_148, %c0_149, %c0_150], %306 {strides = array<i32>} : memref<1x32x128xf32, #tpu.memory_space<vmem>>, vector<1x32x128xf32>,
    %c0_151 = arith.constant 0 : index
    %c0_152 = arith.constant 0 : index
    %307 = vector.load %arg7[%c0_151, %c0_152] : memref<8x32xf32, #tpu.memory_space<vmem>>, vector<8x32xf32>
    %cst_153 = arith.constant dense<0.000000e+00> : vector<8x128xf32>
    %308 = tpu.matmul %307, %303, %cst_153 {dimension_numbers = #tpu.dot_dimension_numbers<[1], [0], [0], [1], [0, 0, 1, 1], [], []>} : vector<8x32xf32>, vector<32x128xf32>, vector<8x128xf32> -> vector<8x128xf32>
    %c0_154 = arith.constant 0 : index
    %c0_155 = arith.constant 0 : index
    %309 = vector.load %arg8[%c0_154, %c0_155] : memref<8x1xf32, #tpu.memory_space<vmem>>, vector<8x1xf32>
    %310 = vector.broadcast %309 : vector<8x1xf32> to vector<8x128xf32>
    %311 = arith.addf %308, %310 : vector<8x128xf32>
    %312 = vector.broadcast %5 : vector<1x128xf32> to vector<8x128xf32>
    %313 = arith.mulf %311, %312 : vector<8x128xf32>
    %c0_156 = arith.constant 0 : index
    %c0_157 = arith.constant 0 : index
    %c0_158 = arith.constant 0 : index
    %314 = vector.load %arg19[%c0_156, %c0_157, %c0_158] : memref<1x8x128xf32, #tpu.memory_space<vmem>>, vector<1x8x128xf32>
    %315 = vector.shape_cast %314 : vector<1x8x128xf32> to vector<8x128xf32>
    %316 = vector.shape_cast %313 : vector<8x128xf32> to vector<1x8x128xf32>
    tpu.vector_store %arg19[%c0_156, %c0_157, %c0_158], %316 {strides = array<i32>} : memref<1x8x128xf32, #tpu.memory_space<vmem>>, vector<1x8x128xf32>,
    return
  }
  func.func @transform_0(%arg0: i32) -> (i32, i32, i32) {
    %c0_i32 = arith.constant 0 : i32
    %c0_i32_0 = arith.constant 0 : i32
    %c0_i32_1 = arith.constant 0 : i32
    return %arg0, %c0_i32, %c0_i32_0 : i32, i32, i32
  }
  func.func @transform_1(%arg0: i32) -> (i32, i32, i32) {
    %c0_i32 = arith.constant 0 : i32
    %c0_i32_0 = arith.constant 0 : i32
    %c0_i32_1 = arith.constant 0 : i32
    return %arg0, %c0_i32, %c0_i32_0 : i32, i32, i32
  }
  func.func @transform_2(%arg0: i32) -> (i32, i32, i32) {
    %c0_i32 = arith.constant 0 : i32
    %c0_i32_0 = arith.constant 0 : i32
    %c0_i32_1 = arith.constant 0 : i32
    return %arg0, %c0_i32, %c0_i32_0 : i32, i32, i32
  }
  func.func @transform_3(%arg0: i32) -> (i32, i32, i32) {
    %c0_i32 = arith.constant 0 : i32
    %c0_i32_0 = arith.constant 0 : i32
    %c0_i32_1 = arith.constant 0 : i32
    return %arg0, %c0_i32, %c0_i32_0 : i32, i32, i32
  }
  func.func @transform_4(%arg0: i32) -> (i32, i32) {
    %c0_i32 = arith.constant 0 : i32
    %c0_i32_0 = arith.constant 0 : i32
    %c0_i32_1 = arith.constant 0 : i32
    return %c0_i32, %c0_i32_0 : i32, i32
  }
  func.func @transform_5(%arg0: i32) -> (i32, i32) {
    %c0_i32 = arith.constant 0 : i32
    %c0_i32_0 = arith.constant 0 : i32
    %c0_i32_1 = arith.constant 0 : i32
    return %c0_i32, %c0_i32_0 : i32, i32
  }
  func.func @transform_6(%arg0: i32) -> (i32, i32) {
    %c0_i32 = arith.constant 0 : i32
    %c0_i32_0 = arith.constant 0 : i32
    %c0_i32_1 = arith.constant 0 : i32
    return %c0_i32, %c0_i32_0 : i32, i32
  }
  func.func @transform_7(%arg0: i32) -> (i32, i32) {
    %c0_i32 = arith.constant 0 : i32
    %c0_i32_0 = arith.constant 0 : i32
    %c0_i32_1 = arith.constant 0 : i32
    return %c0_i32, %c0_i32_0 : i32, i32
  }
  func.func @transform_8(%arg0: i32) -> (i32, i32, i32) {
    %c0_i32 = arith.constant 0 : i32
    %c0_i32_0 = arith.constant 0 : i32
    %c0_i32_1 = arith.constant 0 : i32
    %c0_i32_2 = arith.constant 0 : i32
    return %c0_i32, %c0_i32_0, %c0_i32_1 : i32, i32, i32
  }
  func.func @transform_9(%arg0: i32) -> (i32, i32, i32) {
    %c0_i32 = arith.constant 0 : i32
    %c0_i32_0 = arith.constant 0 : i32
    %c0_i32_1 = arith.constant 0 : i32
    %c0_i32_2 = arith.constant 0 : i32
    return %c0_i32, %c0_i32_0, %c0_i32_1 : i32, i32, i32
  }
  func.func @transform_10(%arg0: i32) -> (i32, i32, i32) {
    %c0_i32 = arith.constant 0 : i32
    %c0_i32_0 = arith.constant 0 : i32
    %c0_i32_1 = arith.constant 0 : i32
    %c0_i32_2 = arith.constant 0 : i32
    return %c0_i32, %c0_i32_0, %c0_i32_1 : i32, i32, i32
  }
  func.func @transform_11(%arg0: i32) -> (i32, i32, i32) {
    %c0_i32 = arith.constant 0 : i32
    %c0_i32_0 = arith.constant 0 : i32
    %c0_i32_1 = arith.constant 0 : i32
    %c0_i32_2 = arith.constant 0 : i32
    return %c0_i32, %c0_i32_0, %c0_i32_1 : i32, i32, i32
  }
  func.func @transform_12(%arg0: i32) -> (i32, i32) {
    %c0_i32 = arith.constant 0 : i32
    %c0_i32_0 = arith.constant 0 : i32
    %c0_i32_1 = arith.constant 0 : i32
    return %c0_i32, %c0_i32_0 : i32, i32
  }
  func.func @transform_13(%arg0: i32) -> (i32, i32) {
    %c0_i32 = arith.constant 0 : i32
    %c0_i32_0 = arith.constant 0 : i32
    %c0_i32_1 = arith.constant 0 : i32
    return %c0_i32, %c0_i32_0 : i32, i32
  }
  func.func @transform_14(%arg0: i32) -> (i32, i32, i32) {
    %c0_i32 = arith.constant 0 : i32
    %c0_i32_0 = arith.constant 0 : i32
    %c0_i32_1 = arith.constant 0 : i32
    %c0_i32_2 = arith.constant 0 : i32
    return %c0_i32, %c0_i32_0, %c0_i32_1 : i32, i32, i32
  }
  func.func @transform_15(%arg0: i32) -> (i32, i32, i32) {
    %c0_i32 = arith.constant 0 : i32
    %c0_i32_0 = arith.constant 0 : i32
    %c0_i32_1 = arith.constant 0 : i32
    %c0_i32_2 = arith.constant 0 : i32
    return %c0_i32, %c0_i32_0, %c0_i32_1 : i32, i32, i32
  }
  func.func @transform_16(%arg0: i32) -> (i32, i32, i32) {
    %c0_i32 = arith.constant 0 : i32
    %c0_i32_0 = arith.constant 0 : i32
    %c0_i32_1 = arith.constant 0 : i32
    %c0_i32_2 = arith.constant 0 : i32
    return %c0_i32, %c0_i32_0, %c0_i32_1 : i32, i32, i32
  }
  func.func @transform_17(%arg0: i32) -> (i32, i32, i32) {
    %c0_i32 = arith.constant 0 : i32
    %c0_i32_0 = arith.constant 0 : i32
    %c0_i32_1 = arith.constant 0 : i32
    %c0_i32_2 = arith.constant 0 : i32
    return %c0_i32, %c0_i32_0, %c0_i32_1 : i32, i32, i32
  }
  func.func @transform_18(%arg0: i32) -> (i32, i32, i32) {
    %c0_i32 = arith.constant 0 : i32
    %c0_i32_0 = arith.constant 0 : i32
    %c0_i32_1 = arith.constant 0 : i32
    return %arg0, %c0_i32, %c0_i32_0 : i32, i32, i32
  }
  func.func @transform_19(%arg0: i32) -> (i32, i32, i32) {
    %c0_i32 = arith.constant 0 : i32
    %c0_i32_0 = arith.constant 0 : i32
    %c0_i32_1 = arith.constant 0 : i32
    return %arg0, %c0_i32, %c0_i32_0 : i32, i32, i32
  }
}

</mosaic_0001>

<bundles_post_ra>
// kernel: tpu_custom_call.1
= control target key start
LH: loop header
LB: loop body
LE: loop exit
PB: predicated region body
PF: predicated region fallthrough
CT: control target
= control target key end

     0   :  { %s5330_s0 = inlined_call_operand.vmem [shape: f32[2,24,128], index: 0, kind: input, shape index: {}]   ;;  %s5331_s1 = inlined_call_operand.vmem [shape: f32[2,32,128], index: 1, kind: input, shape index: {}]   ;;  %s5332_s2 = inlined_call_operand.vmem [shape: f32[2,1,128], index: 2, kind: input, shape index: {}]   ;;  %s5333_s3 = inlined_call_operand.vmem [shape: f32[2,128,1], index: 3, kind: input, shape index: {}]   ;;  %s5334_s4 = inlined_call_operand.vmem [shape: f32[32,24], index: 4, kind: input, shape index: {}]   ;;  %s5335_s5 = inlined_call_operand.vmem [shape: f32[32,1], index: 5, kind: input, shape index: {}]   ;;  %s5336_s6 = inlined_call_operand.vmem [shape: f32[8,32], index: 6, kind: input, shape index: {}]   ;;  %s5337_s7 = inlined_call_operand.vmem [shape: f32[8,1], index: 7, kind: input, shape index: {}]   ;;  %s5338_s8 = inlined_call_operand.vmem [shape: f32[3,32,96], index: 8, kind: input, shape index: {}]   ;;  %s5339_s9 = inlined_call_operand.vmem [shape: f32[3,32,1], index: 9, kind: input, shape index: {}]   ;;  %s5340_s10 = inlined_call_operand.vmem [shape: f32[3,32,32], index: 10, kind: input, shape index: {}]   ;;  %s5341_s11 = inlined_call_operand.vmem [shape: f32[3,32,1], index: 11, kind: input, shape index: {}]   ;;  %s5342_s12 = inlined_call_operand.vmem [shape: f32[48,32], index: 12, kind: input, shape index: {}]   ;;  %s5343_s13 = inlined_call_operand.vmem [shape: f32[48,1], index: 13, kind: input, shape index: {}]   ;;  %s5344_s14 = inlined_call_operand.vmem [shape: f32[3,32,16], index: 14, kind: input, shape index: {}]   ;;  %s5345_s15 = inlined_call_operand.vmem [shape: f32[3,32,1], index: 15, kind: input, shape index: {}]   ;;  %s5346_s16 = inlined_call_operand.vmem [shape: f32[3,32,32], index: 16, kind: input, shape index: {}]   ;;  %s5347_s17 = inlined_call_operand.vmem [shape: f32[3,32,1], index: 17, kind: input, shape index: {}]   ;;  %s5348_s18 = inlined_call_operand.hbm [shape: f32[2,8,128], index: 18, kind: output, shape index: {0}]   ;;  %s5349_s19 = inlined_call_operand.hbm [shape: f32[2,32,128], index: 19, kind: output, shape index: {1}]  }
   0x1   :  { %5378 = sst [smem:[#allocation31_spill]] %s5330_s0 }
   0x2   :  { %5379 = sst [smem:[#allocation32_spill]] %s5331_s1 }
   0x3   :  { %5380 = sst [smem:[#allocation33_spill]] %s5332_s2 }
   0x4   :  { %5381 = sst [smem:[#allocation34_spill]] %s5333_s3 }
   0x5   :  { %5382 = sst [smem:[#allocation35_spill]] %s5334_s4 }
   0x6   :  { %5383 = sst [smem:[#allocation36_spill]] %s5335_s5 }
   0x7   :  { %5384 = sst [smem:[#allocation37_spill]] %s5336_s6 }
   0x8   :  { %5385 = sst [smem:[#allocation38_spill]] %s5337_s7 }
   0x9   :  { %5386 = sst [smem:[#allocation39_spill]] %s5348_s18 }
   0xa   :  { %5387 = sst [smem:[#allocation40_spill]] %s5349_s19 }
   0xb   :  { %25 = vsyncpa [#allocation3], 0 }
   0xc   :  { %27 = vsyncpa [#allocation3 + $0x1], 0 }
   0xd   :  { %28 = vsyncpa [#allocation5], 0 }
   0xe   :  { %30 = vsyncpa [#allocation5 + $0x1], 0  ;;  %s4029_s0 = smov 0   ;;  %s4031_s30 = smov 0  }
   0xf   :  { %s4033_s20 = smov 0   ;;  %s4035_s21 = smov 0  }
  0x10 LB: > { %5388 = sst [smem:[#allocation8_spill]] %s3904_s0  ;;  %s4050_s1 = sadd.s32 4294967295, %s3916_s21   ;;  %s3916_s21 = sphi %s4035_s21, %s5448_s21   ;;  %s3912_s20 = sphi %s4033_s20, %s5450_s20   ;;  %s3908_s30 = sphi %s4031_s30, %s5452_s30   ;;  %s3904_s0 = sphi %s4029_s0, %s5451_s0  }
  0x11   : > { %5389 = sst [smem:[#allocation9_spill]] %s3912_s20  ;;  %s3396_s22 = sadd.s32 4294967294, %s3916_s21  }
  0x12   : > { %5390 = sst [smem:[#allocation10_spill]] %s3916_s21  ;;  %s4054_s2 = sadd.s32 1, %s3916_s21  }
  0x13   : > { %5391 = sst [smem:[#allocation11_spill]] %s4054_s2  ;;  %s441_s23 = sadd.s32 1, %s3912_s20 }
  0x14   : > { %s438_s24 = ssub.s32 %s3916_s21, %s4054_s2  ;;  %p451_p0 = scmp.ne.s32.totalorder %s3912_s20, %s3908_s30 }
  0x15   : > { %p439_p1 = scmp.eq.s32.totalorder %s438_s24, 0  ;;  %p452_p2 = scmp.eq.s32.totalorder %s4050_s1, 1 }
  0x16   : > { %p457_p3 = scmp.ne.s32.totalorder %s3908_s30, %s3904_s0  ;;  %p458_p4 = scmp.eq.s32.totalorder %s3396_s22, 1 }
  0x17   : > { %s4065_s25 = scalar_select %p439_p1, %s3912_s20, %s441_s23  }
  0x18   : > { %p4067_p5 = por %p452_p2, %p451_p0  ;;  %p4071_p6 = por %p458_p4, %p457_p3 }
  0x19   : > { %5392 = sst [smem:[#allocation12_spill]] %s4065_s25  ;;  %p3399_p7 = scmp.ge.s32.totalorder %s3916_s21, 1 }
  0x1a   : > { %s5394_s26 = scalar_select %p4071_p6, 1, 0 }
  0x1b   : > { %p574_p8 = scmp.lt.s32.totalorder %s3916_s21, 3 }
  0x1c   : > { %5395 = sst [smem:[#allocation13_spill]] %s5394_s26 }
  0x1d   : > { %p575_p9 = pnand %p3399_p7, %p574_p8 }
  0x1f   : > { %578 = sbr.rel (%p575_p9) target bundleno = 5475 (0x1563), region = 92 }
  0x24   : > { %p648_p10 = scmp.lt.s32.totalorder %s4050_s1, 1  ;;  %s5396_s5 = sld [smem:[#allocation36_spill]]  ;;  %v3918_v1 = vmov 0   ;;  %vm864_vm0 = vcmask 195584   ;;  %v912_v21 = vld [vmem:[%s5339_s9 + $0x10] sm:$0xff]  ;;  %v913_v24 = vld [vmem:[%s5339_s9 + $0x18] sm:$0xff]  ;;  %v738_v27 = vlaneseq }
  0x25   : > { %3657 = vset.pattern.permute.xlu1 %v3918_v1  ;;  %3656 = vset.pattern.permute.xlu0 %v3918_v1  ;;  %s5397_s25 = sld [smem:[#allocation33_spill]]  ;;  %s3919_s27 = smov 127   ;;  %v910_v26 = vld [vmem:[%s5339_s9] sm:$0xff]  ;;  %v5358_v29 = vmov 0.0   ;;  %v911_v44 = vld [vmem:[%s5339_s9 + $0x8] sm:$0xff]  ;;  %vm988_vm3 = vcmask 785408  }
  0x26   : > { %s4082_s29 = scalar_select %p648_p10, %s4050_s1, 1  ;;  %3658 = vset.pattern.permute.xlu2 %v3918_v1  ;;  %v4140_v28 = vand.u32 127, %v738_v27  ;;  %v906_v49 = vld [vmem:[%s5338_s8] sm:$0xff]  ;;  %v907_v50 = vld [vmem:[%s5338_s8 + $0x8] sm:$0xff]  ;;  %v908_v51 = vld [vmem:[%s5338_s8 + $0x10] sm:$0xff]  ;;  %vm782_vm5 = vcmask 261120  }
  0x27   : > { %s5398_s0 = sld [smem:[#allocation31_spill]]  ;;  %s3920_s28 = smov 1   ;;  %v909_v52 = vld [vmem:[%s5338_s8 + $0x18] sm:$0xff] }
  0x28   : > { %s3600_s22 = smul.u32 24, %s4082_s29  ;;  %s5399_s4 = sld [smem:[#allocation35_spill]]  ;;  %vm941_vm1 = vcmp.lt.s32.totalorder %v4140_v28, 127  ;;  %vm938_vm2 = vcmp.ge.s32.totalorder %v4140_v28, 1 }
  0x29   : > { %v3418_v30 = vsel %vm941_vm1, 1.0, %v5358_v29  ;;  %v3417_v40 = vsel %vm938_vm2, 1.0, %v5358_v29  ;;  %s5401_s19 = sld [smem:[#allocation34_spill]]  ;;  %vm1296_vm2 = vcmask 130048   ;;  %s3924_s2 = smov 2  }
  0x2a   : > { %v841_v0 = vld [vmem:[%s5396_s5 + $0x8] sm:$0xff]  ;;  %v843_v2 = vld [vmem:[%s5396_s5 + $0x18] sm:$0xff]  ;;  %v840_v5 = vld [vmem:[%s5396_s5] sm:$0xff]  ;;  %s5402_s24 = sld [smem:[#allocation32_spill]]  ;;  %s3925_s18 = smov 124  }
  0x2b   : > { %851 = vperm.xlu1 %3657, %v841_v0   ;;  %s4089_s20 = scalar_lea.vmem %s5397_s25, %s4082_s29  ;;  %861 = vperm.xlu0 %3656, %v843_v2   ;;  %v842_v8 = vld [vmem:[%s5396_s5 + $0x10] sm:$0xff]  ;;  %s5427_s7 = sld [smem:[#allocation38_spill]] }
  0x2c   : > { %s5266_s25 = sand.u32 1, %s3908_s30   ;;  %s5442_s6 = sld [smem:[#allocation37_spill]] }
  0x2d   : > { %s652_s21 = scalar_lea.vmem %s5398_s0, %s3600_s22  ;;  %s3592_s0 = sshll.u32 %s4082_s29, 7 }
  0x2e   : > { %v668_v3 = vld [vmem:[%s652_s21 + $0x10] sm:$0xff]  ;;  %v667_v4 = vld [vmem:[%s652_s21 + $0x8] sm:$0xff]  ;;  %v666_v6 = vld [vmem:[%s652_s21] sm:$0xff]  ;;  %s3591_s22 = sshll.u32 %s4082_s29, 5  ;;  %s3401_s23 = sshll.u32 %s5266_s25, 5 }
  0x2f   : > { %890 = vmatpush.msra.mxu2 %v668_v3  ;;  %v836_v7 = vld [vmem:[%s5399_s4] sm:$0xff]  ;;  %v837_v9 = vld [vmem:[%s5399_s4 + $0x8] sm:$0xff]  ;;  %v838_v10 = vld [vmem:[%s5399_s4 + $0x10] sm:$0xff]  ;;  %s4203_s21 = scalar_lea.vmem %s5401_s19, %s3592_s0  ;;  %s3926_s19 = smov 4  }
  0x30   : > { %v839_v11 = vld [vmem:[%s5399_s4 + $0x18] sm:$0xff]  ;;  %s3239_s29 = scalar_lea.sflag [#allocation5], %s5266_s25 }
  0x31   : > { %891 = vmatpush.msra.mxu2 %v667_v4 }
  0x33   : > { %846 = vperm.xlu1 %3657, %v840_v5   ;;  %892 = vmatpush.msra.mxu2 %v666_v6  ;;  %v3922_v5 = vmov 128.0  }
  0x34   : > { %3413 = vmatmul.msk.f32.vlgmr.msra.gmra.mxu2 %vm864_vm0, %v836_v7  ;;  %856 = vperm.xlu0 %3656, %v842_v8   ;;  %3660 = vrcp.f32 %v3922_v5 }
  0x3a   : > { %v3661_v6 = vpop.eup %3660 }
  0x3b   : > { %v1043_v7 = vmul.f32 128.0, %v3661_v6  ;;  %vm1047_vm4 = vweird.f32 %v3661_v6 }
  0x3c   : > { %3414 = vmatmul.msk.f32.gmra.mxu2 %vm864_vm0, %v837_v9 }
  0x3d   : > { %v1044_v8 = vsub.f32 1.0, %v1043_v7 }
  0x3f   : > { %v1045_v9 = vmul.f32 %v3661_v6, %v1044_v8 }
  0x44   : > { %3415 = vmatmul.msk.f32.gmra.mxu2 %vm864_vm0, %v838_v10  ;;  %v1046_v10 = vadd.f32 %v3661_v6, %v1045_v9  ;;  %v4259_v9 = vld [vmem:[%s4203_s21 + $0x30] sm:$0xff] }
  0x4c   : > { %3416 = vmatmul.msk.f32.gmra.mxu2 %vm864_vm0, %v839_v11  ;;  %v4181_v11 = vsel %vm1047_vm4, %v3661_v6, %v1046_v10  ;;  %vm1822_vm4 = vcmp.lt.s32.totalorder %v4140_v28, 126 }
  0x4d   : > { %5400 = vst [vmem:[#allocation14_spill] sm:$0xff] %v4181_v11 }
  0x9d   : > { %v852_v12 = vpop.permute.xlu1 %851  ;;  %v862_v16 = vpop.permute.xlu0 %861 }
  0xa5   : > { %v847_v13 = vpop.permute.xlu1 %846 }
  0xa6   : > { %v857_v19 = vpop.permute.xlu0 %856 }
  0xb7   : > { %v894_v14 = vpop.f32.mrf.mxu2 }
  0xb8   : > { %v4115_v15 = vadd.f32 %v894_v14, %v847_v13 }
  0xba   : > { %956 = vrot.lane.b32.xlu1 %v4115_v15, %s3919_s27 }
  0xbf   : > { %v897_v17 = vpop.f32.mrf.mxu2 }
  0xc0   : > { %v4118_v18 = vadd.f32 %v897_v17, %v852_v12 }
  0xc2   : > { %958 = vrot.lane.b32.xlu0 %v4118_v18, %s3919_s27  ;;  %946 = vrot.lane.b32.xlu1 %v4118_v18, %s3920_s28 }
  0xc7   : > { %v900_v20 = vpop.f32.mrf.mxu2 }
  0xc8   : > { %v4125_v22 = vadd.f32 %v900_v20, %v857_v19 }
  0xca   : > { %948 = vrot.lane.b32.xlu0 %v4125_v22, %s3920_s28  ;;  %980 = vperm.xlu1 %3657, %v912_v21  }
  0xcf   : > { %v903_v23 = vpop.f32.mrf.mxu2 }
  0xd0   : > { %v4131_v25 = vadd.f32 %v903_v23, %v862_v16 }
  0xd2   : > { %962 = vrot.lane.b32.xlu2 %v4131_v25, %s3919_s27  ;;  %985 = vperm.xlu0 %3656, %v913_v24  }
  0xda   : > { %960 = vrot.lane.b32.xlu2 %v4125_v22, %s3919_s27  ;;  %970 = vperm.xlu0 %3656, %v910_v26   ;;  %s657_s27 = scalar_lea.vmem %s5402_s24, %s3591_s22  ;;  %s3593_s22 = sshll.u32 %s4050_s1, 5 }
  0xe2   : > { %950 = vrot.lane.b32.xlu2 %v4131_v25, %s3920_s28 }
  0xea   : > { %944 = vrot.lane.b32.xlu2 %v4115_v15, %s3920_s28 }
  0xf2   : > { %975 = vperm.xlu2 %3658, %v911_v44  }
 0x12c   : > { %v963_v31 = vpop.permute.xlu2 %962  ;;  %v957_v36 = vpop.permute.xlu1 %956 }
 0x12d   : > { %v967_v32 = vmul.f32 %v3418_v30, %v963_v31  ;;  %v964_v38 = vmul.f32 %v3418_v30, %v957_v36 }
 0x12f   : > { %1005 = vmatpush.msrb.mxu2 %v967_v32  ;;  %v4209_v32 = vld [vmem:[%s4203_s21 + $0x8] sm:$0xff] }
 0x134   : > { %v961_v33 = vpop.permute.xlu2 %960  ;;  %v959_v34 = vpop.permute.xlu0 %958 }
 0x135   : > { %v966_v35 = vmul.f32 %v3418_v30, %v961_v33  ;;  %v965_v37 = vmul.f32 %v3418_v30, %v959_v34  ;;  %v947_v43 = vpop.permute.xlu1 %946  ;;  %v921_v33 = vld [vmem:[%s5341_s11 + $0x18] sm:$0xff] }
 0x136   : > { %v953_v47 = vmul.f32 %v3417_v40, %v947_v43  ;;  %v4231_v43 = vld [vmem:[%s4203_s21 + $0x28] sm:$0xff] }
 0x137   : > { %1006 = vmatpush.msrb.mxu2 %v966_v35  ;;  %v691_v35 = vadd.f32 1e-06, %v4209_v32  ;;  %v695_v44 = vadd.f32 1e-06, %v4231_v43 }
 0x139   : > { %1007 = vmatpush.msrb.mxu2 %v965_v37  ;;  %3662 = vlog2.f32 %v691_v35  ;;  %v4221_v37 = vld [vmem:[%s4203_s21 + $0x18] sm:$0xff]  ;;  %v4271_v35 = vld [vmem:[%s4203_s21 + $0x50] sm:$0xff] }
 0x13b   : > { %1008 = vmatpush.msrb.mxu2 %v964_v38  ;;  %v918_v38 = vld [vmem:[%s5341_s11] sm:$0xff] }
 0x13c   : > { %v951_v39 = vpop.permute.xlu2 %950  ;;  %v949_v41 = vpop.permute.xlu0 %948 }
 0x13d   : > { %1009 = vmatpush.msrb.mxu2 %v4131_v25  ;;  %v955_v42 = vmul.f32 %v3417_v40, %v951_v39  ;;  %v954_v45 = vmul.f32 %v3417_v40, %v949_v41  ;;  %v981_v59 = vpop.permute.xlu1 %980  ;;  %v693_v39 = vadd.f32 1e-06, %v4221_v37  ;;  %v920_v41 = vld [vmem:[%s5341_s11 + $0x10] sm:$0xff] }
 0x13f   : > { %1010 = vmatpush.msrb.mxu2 %v4125_v22  ;;  %3664 = vlog2.f32 %v693_v39 }
 0x140   : > { %3666 = vlog2.f32 %v695_v44  ;;  %v689_v44 = vld [vmem:[%s4203_s21 + $0x78] sm:$0xff] }
 0x141   : > { %1011 = vmatpush.msrb.mxu2 %v4118_v18 }
 0x143   : > { %1012 = vmatpush.msrb.mxu2 %v4115_v15 }
 0x144   : > { %v945_v46 = vpop.permute.xlu2 %944  ;;  %v986_v58 = vpop.permute.xlu0 %985 }
 0x145   : > { %1013 = vmatpush.msrb.mxu2 %v955_v42  ;;  %v952_v48 = vmul.f32 %v3417_v40, %v945_v46  ;;  %v3663_v40 = vpop.eup %3662  ;;  %v4235_v46 = vld [vmem:[%s4203_s21] sm:$0xff] }
 0x146   : > { %v709_v42 = vmul.f32 0.6931472, %v3663_v40 }
 0x147   : > { %1014 = vmatpush.msrb.mxu2 %v954_v45  ;;  %v3665_v45 = vpop.eup %3664 }
 0x149   : > { %1015 = vmatpush.msrb.mxu2 %v953_v47  ;;  %v713_v47 = vmul.f32 0.6931472, %v3665_v45 }
 0x14b   : > { %1016 = vmatpush.msrb.mxu2 %v952_v48  ;;  %v690_v48 = vadd.f32 1e-06, %v4235_v46 }
 0x14c   : > { %3419 = vmatmul.msk.f32.vlgmr.msrb.gmra.mxu2 %vm988_vm3, %v906_v49  ;;  %v976_v54 = vpop.permute.xlu2 %975  ;;  %v971_v63 = vpop.permute.xlu0 %970  ;;  %v4239_v49 = vld [vmem:[%s4203_s21 + $0x38] sm:$0xff] }
 0x14d   : > { %3668 = vlog2.f32 %v690_v48  ;;  %v705_v48 = vadd.f32 1e-06, %v689_v44 }
 0x154   : > { %3420 = vmatmul.msk.f32.gmra.mxu2 %vm988_vm3, %v907_v50  ;;  %v697_v50 = vadd.f32 1e-06, %v4239_v49 }
 0x156   : > { %3670 = vlog2.f32 %v697_v50 }
 0x15c   : > { %3421 = vmatmul.msk.f32.gmra.mxu2 %vm988_vm3, %v908_v51  ;;  %v3667_v51 = vpop.eup %3666 }
 0x164   : > { %3422 = vmatmul.msk.f32.gmra.mxu2 %vm988_vm3, %v909_v52  ;;  %v4243_v52 = vld [vmem:[%s4203_s21 + $0x10] sm:$0xff] }
 0x1cf   : > { %v1018_v53 = vpop.f32.mrf.mxu2 }
 0x1d0   : > { %v1019_v0 = vadd.f32 %v1018_v53, %v971_v63  ;;  %v919_v53 = vld [vmem:[%s5341_s11 + $0x8] sm:$0xff]  ;;  %v4254_v63 = vld [vmem:[%s4203_s21 + $0x20] sm:$0xff] }
 0x1d2   : > { %v4175_v3 = vmax.f32 %v1019_v0, 0.0 }
 0x1d7   : > { %v1021_v55 = vpop.f32.mrf.mxu2 }
 0x1d8   : > { %v1022_v56 = vadd.f32 %v1021_v55, %v976_v54  ;;  %v717_v54 = vmul.f32 0.6931472, %v3667_v51  ;;  %v692_v55 = vadd.f32 1e-06, %v4243_v52 }
 0x1da   : > { %v4169_v57 = vmax.f32 %v1022_v56, 0.0  ;;  %v4250_v56 = vld [vmem:[%s4203_s21 + $0x48] sm:$0xff]  ;;  %3672 = vlog2.f32 %v692_v55  ;;  %v671_v55 = vld [vmem:[%s657_s27 + $0x10] sm:$0xff] }
 0x1dc   : > { %1036 = vadd.xlane.f32.xlu0 %v4169_v57 }
 0x1df   : > { %v1024_v60 = vpop.f32.mrf.mxu2 }
 0x1e0   : > { %v1025_v61 = vadd.f32 %v1024_v60, %v981_v59  ;;  %v699_v59 = vadd.f32 1e-06, %v4250_v56 }
 0x1e2   : > { %v4172_v62 = vmax.f32 %v1025_v61, 0.0  ;;  %3674 = vlog2.f32 %v699_v59  ;;  %v670_v59 = vld [vmem:[%s657_s27 + $0x8] sm:$0xff] }
 0x1e4   : > { %1038 = vadd.xlane.f32.xlu2 %v4172_v62 }
 0x1e7   : > { %v1027_v1 = vpop.f32.mrf.mxu2 }
 0x1e8   : > { %v1028_v2 = vadd.f32 %v1027_v1, %v986_v58  ;;  %v3669_v58 = vpop.eup %3668  ;;  %v694_v1 = vadd.f32 1e-06, %v4254_v63 }
 0x1e9   : > { %v3671_v60 = vpop.eup %3670  ;;  %v707_v61 = vmul.f32 0.6931472, %v3669_v58 }
 0x1ea   : > { %v4177_v4 = vmax.f32 %v1028_v2, 0.0  ;;  %v721_v0 = vmul.f32 0.6931472, %v3671_v60  ;;  %v685_v2 = vld [vmem:[%s4203_s21 + $0x58] sm:$0xff]  ;;  %v3673_v5 = vpop.eup %3672  ;;  %3676 = vlog2.f32 %v694_v1  ;;  %v669_v60 = vld [vmem:[%s657_s27] sm:$0xff] }
 0x1eb   : > { %v701_v6 = vadd.f32 1e-06, %v685_v2  ;;  %v3675_v7 = vpop.eup %3674  ;;  %v711_v8 = vmul.f32 0.6931472, %v3673_v5 }
 0x1ec   : > { %1040 = vadd.xlane.f32.xlu1 %v4177_v4  ;;  %1034 = vadd.xlane.f32.xlu2 %v4175_v3  ;;  %v725_v10 = vmul.f32 0.6931472, %v3675_v7  ;;  %v745_v7 = vld [vmem:[%s5342_s12 + $0x28] sm:$0xff] }
 0x1ed   : > { %3678 = vlog2.f32 %v701_v6 }
 0x24f   : > { %v1037_v12 = vpop.xlane.xlu0 %1036 }
 0x250   : > { %v1050_v13 = vmul.f32 %v4181_v11, %v1037_v12  ;;  %v696_v12 = vadd.f32 1e-06, %v4259_v9 }
 0x252   : > { %v4185_v14 = vsub.f32 %v4169_v57, %v1050_v13  ;;  %v4263_v13 = vld [vmem:[%s4203_s21 + $0x70] sm:$0xff]  ;;  %3680 = vlog2.f32 %v696_v12 }
 0x254   : > { %v1058_v16 = vmul.f32 %v4185_v14, %v4185_v14 }
 0x256   : > { %1063 = vadd.xlane.f32.xlu0 %v1058_v16  ;;  %v3677_v16 = vpop.eup %3676 }
 0x257   : > { %v1039_v17 = vpop.xlane.xlu2 %1038 }
 0x258   : > { %v1051_v19 = vmul.f32 %v4181_v11, %v1039_v17  ;;  %v704_v17 = vadd.f32 1e-06, %v4263_v13 }
 0x25a   : > { %v4191_v20 = vsub.f32 %v4172_v62, %v1051_v19  ;;  %v3679_v19 = vpop.eup %3678  ;;  %3682 = vlog2.f32 %v704_v17 }
 0x25c   : > { %v1059_v21 = vmul.f32 %v4191_v20, %v4191_v20 }
 0x25e   : > { %1065 = vadd.xlane.f32.xlu2 %v1059_v21  ;;  %v715_v21 = vmul.f32 0.6931472, %v3677_v16 }
 0x25f   : > { %v1041_v23 = vpop.xlane.xlu1 %1040  ;;  %v1035_v26 = vpop.xlane.xlu2 %1034 }
 0x260   : > { %v1052_v24 = vmul.f32 %v4181_v11, %v1041_v23  ;;  %v1049_v30 = vmul.f32 %v4181_v11, %v1035_v26  ;;  %v4267_v23 = vld [vmem:[%s4203_s21 + $0x40] sm:$0xff] }
 0x261   : > { %v698_v26 = vadd.f32 1e-06, %v4267_v23 }
 0x262   : > { %v4198_v27 = vsub.f32 %v4177_v4, %v1052_v24  ;;  %v4215_v34 = vsub.f32 %v4175_v3, %v1049_v30  ;;  %v729_v24 = vmul.f32 0.6931472, %v3679_v19  ;;  %v3681_v30 = vpop.eup %3680 }
 0x263   : > { %3684 = vlog2.f32 %v698_v26 }
 0x264   : > { %v1060_v31 = vmul.f32 %v4198_v27, %v4198_v27  ;;  %v1057_v36 = vmul.f32 %v4215_v34, %v4215_v34 }
 0x266   : > { %1067 = vadd.xlane.f32.xlu1 %v1060_v31  ;;  %v3683_v31 = vpop.eup %3682 }
 0x269   : > { %v3685_v39 = vpop.eup %3684 }
 0x26a   : > { %1138 = vperm.xlu0 %3656, %v921_v33   ;;  %v719_v33 = vmul.f32 0.6931472, %v3681_v30  ;;  %v723_v40 = vmul.f32 0.6931472, %v3685_v39 }
 0x26e   : > { %1061 = vadd.xlane.f32.xlu1 %v1057_v36  ;;  %v735_v36 = vmul.f32 0.6931472, %v3683_v31 }
 0x272   : > { %1123 = vperm.xlu0 %3656, %v918_v38   ;;  %v700_v38 = vadd.f32 1e-06, %v4271_v35 }
 0x274   : > { %3686 = vlog2.f32 %v700_v38 }
 0x276   : > { %1133 = vperm.xlu2 %3658, %v920_v41   ;;  %v687_v41 = vld [vmem:[%s4203_s21 + $0x68] sm:$0xff] }
 0x27a   : > { %1191 = vperm.xlu0 %3656, %v709_v42   ;;  %v703_v42 = vadd.f32 1e-06, %v687_v41  ;;  %v3687_v45 = vpop.eup %3686 }
 0x27c   : > { %3688 = vlog2.f32 %v703_v42 }
 0x27d   : > { %3690 = vlog2.f32 %v705_v48 }
 0x282   : > { %1201 = vperm.xlu0 %3656, %v713_v47   ;;  %v727_v47 = vmul.f32 0.6931472, %v3687_v45  ;;  %v3689_v50 = vpop.eup %3688 }
 0x283   : > { %v733_v51 = vmul.f32 0.6931472, %v3689_v50 }
 0x287   : > { %1128 = vperm.xlu1 %3657, %v919_v53   ;;  %v3691_v53 = vpop.eup %3690 }
 0x288   : > { %v737_v58 = vmul.f32 0.6931472, %v3691_v53 }
 0x28a   : > { %1211 = vperm.xlu0 %3656, %v717_v54   ;;  %v672_v54 = vld [vmem:[%s657_s27 + $0x18] sm:$0xff] }
 0x28b   : > { %813 = vmatpush.msra.mxu0 %v672_v54  ;;  %3594 = vmatpush.msra.mxu3 %v672_v54 }
 0x28d   : > { %814 = vmatpush.msra.mxu0 %v671_v55  ;;  %3595 = vmatpush.msra.mxu3 %v671_v55 }
 0x28f   : > { %1186 = vperm.xlu1 %3657, %v707_v61   ;;  %815 = vmatpush.msra.mxu0 %v670_v59  ;;  %v740_v61 = vld [vmem:[%s5342_s12] sm:$0xff] }
 0x290   : > { %3596 = vmatpush.msra.mxu3 %v670_v59 }
 0x291   : > { %816 = vmatpush.msra.mxu0 %v669_v60 }
 0x292   : > { %1221 = vperm.xlu0 %3656, %v721_v0   ;;  %3407 = vmatmul.msk.f32.vlgmr.msra.gmra.mxu0 %vm782_vm5, %v740_v61 }
 0x293   : > { %3597 = vmatpush.msra.mxu3 %v669_v60 }
 0x294   : > { %3412 = vmatmul.msk.f32.vlgmr.msra.gmra.mxu3 %vm782_vm5, %v745_v7  ;;  %v926_v7 = vld [vmem:[%s5345_s15] sm:$0xff] }
 0x297   : > { %1196 = vperm.xlu1 %3657, %v711_v8  }
 0x29a   : > { %1231 = vperm.xlu0 %3656, %v725_v10   ;;  %v4294_v10 = vld [vmem:[%s4203_s21 + $0x60] sm:$0xff]  ;;  %s3923_s21 = smov 126  }
 0x29f   : > { %1206 = vperm.xlu1 %3657, %v715_v21  }
 0x2a2   : > { %1241 = vperm.xlu0 %3656, %v729_v24  }
 0x2a7   : > { %1216 = vperm.xlu1 %3657, %v719_v33   ;;  %v741_v33 = vld [vmem:[%s5342_s12 + $0x8] sm:$0xff] }
 0x2a8   : > { %3408 = vmatmul.msk.f32.gmra.mxu0 %vm782_vm5, %v741_v33 }
 0x2aa   : > { %1256 = vperm.xlu0 %3656, %v735_v36  }
 0x2af   : > { %1226 = vperm.xlu1 %3657, %v723_v40  }
 0x2b2   : > { %1594 = vperm.xlu0 %3656, %v689_v44  }
 0x2b7   : > { %1236 = vperm.xlu1 %3657, %v727_v47  }
 0x2ba   : > { %1584 = vperm.xlu0 %3656, %v687_v41  }
 0x2bf   : > { %1251 = vperm.xlu1 %3657, %v733_v51  }
 0x2c2   : > { %1574 = vperm.xlu0 %3656, %v685_v2  }
 0x2c7   : > { %1261 = vperm.xlu1 %3657, %v737_v58  }
 0x2c9   : > { %v1064_v0 = vpop.xlane.xlu0 %1063 }
 0x2ca   : > { %1564 = vperm.xlu0 %3656, %v4250_v56   ;;  %v1070_v1 = vmul.f32 %v1064_v0, %v4181_v11 }
 0x2cc   : > { %v1074_v2 = vadd.f32 1e-05, %v1070_v1 }
 0x2ce   : > { %3692 = vrsqrt.f32 %v1074_v2  ;;  %vm1093_vm13 = vweird.f32 %v1074_v2 }
 0x2cf   : > { %1589 = vperm.xlu1 %3657, %v4263_v13  }
 0x2d1   : > { %v1066_v5 = vpop.xlane.xlu2 %1065 }
 0x2d2   : > { %v1071_v6 = vmul.f32 %v1066_v5, %v4181_v11  ;;  %1554 = vperm.xlu0 %3656, %v4239_v49   ;;  %v917_v5 = vld [vmem:[%s5340_s10 + $0x18] sm:$0xff] }
 0x2d4   : > { %v1075_v8 = vadd.f32 1e-05, %v1071_v6  ;;  %v3693_v12 = vpop.eup %3692  ;;  %v928_v6 = vld [vmem:[%s5345_s15 + $0x10] sm:$0xff] }
 0x2d5   : > { %v1088_v17 = vmul.f32 %v3693_v12, %v1074_v2  ;;  %vm1094_vm9 = vweird.f32 %v3693_v12  ;;  %v747_v2 = vld [vmem:[%s5343_s13 + $0x8] sm:$0xff] }
 0x2d6   : > { %3694 = vrsqrt.f32 %v1075_v8  ;;  %vm1103_vm8 = vweird.f32 %v1075_v8  ;;  %vm1095_vm14 = vmor %vm1093_vm13, %vm1094_vm9 }
 0x2d7   : > { %1579 = vperm.xlu1 %3657, %v4294_v10   ;;  %v1089_v24 = vmul.f32 %v3693_v12, %v1088_v17 }
 0x2d9   : > { %v1068_v56 = vpop.xlane.xlu1 %1067  ;;  %v1090_v38 = vmul.f32 0.5, %v1089_v24 }
 0x2da   : > { %v1072_v13 = vmul.f32 %v1068_v56, %v4181_v11  ;;  %1544 = vperm.xlu0 %3656, %v4231_v43   ;;  %v934_v56 = vld [vmem:[%s5347_s17] sm:$0xff] }
 0x2db   : > { %v1091_v42 = vsub.f32 1.5, %v1090_v38 }
 0x2dc   : > { %v3695_v49 = vpop.eup %3694  ;;  %v1076_v16 = vadd.f32 1e-05, %v1072_v13  ;;  %v1139_v13 = vpop.permute.xlu0 %1138 }
 0x2dd   : > { %v1098_v19 = vmul.f32 %v3695_v49, %v1075_v8  ;;  %vm1104_vm6 = vweird.f32 %v3695_v49  ;;  %v1092_v50 = vmul.f32 %v3693_v12, %v1091_v42  ;;  %v936_v8 = vld [vmem:[%s5347_s17 + $0x10] sm:$0xff] }
 0x2de   : > { %3696 = vrsqrt.f32 %v1076_v16  ;;  %vm1113_vm10 = vweird.f32 %v1076_v16  ;;  %vm1105_vm11 = vmor %vm1103_vm8, %vm1104_vm6  ;;  %vm1819_vm6 = vcmp.ge.s32.totalorder %v4140_v28, 2 }
 0x2df   : > { %v1099_v21 = vmul.f32 %v3695_v49, %v1098_v19  ;;  %1569 = vperm.xlu1 %3657, %v4271_v35   ;;  %v1096_v58 = vsel %vm1095_vm14, %v3693_v12, %v1092_v50  ;;  %v702_v50 = vadd.f32 1e-06, %v4294_v10 }
 0x2e1   : > { %v1062_v26 = vpop.xlane.xlu1 %1061  ;;  %v1100_v31 = vmul.f32 0.5, %v1099_v21 }
 0x2e2   : > { %v1069_v30 = vmul.f32 %v1062_v26, %v4181_v11  ;;  %1534 = vperm.xlu0 %3656, %v4221_v37  }
 0x2e3   : > { %v1101_v40 = vsub.f32 1.5, %v1100_v31 }
 0x2e4   : > { %v3697_v43 = vpop.eup %3696  ;;  %v1073_v36 = vadd.f32 1e-05, %v1069_v30  ;;  %v1124_v17 = vpop.permute.xlu0 %1123  ;;  %v743_v30 = vld [vmem:[%s5342_s12 + $0x18] sm:$0xff] }
 0x2e5   : > { %v1108_v39 = vmul.f32 %v3697_v43, %v1076_v16  ;;  %vm1114_vm7 = vweird.f32 %v3697_v43  ;;  %v1102_v44 = vmul.f32 %v3695_v49, %v1101_v40  ;;  %v742_v16 = vld [vmem:[%s5342_s12 + $0x10] sm:$0xff] }
 0x2e6   : > { %3698 = vrsqrt.f32 %v1073_v36  ;;  %vm1115_vm12 = vmor %vm1113_vm10, %vm1114_vm7  ;;  %vm1083_vm0 = vweird.f32 %v1073_v36  ;;  %3409 = vmatmul.msk.f32.gmra.mxu0 %vm782_vm5, %v742_v16 }
 0x2e7   : > { %v1109_v35 = vmul.f32 %v3697_v43, %v1108_v39  ;;  %1559 = vperm.xlu1 %3657, %v4267_v23   ;;  %v1106_v53 = vsel %vm1105_vm11, %v3695_v49, %v1102_v44  ;;  %v744_v39 = vld [vmem:[%s5342_s12 + $0x20] sm:$0xff]  ;;  %3700 = vlog2.f32 %v702_v50 }
 0x2e8   : > { %v1119_v59 = vmul.f32 %v1106_v53, %v4191_v20  ;;  %v914_v20 = vld [vmem:[%s5340_s10] sm:$0xff] }
 0x2e9   : > { %v1110_v41 = vmul.f32 0.5, %v1109_v35 }
 0x2ea   : > { %1524 = vperm.xlu0 %3656, %v4209_v32   ;;  %v746_v32 = vld [vmem:[%s5343_s13] sm:$0xff] }
 0x2eb   : > { %v1111_v37 = vsub.f32 1.5, %v1110_v41 }
 0x2ec   : > { %v3699_v45 = vpop.eup %3698 }
 0x2ed   : > { %v1078_v47 = vmul.f32 %v3699_v45, %v1073_v36  ;;  %v1112_v48 = vmul.f32 %v3697_v43, %v1111_v37  ;;  %vm1084_vm15 = vweird.f32 %v3699_v45 }
 0x2ee   : > { %vm1085_vm1 = vmor %vm1083_vm0, %vm1084_vm15  ;;  %3410 = vmatmul.msk.f32.gmra.mxu0 %vm782_vm5, %v743_v30 }
 0x2ef   : > { %v1079_v51 = vmul.f32 %v3699_v45, %v1078_v47  ;;  %1549 = vperm.xlu1 %3657, %v4259_v9   ;;  %v1116_v23 = vsel %vm1115_vm12, %v3697_v43, %v1112_v48  ;;  %v1118_v9 = vmul.f32 %v1096_v58, %v4185_v14  ;;  %v927_v14 = vld [vmem:[%s5345_s15 + $0x8] sm:$0xff]  ;;  %v1134_v43 = vpop.permute.xlu2 %1133 }
 0x2f0   : > { %v1120_v54 = vmul.f32 %v1116_v23, %v4198_v27  ;;  %v929_v27 = vld [vmem:[%s5345_s15 + $0x18] sm:$0xff]  ;;  %v3701_v23 = vpop.eup %3700 }
 0x2f1   : > { %v1080_v55 = vmul.f32 0.5, %v1079_v51  ;;  %v731_v53 = vmul.f32 0.6931472, %v3701_v23 }
 0x2f2   : > { %754 = vperm.xlu0 %3656, %v746_v32   ;;  %1165 = vmatpush.msrb.mxu3 %v1120_v54 }
 0x2f3   : > { %v1081_v60 = vsub.f32 1.5, %v1080_v55 }
 0x2f4   : > { %1166 = vmatpush.msrb.mxu3 %v1119_v59 }
 0x2f5   : > { %v1082_v61 = vmul.f32 %v3699_v45, %v1081_v60 }
 0x2f6   : > { %1167 = vmatpush.msrb.mxu3 %v1118_v9  ;;  %3411 = vmatmul.msk.f32.gmra.mxu0 %vm782_vm5, %v744_v39 }
 0x2f7   : > { %1539 = vperm.xlu1 %3657, %v4254_v63   ;;  %v1086_v0 = vsel %vm1085_vm1, %v3699_v45, %v1082_v61  ;;  %v915_v63 = vld [vmem:[%s5340_s10 + $0x8] sm:$0xff] }
 0x2f8   : > { %v1117_v1 = vmul.f32 %v1086_v0, %v4215_v34  ;;  %v937_v34 = vld [vmem:[%s5347_s17 + $0x18] sm:$0xff] }
 0x2f9   : > { %v1129_v19 = vpop.permute.xlu1 %1128 }
 0x2fa   : > { %1655 = vperm.xlu0 %3656, %v929_v27   ;;  %1168 = vmatpush.msrb.mxu3 %v1117_v1 }
 0x2fb   : > { %3423 = vmatmul.msk.f32.vlgmr.msrb.gmra.mxu3 %vm782_vm5, %v914_v20 }
 0x2ff   : > { %1529 = vperm.xlu1 %3657, %v4243_v52   ;;  %v916_v52 = vld [vmem:[%s5340_s10 + $0x10] sm:$0xff] }
 0x302   : > { %1645 = vperm.xlu0 %3656, %v927_v14   ;;  %v4395_v14 = vpop.permute.xlu1 %1186 }
 0x303   : > { %3424 = vmatmul.msk.f32.gmra.mxu3 %vm782_vm5, %v915_v63 }
 0x307   : > { %1519 = vperm.xlu1 %3657, %v4235_v46   ;;  %v935_v46 = vld [vmem:[%s5347_s17 + $0x8] sm:$0xff] }
 0x30a   : > { %1727 = vperm.xlu0 %3656, %v937_v34  }
 0x30b   : > { %3425 = vmatmul.msk.f32.gmra.mxu3 %vm782_vm5, %v916_v52  ;;  %v4399_v52 = vpop.permute.xlu0 %1191 }
 0x30f   : > { %759 = vperm.xlu1 %3657, %v747_v2   ;;  %v4393_v1 = vpop.f32.mrf.mxu0  ;;  %v4401_v2 = vpop.permute.xlu1 %1196 }
 0x310   : > { %5404 = vst [vmem:[#allocation16_spill] sm:$0xff] %v4401_v2 }
 0x312   : > { %1717 = vperm.xlu0 %3656, %v935_v46  }
 0x313   : > { %3426 = vmatmul.msk.f32.gmra.mxu3 %vm782_vm5, %v917_v5 }
 0x317   : > { %1650 = vperm.xlu1 %3657, %v928_v6   ;;  %v4362_v12 = vpop.f32.mrf.mxu3  ;;  %v4405_v6 = vpop.permute.xlu0 %1201 }
 0x318   : > { %5403 = vst [vmem:[#allocation15_spill] sm:$0xff] %v4362_v12 }
 0x319   : > { %5406 = vst [vmem:[#allocation18_spill] sm:$0xff] %v4405_v6 }
 0x31f   : > { %1640 = vperm.xlu1 %3657, %v926_v7   ;;  %v4407_v7 = vpop.permute.xlu1 %1206 }
 0x325   : > { %v4397_v63 = vpop.f32.mrf.mxu0 }
 0x327   : > { %1722 = vperm.xlu1 %3657, %v936_v8  }
 0x32f   : > { %1712 = vperm.xlu1 %3657, %v934_v56  }
 0x363   : > { %v4403_v46 = vpop.f32.mrf.mxu0 }
 0x364   : > { %5405 = vst [vmem:[#allocation17_spill] sm:$0xff] %v4403_v46 }
 0x36b   : > { %v4409_v56 = vpop.f32.mrf.mxu0 }
 0x36c   : > { %5407 = vst [vmem:[#allocation19_spill] sm:$0xff] %v4409_v56 }
 0x37e   : > { %v1170_v49 = vpop.f32.mrf.mxu3 }
 0x37f   : > { %v1171_v24 = vadd.f32 %v1170_v49, %v1124_v17  ;;  %v4413_v49 = vpop.permute.xlu1 %1216  ;;  %v4415_v17 = vpop.f32.mrf.mxu0 }
 0x380   : > { %5408 = vst [vmem:[#allocation20_spill] sm:$0xff] %v4413_v49 }
 0x381   : > { %v1182_v33 = vmul.f32 0.25, %v1171_v24  ;;  %5409 = vst [vmem:[#allocation21_spill] sm:$0xff] %v4415_v17 }
 0x386   : > { %v1173_v21 = vpop.f32.mrf.mxu3 }
 0x387   : > { %v1174_v26 = vadd.f32 %v1173_v21, %v1129_v19  ;;  %v4419_v24 = vpop.permute.xlu1 %1226 }
 0x388   : > { %5411 = vst [vmem:[#allocation23_spill] sm:$0xff] %v4419_v24 }
 0x389   : > { %v1183_v31 = vmul.f32 0.25, %v1174_v26 }
 0x38b   : > { %1359 = vmatpush.msrb.mxu0 %v1183_v31  ;;  %3598 = vmatpush.msra.mxu1 %v1183_v31 }
 0x38d   : > { %1360 = vmatpush.msrb.mxu0 %v1182_v33  ;;  %3599 = vmatpush.msra.mxu1 %v1182_v33 }
 0x38e   : > { %v1176_v36 = vpop.f32.mrf.mxu3 }
 0x38f   : > { %v1177_v38 = vadd.f32 %v1176_v36, %v1134_v43  ;;  %v4423_v33 = vpop.permute.xlu1 %1236 }
 0x390   : > { %5413 = vst [vmem:[#allocation25_spill] sm:$0xff] %v4423_v33 }
 0x391   : > { %1264 = vxpose.xlu2.b32.start [1/2] (short) %v1177_v38, 128 }
 0x396   : > { %v1179_v40 = vpop.f32.mrf.mxu3 }
 0x397   : > { %v1180_v35 = vadd.f32 %v1179_v40, %v1139_v13  ;;  %v4411_v13 = vpop.permute.xlu0 %1211  ;;  %v4427_v39 = vpop.permute.xlu1 %1251 }
 0x398   : > { %5415 = vst [vmem:[#allocation27_spill] sm:$0xff] %v4427_v39 }
 0x399   : > { %1265 = vxpose.xlu2.b32.end [2/2] (short) %v1180_v35, 128 }
 0x39f   : > { %v4417_v19 = vpop.permute.xlu0 %1221 }
 0x3a0   : > { %5410 = vst [vmem:[#allocation22_spill] sm:$0xff] %v4417_v19 }
 0x3a7   : > { %v4421_v31 = vpop.permute.xlu0 %1231 }
 0x3a8   : > { %5412 = vst [vmem:[#allocation24_spill] sm:$0xff] %v4421_v31 }
 0x3af   : > { %v4425_v38 = vpop.permute.xlu0 %1241 }
 0x3b0   : > { %5414 = vst [vmem:[#allocation26_spill] sm:$0xff] %v4425_v38 }
 0x42a   : > { %v1280_v41 = vpop.trf.xlu2 }
 0x42b   : > { %3427 = vmatmul.msk.f32.vlgmr.msrb.gmra.mxu0 %vm1296_vm2, %v1280_v41 }
 0x432   : > { %v1281_v42 = vpop.trf.xlu2 }
 0x433   : > { %3428 = vmatmul.msk.f32.gmra.mxu0 %vm1296_vm2, %v1281_v42 }
 0x43a   : > { %v1282_v37 = vpop.trf.xlu2 }
 0x43b   : > { %3429 = vmatmul.msk.f32.gmra.mxu0 %vm1296_vm2, %v1282_v37 }
 0x442   : > { %v1283_v44 = vpop.trf.xlu2 }
 0x443   : > { %3430 = vmatmul.msk.f32.vlgmr.msra.gmra.mxu1 %vm1296_vm2, %v1283_v44 }
 0x44a   : > { %v1284_v45 = vpop.trf.xlu2 }
 0x44b   : > { %3431 = vmatmul.msk.f32.gmra.mxu1 %vm1296_vm2, %v1284_v45 }
 0x452   : > { %v1285_v47 = vpop.trf.xlu2 }
 0x453   : > { %3432 = vmatmul.msk.f32.gmra.mxu1 %vm1296_vm2, %v1285_v47 }
 0x45a   : > { %v1286_v48 = vpop.trf.xlu2 }
 0x45b   : > { %3433 = vmatmul.msk.f32.gmra.mxu1 %vm1296_vm2, %v1286_v48 }
 0x462   : > { %v1287_v51 = vpop.trf.xlu2 }
 0x463   : > { %3434 = vmatmul.msk.f32.gmra.mxu1 %vm1296_vm2, %v1287_v51 }
 0x46a   : > { %v1288_v32 = vpop.trf.xlu2 }
 0x46b   : > { %3435 = vmatmul.msk.f32.gmra.mxu1 %vm1296_vm2, %v1288_v32 }
 0x472   : > { %1246 = vperm.xlu2 %3658, %v731_v53   ;;  %v1289_v54 = vpop.trf.xlu2 }
 0x473   : > { %3436 = vmatmul.msk.f32.gmra.mxu1 %vm1296_vm2, %v1289_v54 }
 0x47a   : > { %v1290_v55 = vpop.trf.xlu2 }
 0x47b   : > { %3437 = vmatmul.msk.f32.gmra.mxu1 %vm1296_vm2, %v1290_v55 }
 0x482   : > { %v1291_v58 = vpop.trf.xlu2 }
 0x483   : > { %3438 = vmatmul.msk.f32.gmra.mxu1 %vm1296_vm2, %v1291_v58  ;;  %v4454_v58 = vpop.permute.xlu0 %1256 }
 0x484   : > { %5416 = vst [vmem:[#allocation28_spill] sm:$0xff] %v4454_v58 }
 0x48a   : > { %v1292_v10 = vpop.trf.xlu2 }
 0x48b   : > { %3439 = vmatmul.msk.f32.gmra.mxu1 %vm1296_vm2, %v1292_v10 }
 0x492   : > { %v1293_v59 = vpop.trf.xlu2 }
 0x493   : > { %3440 = vmatmul.msk.f32.gmra.mxu1 %vm1296_vm2, %v1293_v59 }
 0x49a   : > { %v1294_v60 = vpop.trf.xlu2 }
 0x49b   : > { %3441 = vmatmul.msk.f32.gmra.mxu1 %vm1296_vm2, %v1294_v60 }
 0x4a2   : > { %v1295_v9 = vpop.trf.xlu2 }
 0x4a3   : > { %3442 = vmatmul.msk.f32.gmra.mxu1 %vm1296_vm2, %v1295_v9 }
 0x4a8   : > { %v1362_v26 = vpop.f32.mrf.mxu0 }
 0x4a9   : > { %v1363_v48 = vadd.f32 %v1362_v26, %v4395_v14 }
 0x4b0   : > { %v1365_v43 = vpop.f32.mrf.mxu0 }
 0x4b1   : > { %v1366_v44 = vadd.f32 %v1365_v43, %v4399_v52 }
 0x4b8   : > { %v1368_v35 = vpop.f32.mrf.mxu0 }
 0x4b9   : > { %v1369_v50 = vadd.f32 %v1368_v35, %v4401_v2 }
 0x4c0   : > { %v1371_v61 = vpop.f32.mrf.mxu1 }
 0x4c1   : > { %v1372_v51 = vadd.f32 %v1371_v61, %v4405_v6 }
 0x4c8   : > { %v1374_v27 = vpop.f32.mrf.mxu1 }
 0x4c9   : > { %v1375_v42 = vadd.f32 %v1374_v27, %v4407_v7 }
 0x4cb   : > { %v1410_v10 = vmax.f32 %v1363_v48, %v1375_v42 }
 0x4cc   : > { %v4456_v59 = vpop.permute.xlu2 %1246 }
 0x4cd   : > { %5417 = vst [vmem:[#allocation29_spill] sm:$0xff] %v4456_v59 }
 0x4d0   : > { %v1377_v0 = vpop.f32.mrf.mxu1 }
 0x4d1   : > { %v1378_v41 = vadd.f32 %v1377_v0, %v4411_v13 }
 0x4d3   : > { %v1411_v23 = vmax.f32 %v1366_v44, %v1378_v41 }
 0x4d8   : > { %v1380_v20 = vpop.f32.mrf.mxu1 }
 0x4d9   : > { %v1381_v37 = vadd.f32 %v1380_v20, %v4413_v49  ;;  %v4466_v20 = vpop.permute.xlu1 %1261 }
 0x4da   : > { %5418 = vst [vmem:[#allocation30_spill] sm:$0xff] %v4466_v20 }
 0x4db   : > { %v1412_v60 = vmax.f32 %v1369_v50, %v1381_v37 }
 0x4e0   : > { %v1383_v34 = vpop.f32.mrf.mxu1 }
 0x4e1   : > { %v4434_v45 = vadd.f32 %v1383_v34, %v4417_v19 }
 0x4e3   : > { %v1413_v9 = vmax.f32 %v1372_v51, %v4434_v45 }
 0x4e8   : > { %v1386_v5 = vpop.f32.mrf.mxu1 }
 0x4e9   : > { %v4443_v32 = vadd.f32 %v1386_v5, %v4419_v24 }
 0x4eb   : > { %v1414_v34 = vmax.f32 %v1410_v10, %v4443_v32 }
 0x4f0   : > { %v1389_v8 = vpop.f32.mrf.mxu1 }
 0x4f1   : > { %v4437_v47 = vadd.f32 %v1389_v8, %v4421_v31 }
 0x4f3   : > { %v1415_v61 = vmax.f32 %v1411_v23, %v4437_v47 }
 0x4f8   : > { %v1392_v16 = vpop.f32.mrf.mxu1 }
 0x4f9   : > { %v4446_v53 = vadd.f32 %v1392_v16, %v4423_v33 }
 0x4fb   : > { %v1416_v8 = vmax.f32 %v1412_v60, %v4446_v53 }
 0x500   : > { %v1395_v21 = vpop.f32.mrf.mxu1 }
 0x501   : > { %v4449_v54 = vadd.f32 %v1395_v21, %v4425_v38 }
 0x503   : > { %v1417_v16 = vmax.f32 %v1413_v9, %v4449_v54 }
 0x508   : > { %v1398_v30 = vpop.f32.mrf.mxu1 }
 0x509   : > { %v4461_v27 = vadd.f32 %v1398_v30, %v4456_v59 }
 0x50b   : > { %v1418_v30 = vmax.f32 %v1414_v34, %v4461_v27 }
 0x510   : > { %v1401_v36 = vpop.f32.mrf.mxu1 }
 0x511   : > { %v4452_v55 = vadd.f32 %v1401_v36, %v4427_v39 }
 0x513   : > { %v1419_v21 = vmax.f32 %v1415_v61, %v4452_v55 }
 0x518   : > { %v1404_v40 = vpop.f32.mrf.mxu1 }
 0x519   : > { %v4464_v0 = vadd.f32 %v1404_v40, %v4454_v58  ;;  %v1422_v40 = vmax.f32 %v1418_v30, %v1419_v21 }
 0x51b   : > { %v1420_v43 = vmax.f32 %v1416_v8, %v4464_v0 }
 0x520   : > { %v1407_v5 = vpop.f32.mrf.mxu1 }
 0x521   : > { %v4473_v26 = vadd.f32 %v1407_v5, %v4466_v20 }
 0x523   : > { %v1421_v36 = vmax.f32 %v1417_v16, %v4473_v26 }
 0x525   : > { %v1423_v35 = vmax.f32 %v1420_v43, %v1421_v36 }
 0x527   : > { %v1424_v23 = vmax.f32 %v1422_v40, %v1423_v35 }
 0x529   : > { %v1425_v10 = vrot.slane %v1424_v23, 4 }
 0x52b   : > { %v1426_v29 = vmax.f32 %v1424_v23, %v1425_v10 }
 0x52d   : > { %v1427_v12 = vrot.slane %v1426_v29, 2 }
 0x52f   : > { %v1428_v60 = vmax.f32 %v1426_v29, %v1427_v12 }
 0x531   : > { %v1429_v17 = vrot.slane %v1428_v60, 1 }
 0x533   : > { %v4478_v9 = vmax.f32 %v1428_v60, %v1429_v17 }
 0x535   : > { %v1431_v61 = vsub.f32 %v1363_v48, %v4478_v9  ;;  %v1432_v5 = vsub.f32 %v1366_v44, %v4478_v9  ;;  %v1433_v34 = vsub.f32 %v1369_v50, %v4478_v9  ;;  %v1434_v8 = vsub.f32 %v1372_v51, %v4478_v9 }
 0x536   : > { %v1435_v21 = vsub.f32 %v1375_v42, %v4478_v9  ;;  %v1436_v43 = vsub.f32 %v1378_v41, %v4478_v9  ;;  %v1437_v12 = vsub.f32 %v1381_v37, %v4478_v9  ;;  %v1438_v44 = vsub.f32 %v4434_v45, %v4478_v9  ;;  %v4493_v42 = vpop.permute.xlu0 %1594 }
 0x537   : > { %v1447_v56 = vmul.f32 1.442695, %v1431_v61  ;;  %v1449_v16 = vmul.f32 1.442695, %v1432_v5  ;;  %v1451_v30 = vmul.f32 1.442695, %v1433_v34  ;;  %v1440_v45 = vsub.f32 %v4437_v47, %v4478_v9 }
 0x538   : > { %v1453_v29 = vmul.f32 1.442695, %v1434_v8  ;;  %v1455_v17 = vmul.f32 1.442695, %v1435_v21  ;;  %v1457_v48 = vmul.f32 1.442695, %v1436_v43  ;;  %v1441_v10 = vsub.f32 %v4446_v53, %v4478_v9 }
 0x539   : > { %3702 = vpow2.f32 %v1447_v56  ;;  %v1439_v56 = vsub.f32 %v4443_v32, %v4478_v9  ;;  %v1459_v41 = vmul.f32 1.442695, %v1437_v12  ;;  %v1461_v40 = vmul.f32 1.442695, %v1438_v44 }
 0x53a   : > { %3704 = vpow2.f32 %v1449_v16  ;;  %v1442_v5 = vsub.f32 %v4449_v54, %v4478_v9  ;;  %v1465_v47 = vmul.f32 1.442695, %v1440_v45  ;;  %v4516_v16 = vpop.permute.xlu1 %1589  ;;  %v1443_v53 = vsub.f32 %v4461_v27, %v4478_v9 }
 0x53b   : > { %3706 = vpow2.f32 %v1451_v30  ;;  %v1463_v32 = vmul.f32 1.442695, %v1439_v56  ;;  %v1467_v21 = vmul.f32 1.442695, %v1441_v10  ;;  %v1444_v54 = vsub.f32 %v4452_v55, %v4478_v9 }
 0x53c   : > { %3708 = vpow2.f32 %v1453_v29  ;;  %v1469_v12 = vmul.f32 1.442695, %v1442_v5  ;;  %v1445_v27 = vsub.f32 %v4464_v0, %v4478_v9 }
 0x53d   : > { %3710 = vpow2.f32 %v1455_v17  ;;  %v1473_v45 = vmul.f32 1.442695, %v1444_v54 }
 0x53e   : > { %3712 = vpow2.f32 %v1457_v48  ;;  %v4523_v29 = vpop.permute.xlu0 %1584  ;;  %v1471_v48 = vmul.f32 1.442695, %v1443_v53 }
 0x53f   : > { %v4489_v50 = vpop.eup %3702  ;;  %3714 = vpow2.f32 %v1459_v41 }
 0x540   : > { %v4491_v51 = vpop.eup %3704  ;;  %3716 = vpow2.f32 %v1461_v40 }
 0x541   : > { %v1479_v37 = vadd.f32 %v4491_v51, %v4489_v50  ;;  %v4499_v36 = vpop.eup %3706  ;;  %3718 = vpow2.f32 %v1463_v32 }
 0x542   : > { %v4504_v23 = vpop.eup %3708  ;;  %3720 = vpow2.f32 %v1465_v47 }
 0x543   : > { %v1480_v35 = vadd.f32 %v4499_v36, %v1479_v37  ;;  %v4509_v61 = vpop.eup %3710  ;;  %3722 = vpow2.f32 %v1467_v21  ;;  %v1446_v37 = vsub.f32 %v4473_v26, %v4478_v9 }
 0x544   : > { %v4514_v8 = vpop.eup %3712  ;;  %3724 = vpow2.f32 %v1469_v12 }
 0x545   : > { %v1481_v60 = vadd.f32 %v4504_v23, %v1480_v35  ;;  %v4521_v43 = vpop.eup %3714  ;;  %3726 = vpow2.f32 %v1471_v48  ;;  %v1475_v35 = vmul.f32 1.442695, %v1445_v27  ;;  %v1477_v0 = vmul.f32 1.442695, %v1446_v37 }
 0x546   : > { %v4528_v44 = vpop.eup %3716  ;;  %3728 = vpow2.f32 %v1473_v45 }
 0x547   : > { %v1482_v34 = vadd.f32 %v4509_v61, %v1481_v60  ;;  %v3719_v41 = vpop.eup %3718  ;;  %v4535_v60 = vpop.permute.xlu1 %1579  ;;  %3730 = vpow2.f32 %v1475_v35 }
 0x548   : > { %v3721_v40 = vpop.eup %3720  ;;  %3732 = vpow2.f32 %v1477_v0 }
 0x549   : > { %v1483_v30 = vadd.f32 %v4514_v8, %v1482_v34  ;;  %v3723_v32 = vpop.eup %3722  ;;  %v4537_v34 = vpop.permute.xlu0 %1574 }
 0x54a   : > { %v3725_v47 = vpop.eup %3724 }
 0x54b   : > { %v1484_v17 = vadd.f32 %v4521_v43, %v1483_v30  ;;  %v3727_v21 = vpop.eup %3726 }
 0x54c   : > { %v3729_v9 = vpop.eup %3728 }
 0x54d   : > { %v1485_v56 = vadd.f32 %v4528_v44, %v1484_v17  ;;  %v3731_v54 = vpop.eup %3730 }
 0x54e   : > { %v3733_v17 = vpop.eup %3732 }
 0x54f   : > { %v1486_v55 = vadd.f32 %v3719_v41, %v1485_v56  ;;  %v4539_v27 = vpop.permute.xlu1 %1569 }
 0x551   : > { %v1487_v10 = vadd.f32 %v3721_v40, %v1486_v55  ;;  %v4541_v56 = vpop.permute.xlu0 %1564 }
 0x553   : > { %v1488_v5 = vadd.f32 %v3723_v32, %v1487_v10 }
 0x555   : > { %v1489_v53 = vadd.f32 %v3725_v47, %v1488_v5 }
 0x557   : > { %v1490_v26 = vadd.f32 %v3727_v21, %v1489_v53  ;;  %v4543_v46 = vpop.permute.xlu1 %1559 }
 0x559   : > { %v1491_v30 = vadd.f32 %v3729_v9, %v1490_v26  ;;  %v4545_v5 = vpop.permute.xlu0 %1554 }
 0x55b   : > { %v1492_v12 = vadd.f32 %v3731_v54, %v1491_v30 }
 0x55d   : > { %v1493_v48 = vadd.f32 %v3733_v17, %v1492_v12 }
 0x55f   : > { %v1494_v37 = vrot.slane %v1493_v48, 4  ;;  %v4547_v53 = vpop.permute.xlu1 %1549 }
 0x561   : > { %v1495_v45 = vadd.f32 %v1494_v37, %v1493_v48  ;;  %v4549_v30 = vpop.permute.xlu0 %1544 }
 0x563   : > { %v1496_v55 = vrot.slane %v1495_v45, 2 }
 0x565   : > { %v1497_v10 = vadd.f32 %v1496_v55, %v1495_v45 }
 0x567   : > { %v1498_v35 = vrot.slane %v1497_v10, 1 }
 0x569   : > { %v1499_v0 = vadd.f32 %v1498_v35, %v1497_v10  ;;  %v4554_v10 = vpop.permute.xlu1 %1539  ;;  %v4557_v33 = vpop.permute.xlu0 %1534 }
 0x56b   : > { %3734 = vrcp.f32 %v1499_v0 }
 0x571   : > { %v3735_v26 = vpop.eup %3734 }
 0x572   : > { %v1516_v20 = vmul.f32 %v3735_v26, %v3733_v17  ;;  %v1515_v12 = vmul.f32 %v3735_v26, %v3731_v54  ;;  %v1514_v38 = vmul.f32 %v3735_v26, %v3729_v9  ;;  %v1513_v37 = vmul.f32 %v3735_v26, %v3727_v21  ;;  %v4565_v17 = vpop.permute.xlu1 %1529 }
 0x573   : > { %v1512_v55 = vmul.f32 %v3735_v26, %v3725_v47  ;;  %v1511_v0 = vmul.f32 %v3735_v26, %v3723_v32  ;;  %v1510_v9 = vmul.f32 %v3735_v26, %v3721_v40  ;;  %v1509_v21 = vmul.f32 %v3735_v26, %v3719_v41 }
 0x574   : > { %v1612_v58 = vmul.f32 %v4493_v42, %v1516_v20  ;;  %v1611_v48 = vmul.f32 %v4516_v16, %v1515_v12  ;;  %v1610_v45 = vmul.f32 %v4523_v29, %v1514_v38  ;;  %v1609_v35 = vmul.f32 %v4535_v60, %v1513_v37 }
 0x575   : > { %v1608_v20 = vmul.f32 %v4537_v34, %v1512_v55  ;;  %v1606_v38 = vmul.f32 %v4541_v56, %v1510_v9  ;;  %v1508_v47 = vmul.f32 %v3735_v26, %v4528_v44  ;;  %v1605_v54 = vmul.f32 %v4543_v46, %v1509_v21 }
 0x576   : > { %1613 = vmatpush.msra.mxu3 %v1612_v58  ;;  %v1607_v58 = vmul.f32 %v4539_v27, %v1511_v0  ;;  %v1507_v32 = vmul.f32 %v3735_v26, %v4521_v43  ;;  %v1506_v40 = vmul.f32 %v3735_v26, %v4514_v8  ;;  %v1505_v37 = vmul.f32 %v3735_v26, %v4509_v61 }
 0x577   : > { %v1604_v12 = vmul.f32 %v4545_v5, %v1508_v47  ;;  %v1503_v55 = vmul.f32 %v3735_v26, %v4499_v36 }
 0x578   : > { %1614 = vmatpush.msra.mxu3 %v1611_v48  ;;  %v4569_v48 = vpop.permute.xlu0 %1524  ;;  %v1603_v41 = vmul.f32 %v4547_v53, %v1507_v32  ;;  %v1602_v44 = vmul.f32 %v4549_v30, %v1506_v40  ;;  %v1601_v43 = vmul.f32 %v4554_v10, %v1505_v37 }
 0x579   : > { %v1599_v61 = vmul.f32 %v4565_v17, %v1503_v55 }
 0x57a   : > { %1615 = vmatpush.msra.mxu3 %v1610_v45  ;;  %v1504_v45 = vmul.f32 %v3735_v26, %v4504_v23  ;;  %v4579_v0 = vpop.permute.xlu1 %1519 }
 0x57c   : > { %1616 = vmatpush.msra.mxu3 %v1609_v35  ;;  %v1600_v8 = vmul.f32 %v4557_v33, %v1504_v45  ;;  %v1502_v35 = vmul.f32 %v3735_v26, %v4491_v51 }
 0x57e   : > { %1617 = vmatpush.msra.mxu3 %v1608_v20  ;;  %v1501_v20 = vmul.f32 %v3735_v26, %v4489_v50  ;;  %v1598_v23 = vmul.f32 %v4569_v48, %v1502_v35  ;;  %v922_v50 = vld [vmem:[%s5344_s14] sm:$0xff]  ;;  %v925_v26 = vld [vmem:[%s5344_s14 + $0x18] sm:$0xff] }
 0x580   : > { %1618 = vmatpush.msra.mxu3 %v1607_v58  ;;  %v755_v9 = vpop.permute.xlu0 %754  ;;  %v1597_v58 = vmul.f32 %v4579_v0, %v1501_v20 }
 0x581   : > { %v819_v36 = vadd.f32 %v4393_v1, %v755_v9  ;;  %v923_v1 = vld [vmem:[%s5344_s14 + $0x8] sm:$0xff] }
 0x582   : > { %1619 = vmatpush.msra.mxu3 %v1606_v38  ;;  %v760_v21 = vpop.permute.xlu1 %759 }
 0x583   : > { %v822_v51 = vadd.f32 %v4397_v63, %v760_v21  ;;  %v924_v63 = vld [vmem:[%s5344_s14 + $0x10] sm:$0xff] }
 0x584   : > { %1620 = vmatpush.msra.mxu3 %v1605_v54 }
 0x586   : > { %1621 = vmatpush.msra.mxu3 %v1604_v12 }
 0x588   : > { %1622 = vmatpush.msra.mxu3 %v1603_v41  ;;  %v1656_v41 = vpop.permute.xlu0 %1655 }
 0x58a   : > { %1623 = vmatpush.msra.mxu3 %v1602_v44  ;;  %v1651_v37 = vpop.permute.xlu1 %1650 }
 0x58c   : > { %1624 = vmatpush.msra.mxu3 %v1601_v43 }
 0x58e   : > { %1625 = vmatpush.msra.mxu3 %v1600_v8  ;;  %v3659_v8 = vld [vmem:[%s4089_s20] ss:$0 sm:$0xff] }
 0x590   : > { %1626 = vmatpush.msra.mxu3 %v1599_v61  ;;  %v1646_v43 = vpop.permute.xlu0 %1645 }
 0x592   : > { %1627 = vmatpush.msra.mxu3 %v1598_v23  ;;  %v1641_v20 = vpop.permute.xlu1 %1640 }
 0x594   : > { %1628 = vmatpush.msra.mxu3 %v1597_v58 }
 0x595   : > { %1629 = vmatmul.f32.vlgmr.msra.gmra.mxu3 %v819_v36 }
 0x59d   : > { %1632 = vmatmul.f32.gmra.mxu3 %v822_v51 }
 0x618   : > { %v1630_v38 = vpop.f32.mrf.mxu3 }
 0x619   : > { %v1636_v32 = vmax.f32 %v1630_v38, 0.0 }
 0x620   : > { %v1633_v47 = vpop.f32.mrf.mxu3 }
 0x621   : > { %v1637_v54 = vmax.f32 %v1633_v47, 0.0 }
 0x623   : > { %1684 = vmatpush.msra.mxu0 %v1637_v54 }
 0x625   : > { %1685 = vmatpush.msra.mxu0 %v1636_v32  ;;  %v930_v32 = vld [vmem:[%s5346_s16] sm:$0xff] }
 0x626   : > { %3443 = vmatmul.msk.f32.vlgmr.msra.gmra.mxu0 %vm1296_vm2, %v922_v50 }
 0x62e   : > { %3444 = vmatmul.msk.f32.gmra.mxu0 %vm1296_vm2, %v923_v1  ;;  %v1723_v1 = vpop.permute.xlu1 %1722 }
 0x636   : > { %3445 = vmatmul.msk.f32.gmra.mxu0 %vm1296_vm2, %v924_v63 }
 0x63e   : > { %3446 = vmatmul.msk.f32.gmra.mxu0 %vm1296_vm2, %v925_v26 }
 0x6a3   : > { %v1687_v12 = vpop.f32.mrf.mxu0 }
 0x6a4   : > { %v1688_v9 = vadd.f32 %v1687_v12, %v1641_v20  ;;  %v1728_v12 = vpop.permute.xlu0 %1727 }
 0x6a6   : > { %v1702_v51 = vmul.f32 %v3659_v8, %v1688_v9 }
 0x6a8   : > { %v1706_v54 = vadd.f32 %v1702_v51, %v4175_v3 }
 0x6ab   : > { %v1690_v40 = vpop.f32.mrf.mxu0 }
 0x6ac   : > { %v1691_v35 = vadd.f32 %v1690_v40, %v1646_v43 }
 0x6ae   : > { %v1703_v36 = vmul.f32 %v3659_v8, %v1691_v35 }
 0x6b0   : > { %v1707_v47 = vadd.f32 %v1703_v36, %v4169_v57  ;;  %v932_v57 = vld [vmem:[%s5346_s16 + $0x10] sm:$0xff] }
 0x6b3   : > { %v1693_v44 = vpop.f32.mrf.mxu0 }
 0x6b4   : > { %v1694_v45 = vadd.f32 %v1693_v44, %v1651_v37 }
 0x6b6   : > { %v1704_v23 = vmul.f32 %v3659_v8, %v1694_v45 }
 0x6b8   : > { %v1708_v38 = vadd.f32 %v1704_v23, %v4172_v62  ;;  %v933_v62 = vld [vmem:[%s5346_s16 + $0x18] sm:$0xff] }
 0x6bb   : > { %v1696_v55 = vpop.f32.mrf.mxu0 }
 0x6bc   : > { %v1697_v61 = vadd.f32 %v1696_v55, %v1656_v41  ;;  %v1713_v41 = vpop.permute.xlu1 %1712 }
 0x6be   : > { %v1705_v58 = vmul.f32 %v3659_v8, %v1697_v61  ;;  %v1718_v61 = vpop.permute.xlu0 %1717 }
 0x6c0   : > { %v1709_v21 = vadd.f32 %v1705_v58, %v4177_v4  ;;  %v931_v4 = vld [vmem:[%s5346_s16 + $0x8] sm:$0xff] }
 0x6c2   : > { %1754 = vmatpush.msra.mxu2 %v1709_v21  ;;  %v5419_v21 = vmov 0.0  }
 0x6c3   : > { %v3484_v51 = vsel %vm1822_vm4, 1.0, %v5419_v21 }
 0x6c4   : > { %1755 = vmatpush.msra.mxu2 %v1708_v38 }
 0x6c6   : > { %1756 = vmatpush.msra.mxu2 %v1707_v47 }
 0x6c8   : > { %1757 = vmatpush.msra.mxu2 %v1706_v54 }
 0x6c9   : > { %3447 = vmatmul.msk.f32.vlgmr.msra.gmra.mxu2 %vm782_vm5, %v930_v32 }
 0x6d1   : > { %3448 = vmatmul.msk.f32.gmra.mxu2 %vm782_vm5, %v931_v4 }
 0x6d9   : > { %3449 = vmatmul.msk.f32.gmra.mxu2 %vm782_vm5, %v932_v57 }
 0x6e1   : > { %3450 = vmatmul.msk.f32.gmra.mxu2 %vm782_vm5, %v933_v62 }
 0x74c   : > { %v1759_v3 = vpop.f32.mrf.mxu2 }
 0x74d   : > { %v1760_v37 = vadd.f32 %v1759_v3, %v1713_v41 }
 0x74f   : > { %v1771_v43 = vadd.f32 %v1760_v37, %v4115_v15  ;;  %v3457_v15 = vld [vmem:[%s5339_s9 + $0x30] sm:$0xff] }
 0x751   : > { %v4630_v20 = vmul.f32 %v3659_v8, %v1771_v43  ;;  %v3452_v43 = vld [vmem:[%s5338_s8 + $0x28] sm:$0xff] }
 0x754   : > { %v1762_v50 = vpop.f32.mrf.mxu2 }
 0x755   : > { %v1763_v9 = vadd.f32 %v1762_v50, %v1718_v61 }
 0x75c   : > { %v1765_v63 = vpop.f32.mrf.mxu2 }
 0x75d   : > { %v1766_v26 = vadd.f32 %v1765_v63, %v1723_v1  ;;  %v3483_v1 = vsel %vm1819_vm6, 1.0, %v5419_v21  ;;  %vm2531_vm6 = vcmp.lt.s32.totalorder %v4140_v28, 124 }
 0x75f   : > { %v1773_v40 = vadd.f32 %v1766_v26, %v4125_v22  ;;  %v1772_v22 = vadd.f32 %v1763_v9, %v4118_v18  ;;  %v3458_v18 = vld [vmem:[%s5339_s9 + $0x38] sm:$0xff] }
 0x761   : > { %v4625_v44 = vmul.f32 %v3659_v8, %v1773_v40  ;;  %v4637_v58 = vmul.f32 %v3659_v8, %v1772_v22 }
 0x763   : > { %1841 = vrot.lane.b32.xlu1 %v4625_v44, %s3923_s21 }
 0x764   : > { %v1768_v45 = vpop.f32.mrf.mxu2 }
 0x765   : > { %v1769_v55 = vadd.f32 %v1768_v45, %v1728_v12  ;;  %v3451_v45 = vld [vmem:[%s5338_s8 + $0x20] sm:$0xff] }
 0x767   : > { %v1774_v35 = vadd.f32 %v1769_v55, %v4131_v25  ;;  %v3455_v25 = vld [vmem:[%s5339_s9 + $0x20] sm:$0xff]  ;;  %v3453_v55 = vld [vmem:[%s5338_s8 + $0x30] sm:$0xff] }
 0x769   : > { %v4632_v23 = vmul.f32 %v3659_v8, %v1774_v35  ;;  %v3456_v8 = vld [vmem:[%s5339_s9 + $0x28] sm:$0xff]  ;;  %v3454_v35 = vld [vmem:[%s5338_s8 + $0x38] sm:$0xff] }
 0x76b   : > { %1843 = vrot.lane.b32.xlu0 %v4632_v23, %s3923_s21  ;;  %1837 = vrot.lane.b32.xlu1 %v4630_v20, %s3923_s21 }
 0x773   : > { %1839 = vrot.lane.b32.xlu0 %v4637_v58, %s3923_s21  ;;  %1829 = vrot.lane.b32.xlu1 %v4625_v44, %s3924_s2  ;;  %s647_s21 = scalar_lea.vmem [#allocation4], %s3401_s23 }
 0x774   : > { %s3265_s0 = sshll.u32 %s647_s21, 4  ;;  %s3266_s0 = int_to_ptr.vmem [resolvable:$true] %s3265_s0 }
 0x77b   : > { %1831 = vrot.lane.b32.xlu0 %v4632_v23, %s3924_s2  ;;  %1825 = vrot.lane.b32.xlu1 %v4630_v20, %s3924_s2 }
 0x783   : > { %1827 = vrot.lane.b32.xlu0 %v4637_v58, %s3924_s2  ;;  %1861 = vperm.xlu1 %3657, %v3457_v15  }
 0x78b   : > { %1866 = vperm.xlu0 %3656, %v3458_v18   ;;  %1851 = vperm.xlu1 %3657, %v3455_v25  }
 0x793   : > { %1856 = vperm.xlu0 %3656, %v3456_v8  }
 0x7d5   : > { %v1842_v36 = vpop.permute.xlu1 %1841 }
 0x7d6   : > { %v1847_v54 = vmul.f32 %v3484_v51, %v1842_v36 }
 0x7dd   : > { %v1844_v38 = vpop.permute.xlu0 %1843  ;;  %v1838_v32 = vpop.permute.xlu1 %1837 }
 0x7de   : > { %v1848_v47 = vmul.f32 %v3484_v51, %v1844_v38  ;;  %v1845_v62 = vmul.f32 %v3484_v51, %v1838_v32 }
 0x7e0   : > { %1885 = vmatpush.msrb.mxu3 %v1848_v47 }
 0x7e2   : > { %1886 = vmatpush.msrb.mxu3 %v1847_v54 }
 0x7e5   : > { %v1840_v4 = vpop.permute.xlu0 %1839  ;;  %v1830_v3 = vpop.permute.xlu1 %1829 }
 0x7e6   : > { %v1846_v57 = vmul.f32 %v3484_v51, %v1840_v4  ;;  %v1835_v26 = vmul.f32 %v3483_v1, %v1830_v3 }
 0x7e8   : > { %1887 = vmatpush.msrb.mxu3 %v1846_v57 }
 0x7ea   : > { %1888 = vmatpush.msrb.mxu3 %v1845_v62 }
 0x7ec   : > { %1889 = vmatpush.msrb.mxu3 %v4632_v23 }
 0x7ed   : > { %v1832_v50 = vpop.permute.xlu0 %1831  ;;  %v1826_v12 = vpop.permute.xlu1 %1825 }
 0x7ee   : > { %1890 = vmatpush.msrb.mxu3 %v4625_v44  ;;  %v1836_v63 = vmul.f32 %v3483_v1, %v1832_v50  ;;  %v1833_v37 = vmul.f32 %v3483_v1, %v1826_v12 }
 0x7f0   : > { %1891 = vmatpush.msrb.mxu3 %v4637_v58 }
 0x7f2   : > { %1892 = vmatpush.msrb.mxu3 %v4630_v20 }
 0x7f4   : > { %1893 = vmatpush.msrb.mxu3 %v1836_v63 }
 0x7f5   : > { %v1828_v40 = vpop.permute.xlu0 %1827  ;;  %v1862_v22 = vpop.permute.xlu1 %1861 }
 0x7f6   : > { %v1834_v41 = vmul.f32 %v3483_v1, %v1828_v40  ;;  %1894 = vmatpush.msrb.mxu3 %v1835_v26 }
 0x7f8   : > { %1895 = vmatpush.msrb.mxu3 %v1834_v41 }
 0x7fa   : > { %1896 = vmatpush.msrb.mxu3 %v1833_v37 }
 0x7fb   : > { %3485 = vmatmul.msk.f32.vlgmr.msrb.gmra.mxu3 %vm988_vm3, %v3451_v45 }
 0x7fd   : > { %v1867_v8 = vpop.permute.xlu0 %1866  ;;  %v1852_v36 = vpop.permute.xlu1 %1851 }
 0x803   : > { %3486 = vmatmul.msk.f32.gmra.mxu3 %vm988_vm3, %v3452_v43 }
 0x805   : > { %v1857_v4 = vpop.permute.xlu0 %1856 }
 0x80b   : > { %3487 = vmatmul.msk.f32.gmra.mxu3 %vm988_vm3, %v3453_v55 }
 0x813   : > { %3488 = vmatmul.msk.f32.gmra.mxu3 %vm988_vm3, %v3454_v35 }
 0x87e   : > { %v1898_v61 = vpop.f32.mrf.mxu3 }
 0x87f   : > { %v1899_v51 = vadd.f32 %v1898_v61, %v1852_v36  ;;  %v3463_v36 = vld [vmem:[%s5341_s11 + $0x20] sm:$0xff] }
 0x881   : > { %v4683_v54 = vmax.f32 %v1899_v51, 0.0  ;;  %v748_v51 = vld [vmem:[%s5343_s13 + $0x10] sm:$0xff] }
 0x886   : > { %v1901_v9 = vpop.f32.mrf.mxu3 }
 0x887   : > { %v1902_v57 = vadd.f32 %v1901_v9, %v1857_v4  ;;  %v3473_v4 = vld [vmem:[%s5345_s15 + $0x30] sm:$0xff] }
 0x889   : > { %v4689_v62 = vmax.f32 %v1902_v57, 0.0  ;;  %v3472_v57 = vld [vmem:[%s5345_s15 + $0x28] sm:$0xff] }
 0x88e   : > { %v1904_v15 = vpop.f32.mrf.mxu3 }
 0x88f   : > { %v1905_v18 = vadd.f32 %v1904_v15, %v1862_v22  ;;  %v3466_v15 = vld [vmem:[%s5341_s11 + $0x38] sm:$0xff] }
 0x891   : > { %v4680_v25 = vmax.f32 %v1905_v18, 0.0  ;;  %v3465_v18 = vld [vmem:[%s5341_s11 + $0x30] sm:$0xff] }
 0x893   : > { %1918 = vadd.xlane.f32.xlu1 %v4680_v25 }
 0x896   : > { %v1907_v38 = vpop.f32.mrf.mxu3 }
 0x897   : > { %v1908_v47 = vadd.f32 %v1907_v38, %v1867_v8  ;;  %v3464_v8 = vld [vmem:[%s5341_s11 + $0x28] sm:$0xff]  ;;  %v749_v38 = vld [vmem:[%s5343_s13 + $0x18] sm:$0xff] }
 0x899   : > { %v4685_v32 = vmax.f32 %v1908_v47, 0.0  ;;  %v3474_v47 = vld [vmem:[%s5345_s15 + $0x38] sm:$0xff] }
 0x89b   : > { %1920 = vadd.xlane.f32.xlu0 %v4685_v32  ;;  %1914 = vadd.xlane.f32.xlu1 %v4683_v54 }
 0x8a3   : > { %1916 = vadd.xlane.f32.xlu0 %v4689_v62 }
 0x906   : > { %v1919_v3 = vpop.xlane.xlu1 %1918 }
 0x907   : > { %v1924_v50 = vmul.f32 %v1919_v3, %v4181_v11  ;;  %v3471_v3 = vld [vmem:[%s5345_s15 + $0x20] sm:$0xff] }
 0x909   : > { %v4694_v1 = vsub.f32 %v4680_v25, %v1924_v50  ;;  %v3482_v50 = vld [vmem:[%s5347_s17 + $0x38] sm:$0xff] }
 0x90b   : > { %v1932_v63 = vmul.f32 %v4694_v1, %v4694_v1 }
 0x90d   : > { %1938 = vadd.xlane.f32.xlu2 %v1932_v63  ;;  %v3481_v63 = vld [vmem:[%s5347_s17 + $0x30] sm:$0xff] }
 0x90e   : > { %v1921_v26 = vpop.xlane.xlu0 %1920  ;;  %v1915_v40 = vpop.xlane.xlu1 %1914 }
 0x90f   : > { %v1925_v12 = vmul.f32 %v1921_v26, %v4181_v11  ;;  %v1922_v37 = vmul.f32 %v1915_v40, %v4181_v11  ;;  %v3480_v26 = vld [vmem:[%s5347_s17 + $0x28] sm:$0xff] }
 0x911   : > { %v4700_v41 = vsub.f32 %v4685_v32, %v1925_v12  ;;  %v4706_v55 = vsub.f32 %v4683_v54, %v1922_v37  ;;  %v3479_v12 = vld [vmem:[%s5347_s17 + $0x20] sm:$0xff] }
 0x913   : > { %v1933_v45 = vmul.f32 %v4700_v41, %v4700_v41  ;;  %v1930_v22 = vmul.f32 %v4706_v55, %v4706_v55 }
 0x915   : > { %1940 = vadd.xlane.f32.xlu0 %v1933_v45 }
 0x916   : > { %v1917_v43 = vpop.xlane.xlu0 %1916 }
 0x917   : > { %v1923_v35 = vmul.f32 %v1917_v43, %v4181_v11 }
 0x919   : > { %v4710_v61 = vsub.f32 %v4689_v62, %v1923_v35 }
 0x91b   : > { %v1931_v9 = vmul.f32 %v4710_v61, %v4710_v61 }
 0x91d   : > { %1936 = vadd.xlane.f32.xlu1 %v1931_v9  ;;  %1934 = vadd.xlane.f32.xlu0 %v1930_v22 }
 0x931   : > { %2011 = vperm.xlu0 %3656, %v3466_v15  }
 0x936   : > { %2006 = vperm.xlu1 %3657, %v3465_v18  }
 0x939   : > { %2001 = vperm.xlu0 %3656, %v3464_v8  }
 0x93e   : > { %1996 = vperm.xlu1 %3657, %v3463_v36  }
 0x941   : > { %764 = vperm.xlu0 %3656, %v748_v51  }
 0x946   : > { %769 = vperm.xlu1 %3657, %v749_v38  }
 0x949   : > { %2367 = vperm.xlu0 %3656, %v3474_v47  }
 0x94e   : > { %2362 = vperm.xlu1 %3657, %v3473_v4  }
 0x951   : > { %2357 = vperm.xlu0 %3656, %v3472_v57  }
 0x956   : > { %2352 = vperm.xlu1 %3657, %v3471_v3  }
 0x959   : > { %2436 = vperm.xlu0 %3656, %v3482_v50  }
 0x95e   : > { %2431 = vperm.xlu1 %3657, %v3481_v63  }
 0x961   : > { %2426 = vperm.xlu0 %3656, %v3480_v26  }
 0x966   : > { %2421 = vperm.xlu1 %3657, %v3479_v12  }
 0x980   : > { %v1939_v40 = vpop.xlane.xlu2 %1938 }
 0x981   : > { %v1944_v37 = vmul.f32 %v1939_v40, %v4181_v11 }
 0x983   : > { %v1948_v45 = vadd.f32 1e-05, %v1944_v37 }
 0x985   : > { %3736 = vrsqrt.f32 %v1948_v45  ;;  %vm1976_vm9 = vweird.f32 %v1948_v45 }
 0x988   : > { %v1941_v43 = vpop.xlane.xlu0 %1940 }
 0x989   : > { %v1945_v35 = vmul.f32 %v1941_v43, %v4181_v11 }
 0x98b   : > { %v3737_v9 = vpop.eup %3736  ;;  %v1949_v22 = vadd.f32 1e-05, %v1945_v35 }
 0x98c   : > { %v1971_v15 = vmul.f32 %v3737_v9, %v1948_v45  ;;  %vm1977_vm7 = vweird.f32 %v3737_v9 }
 0x98d   : > { %3738 = vrsqrt.f32 %v1949_v22  ;;  %vm1978_vm10 = vmor %vm1976_vm9, %vm1977_vm7  ;;  %vm1986_vm11 = vweird.f32 %v1949_v22  ;;  %vm2528_vm7 = vcmp.ge.s32.totalorder %v4140_v28, 4  ;;  %v3517_v28 = vld [vmem:[%s5338_s8 + $0x40] sm:$0xff] }
 0x98e   : > { %v1972_v18 = vmul.f32 %v3737_v9, %v1971_v15 }
 0x990   : > { %v1935_v8 = vpop.xlane.xlu0 %1934  ;;  %v1937_v36 = vpop.xlane.xlu1 %1936  ;;  %v1973_v47 = vmul.f32 0.5, %v1972_v18 }
 0x991   : > { %v1942_v51 = vmul.f32 %v1935_v8, %v4181_v11  ;;  %v1943_v38 = vmul.f32 %v1937_v36, %v4181_v11 }
 0x992   : > { %v1974_v63 = vsub.f32 1.5, %v1973_v47 }
 0x993   : > { %v3739_v4 = vpop.eup %3738  ;;  %v1946_v57 = vadd.f32 1e-05, %v1942_v51  ;;  %v1947_v3 = vadd.f32 1e-05, %v1943_v38 }
 0x994   : > { %v1981_v50 = vmul.f32 %v3739_v4, %v1949_v22  ;;  %vm1987_vm8 = vweird.f32 %v3739_v4  ;;  %v1975_v37 = vmul.f32 %v3737_v9, %v1974_v63 }
 0x995   : > { %3740 = vrsqrt.f32 %v1946_v57  ;;  %vm1988_vm12 = vmor %vm1986_vm11, %vm1987_vm8  ;;  %vm1956_vm15 = vweird.f32 %v1946_v57  ;;  %vm1966_vm1 = vweird.f32 %v1947_v3 }
 0x996   : > { %v1982_v26 = vmul.f32 %v3739_v4, %v1981_v50  ;;  %3742 = vrsqrt.f32 %v1947_v3  ;;  %v1979_v38 = vsel %vm1978_vm10, %v3737_v9, %v1975_v37 }
 0x997   : > { %v1992_v63 = vmul.f32 %v1979_v38, %v4694_v1  ;;  %v3459_v1 = vld [vmem:[%s5340_s10 + $0x20] sm:$0xff] }
 0x998   : > { %v1983_v12 = vmul.f32 0.5, %v1982_v26 }
 0x99a   : > { %v1984_v40 = vsub.f32 1.5, %v1983_v12 }
 0x99b   : > { %v3741_v43 = vpop.eup %3740 }
 0x99c   : > { %v3743_v35 = vpop.eup %3742  ;;  %v1985_v15 = vmul.f32 %v3739_v4, %v1984_v40  ;;  %v1951_v18 = vmul.f32 %v3741_v43, %v1946_v57  ;;  %vm1957_vm13 = vweird.f32 %v3741_v43 }
 0x99d   : > { %v1961_v8 = vmul.f32 %v3743_v35, %v1947_v3  ;;  %vm1967_vm14 = vweird.f32 %v3743_v35  ;;  %vm1958_vm0 = vmor %vm1956_vm15, %vm1957_vm13 }
 0x99e   : > { %v1952_v36 = vmul.f32 %v3741_v43, %v1951_v18  ;;  %v1989_v51 = vsel %vm1988_vm12, %v3739_v4, %v1985_v15  ;;  %vm1968_vm4 = vmor %vm1966_vm1, %vm1967_vm14 }
 0x99f   : > { %v1962_v47 = vmul.f32 %v3743_v35, %v1961_v8  ;;  %v1993_v50 = vmul.f32 %v1989_v51, %v4700_v41 }
 0x9a0   : > { %v1953_v26 = vmul.f32 0.5, %v1952_v36 }
 0x9a1   : > { %v1963_v11 = vmul.f32 0.5, %v1962_v47  ;;  %2038 = vmatpush.msrb.mxu0 %v1993_v50 }
 0x9a2   : > { %v1954_v12 = vsub.f32 1.5, %v1953_v26 }
 0x9a3   : > { %v1964_v45 = vsub.f32 1.5, %v1963_v11  ;;  %2039 = vmatpush.msrb.mxu0 %v1992_v63  ;;  %v3460_v11 = vld [vmem:[%s5340_s10 + $0x28] sm:$0xff]  ;;  %v2012_v57 = vpop.permute.xlu0 %2011 }
 0x9a4   : > { %v1955_v22 = vmul.f32 %v3741_v43, %v1954_v12 }
 0x9a5   : > { %v1965_v40 = vmul.f32 %v3743_v35, %v1964_v45 }
 0x9a6   : > { %v1959_v4 = vsel %vm1958_vm0, %v3741_v43, %v1955_v22 }
 0x9a7   : > { %v1969_v9 = vsel %vm1968_vm4, %v3743_v35, %v1965_v40  ;;  %v1990_v37 = vmul.f32 %v1959_v4, %v4706_v55  ;;  %v3462_v55 = vld [vmem:[%s5340_s10 + $0x38] sm:$0xff] }
 0x9a8   : > { %v1991_v41 = vmul.f32 %v1969_v9, %v4710_v61  ;;  %v3461_v61 = vld [vmem:[%s5340_s10 + $0x30] sm:$0xff]  ;;  %v2007_v3 = vpop.permute.xlu1 %2006 }
 0x9aa   : > { %2040 = vmatpush.msrb.mxu0 %v1991_v41 }
 0x9ab   : > { %v2002_v35 = vpop.permute.xlu0 %2001 }
 0x9ac   : > { %2041 = vmatpush.msrb.mxu0 %v1990_v37 }
 0x9ad   : > { %3489 = vmatmul.msk.f32.vlgmr.msrb.gmra.mxu0 %vm782_vm5, %v3459_v1 }
 0x9b0   : > { %v1997_v15 = vpop.permute.xlu1 %1996 }
 0x9b5   : > { %3490 = vmatmul.msk.f32.gmra.mxu0 %vm782_vm5, %v3460_v11 }
 0x9bd   : > { %3491 = vmatmul.msk.f32.gmra.mxu0 %vm782_vm5, %v3461_v61 }
 0x9c5   : > { %3492 = vmatmul.msk.f32.gmra.mxu0 %vm782_vm5, %v3462_v55 }
 0xa2a   : > { %v2043_v43 = vpop.f32.mrf.mxu0 }
 0xa2b   : > { %v2044_v8 = vadd.f32 %v2043_v43, %v1997_v15 }
 0xa2d   : > { %v2055_v38 = vmul.f32 0.25, %v2044_v8 }
 0xa32   : > { %v2046_v18 = vpop.f32.mrf.mxu0 }
 0xa33   : > { %v2047_v36 = vadd.f32 %v2046_v18, %v2002_v35 }
 0xa35   : > { %v2056_v51 = vmul.f32 0.25, %v2047_v36 }
 0xa37   : > { %2151 = vmatpush.msrb.mxu2 %v2056_v51 }
 0xa39   : > { %2152 = vmatpush.msrb.mxu2 %v2055_v38 }
 0xa3a   : > { %v2049_v47 = vpop.f32.mrf.mxu0 }
 0xa3b   : > { %v2050_v50 = vadd.f32 %v2049_v47, %v2007_v3 }
 0xa3d   : > { %2057 = vxpose.xlu2.b32.start [1/2] (short) %v2050_v50, 128 }
 0xa42   : > { %v2052_v26 = vpop.f32.mrf.mxu0 }
 0xa43   : > { %v2053_v63 = vadd.f32 %v2052_v26, %v2012_v57 }
 0xa45   : > { %2058 = vxpose.xlu2.b32.end [2/2] (short) %v2053_v63, 128 }
 0xad6   : > { %v2073_v12 = vpop.trf.xlu2 }
 0xad7   : > { %3493 = vmatmul.msk.f32.vlgmr.msrb.gmra.mxu2 %vm1296_vm2, %v2073_v12 }
 0xade   : > { %v2074_v45 = vpop.trf.xlu2 }
 0xadf   : > { %3494 = vmatmul.msk.f32.gmra.mxu2 %vm1296_vm2, %v2074_v45 }
 0xae6   : > { %v2075_v22 = vpop.trf.xlu2 }
 0xae7   : > { %3495 = vmatmul.msk.f32.gmra.mxu2 %vm1296_vm2, %v2075_v22 }
 0xaee   : > { %v2076_v40 = vpop.trf.xlu2 }
 0xaef   : > { %3496 = vmatmul.msk.f32.gmra.mxu2 %vm1296_vm2, %v2076_v40 }
 0xaf6   : > { %v2077_v9 = vpop.trf.xlu2 }
 0xaf7   : > { %3497 = vmatmul.msk.f32.gmra.mxu2 %vm1296_vm2, %v2077_v9 }
 0xafe   : > { %v2078_v4 = vpop.trf.xlu2 }
 0xaff   : > { %3498 = vmatmul.msk.f32.gmra.mxu2 %vm1296_vm2, %v2078_v4 }
 0xb06   : > { %v2079_v41 = vpop.trf.xlu2 }
 0xb07   : > { %3499 = vmatmul.msk.f32.gmra.mxu2 %vm1296_vm2, %v2079_v41 }
 0xb0e   : > { %v2080_v37 = vpop.trf.xlu2 }
 0xb0f   : > { %3500 = vmatmul.msk.f32.gmra.mxu2 %vm1296_vm2, %v2080_v37 }
 0xb16   : > { %v2081_v1 = vpop.trf.xlu2 }
 0xb17   : > { %3501 = vmatmul.msk.f32.gmra.mxu2 %vm1296_vm2, %v2081_v1 }
 0xb1e   : > { %v2082_v11 = vpop.trf.xlu2 }
 0xb1f   : > { %3502 = vmatmul.msk.f32.gmra.mxu2 %vm1296_vm2, %v2082_v11 }
 0xb26   : > { %v2083_v61 = vpop.trf.xlu2 }
 0xb27   : > { %3503 = vmatmul.msk.f32.gmra.mxu2 %vm1296_vm2, %v2083_v61 }
 0xb2e   : > { %v2084_v55 = vpop.trf.xlu2 }
 0xb2f   : > { %3504 = vmatmul.msk.f32.gmra.mxu2 %vm1296_vm2, %v2084_v55 }
 0xb36   : > { %v2085_v57 = vpop.trf.xlu2 }
 0xb37   : > { %3505 = vmatmul.msk.f32.gmra.mxu2 %vm1296_vm2, %v2085_v57 }
 0xb3e   : > { %v2086_v3 = vpop.trf.xlu2 }
 0xb3f   : > { %3506 = vmatmul.msk.f32.gmra.mxu2 %vm1296_vm2, %v2086_v3 }
 0xb46   : > { %v2087_v43 = vpop.trf.xlu2 }
 0xb47   : > { %3507 = vmatmul.msk.f32.gmra.mxu2 %vm1296_vm2, %v2087_v43 }
 0xb4e   : > { %v2088_v35 = vpop.trf.xlu2 }
 0xb4f   : > { %3508 = vmatmul.msk.f32.gmra.mxu2 %vm1296_vm2, %v2088_v35 }
 0xb5a   : > { %v2154_v15 = vpop.f32.mrf.mxu2 }
 0xb5b   : > { %v2155_v38 = vadd.f32 %v2154_v15, %v4395_v14 }
 0xb62   : > { %v2157_v18 = vpop.f32.mrf.mxu2 }
 0xb63   : > { %v2158_v63 = vadd.f32 %v2157_v18, %v4399_v52 }
 0xb6a   : > { %v2160_v8 = vpop.f32.mrf.mxu2 }
 0xb6b   : > { %v2161_v40 = vadd.f32 %v2160_v8, %v4401_v2 }
 0xb72   : > { %v2163_v36 = vpop.f32.mrf.mxu2 }
 0xb7a   : > { %v2166_v51 = vpop.f32.mrf.mxu2 }
 0xb7b   : > { %v2167_v47 = vadd.f32 %v2166_v51, %v4407_v7 }
 0xb7d   : > { %v2202_v50 = vmax.f32 %v2155_v38, %v2167_v47 }
 0xb82   : > { %v2169_v26 = vpop.f32.mrf.mxu2 }
 0xb83   : > { %v2170_v12 = vadd.f32 %v2169_v26, %v4411_v13 }
 0xb85   : > { %v2203_v45 = vmax.f32 %v2158_v63, %v2170_v12 }
 0xb8a   : > { %v2172_v22 = vpop.f32.mrf.mxu2 }
 0xb8b   : > { %v2173_v9 = vadd.f32 %v2172_v22, %v4413_v49 }
 0xb8d   : > { %v2204_v4 = vmax.f32 %v2161_v40, %v2173_v9 }
 0xb92   : > { %v2175_v41 = vpop.f32.mrf.mxu2 }
 0xb9a   : > { %v2178_v37 = vpop.f32.mrf.mxu2 }
 0xb9b   : > { %v4805_v57 = vadd.f32 %v2178_v37, %v4419_v24  ;;  %v5421_v24 = vld [vmem:[#allocation26_spill] sm:$0xff] }
 0xb9d   : > { %v2206_v15 = vmax.f32 %v2202_v50, %v4805_v57 }
 0xba2   : > { %v2181_v1 = vpop.f32.mrf.mxu2 }
 0xba3   : > { %v4808_v3 = vadd.f32 %v2181_v1, %v4421_v31  ;;  %v2176_v1 = vadd.f32 %v2175_v41, %v4417_v19  ;;  %v2164_v31 = vadd.f32 %v2163_v36, %v4405_v6 }
 0xba5   : > { %v2207_v18 = vmax.f32 %v2203_v45, %v4808_v3  ;;  %v2205_v50 = vmax.f32 %v2164_v31, %v2176_v1  ;;  %v5422_v45 = vld [vmem:[#allocation28_spill] sm:$0xff] }
 0xbaa   : > { %v2184_v11 = vpop.f32.mrf.mxu2 }
 0xbb2   : > { %v2187_v61 = vpop.f32.mrf.mxu2 }
 0xbb3   : > { %v4824_v49 = vadd.f32 %v2187_v61, %v5421_v24 }
 0xbba   : > { %v2190_v55 = vpop.f32.mrf.mxu2 }
 0xbbb   : > { %v4811_v43 = vadd.f32 %v2190_v55, %v4456_v59  ;;  %v5420_v55 = vld [vmem:[#allocation25_spill] sm:$0xff] }
 0xbbc   : > { %v2185_v59 = vadd.f32 %v2184_v11, %v5420_v55 }
 0xbbd   : > { %v2210_v51 = vmax.f32 %v2206_v15, %v4811_v43  ;;  %v2209_v15 = vmax.f32 %v2205_v50, %v4824_v49 }
 0xbc2   : > { %v2193_v35 = vpop.f32.mrf.mxu2 }
 0xbc3   : > { %v4816_v8 = vadd.f32 %v2193_v35, %v4427_v39  ;;  %v2208_v39 = vmax.f32 %v2204_v4, %v2185_v59 }
 0xbc5   : > { %v2211_v26 = vmax.f32 %v2207_v18, %v4816_v8  ;;  %v5423_v18 = vld [vmem:[#allocation30_spill] sm:$0xff] }
 0xbc7   : > { %v2214_v22 = vmax.f32 %v2210_v51, %v2211_v26 }
 0xbca   : > { %v2196_v37 = vpop.f32.mrf.mxu2 }
 0xbcb   : > { %v4827_v2 = vadd.f32 %v2196_v37, %v5422_v45 }
 0xbcd   : > { %v2212_v41 = vmax.f32 %v2208_v39, %v4827_v2 }
 0xbd2   : > { %v2199_v35 = vpop.f32.mrf.mxu2 }
 0xbd3   : > { %v4831_v51 = vadd.f32 %v2199_v35, %v5423_v18 }
 0xbd5   : > { %v2213_v36 = vmax.f32 %v2209_v15, %v4831_v51 }
 0xbd7   : > { %v2215_v26 = vmax.f32 %v2212_v41, %v2213_v36 }
 0xbd9   : > { %v2216_v11 = vmax.f32 %v2214_v22, %v2215_v26 }
 0xbdb   : > { %v2217_v55 = vrot.slane %v2216_v11, 4 }
 0xbdd   : > { %v2218_v61 = vmax.f32 %v2216_v11, %v2217_v55 }
 0xbdf   : > { %v2219_v24 = vrot.slane %v2218_v61, 2 }
 0xbe1   : > { %v2220_v6 = vmax.f32 %v2218_v61, %v2219_v24 }
 0xbe3   : > { %v2221_v19 = vrot.slane %v2220_v6, 1 }
 0xbe5   : > { %v4835_v37 = vmax.f32 %v2220_v6, %v2221_v19 }
 0xbe7   : > { %v2223_v4 = vsub.f32 %v2155_v38, %v4835_v37  ;;  %v2224_v50 = vsub.f32 %v2158_v63, %v4835_v37  ;;  %v2225_v35 = vsub.f32 %v2161_v40, %v4835_v37  ;;  %v2226_v18 = vsub.f32 %v2164_v31, %v4835_v37 }
 0xbe8   : > { %v2227_v39 = vsub.f32 %v2167_v47, %v4835_v37  ;;  %v2228_v15 = vsub.f32 %v2170_v12, %v4835_v37  ;;  %v2229_v22 = vsub.f32 %v2173_v9, %v4835_v37  ;;  %v2230_v38 = vsub.f32 %v2176_v1, %v4835_v37 }
 0xbe9   : > { %v2239_v55 = vmul.f32 1.442695, %v2223_v4  ;;  %v2241_v41 = vmul.f32 1.442695, %v2224_v50  ;;  %v2243_v24 = vmul.f32 1.442695, %v2225_v35  ;;  %v2231_v47 = vsub.f32 %v4805_v57, %v4835_v37 }
 0xbea   : > { %v2245_v6 = vmul.f32 1.442695, %v2226_v18  ;;  %v2247_v19 = vmul.f32 1.442695, %v2227_v39  ;;  %v2249_v63 = vmul.f32 1.442695, %v2228_v15  ;;  %v2232_v18 = vsub.f32 %v4808_v3, %v4835_v37 }
 0xbeb   : > { %3744 = vpow2.f32 %v2239_v55  ;;  %v2251_v12 = vmul.f32 1.442695, %v2229_v22  ;;  %v2253_v1 = vmul.f32 1.442695, %v2230_v38  ;;  %v2233_v61 = vsub.f32 %v2185_v59, %v4835_v37 }
 0xbec   : > { %3746 = vpow2.f32 %v2241_v41  ;;  %v2255_v57 = vmul.f32 1.442695, %v2231_v47  ;;  %v2234_v35 = vsub.f32 %v4824_v49, %v4835_v37  ;;  %v2257_v39 = vmul.f32 1.442695, %v2232_v18 }
 0xbed   : > { %3748 = vpow2.f32 %v2243_v24  ;;  %v2235_v22 = vsub.f32 %v4811_v43, %v4835_v37  ;;  %v2259_v55 = vmul.f32 1.442695, %v2233_v61  ;;  %v2236_v24 = vsub.f32 %v4816_v8, %v4835_v37 }
 0xbee   : > { %3750 = vpow2.f32 %v2245_v6  ;;  %v2261_v6 = vmul.f32 1.442695, %v2234_v35  ;;  %v2237_v49 = vsub.f32 %v4827_v2, %v4835_v37  ;;  %v2238_v43 = vsub.f32 %v4831_v51, %v4835_v37 }
 0xbef   : > { %3752 = vpow2.f32 %v2247_v19 }
 0xbf0   : > { %3754 = vpow2.f32 %v2249_v63  ;;  %v2263_v63 = vmul.f32 1.442695, %v2235_v22  ;;  %v2267_v8 = vmul.f32 1.442695, %v2237_v49 }
 0xbf1   : > { %v4845_v40 = vpop.eup %3744  ;;  %3756 = vpow2.f32 %v2251_v12 }
 0xbf2   : > { %v4847_v31 = vpop.eup %3746  ;;  %3758 = vpow2.f32 %v2253_v1 }
 0xbf3   : > { %v2271_v9 = vadd.f32 %v4847_v31, %v4845_v40  ;;  %v4853_v36 = vpop.eup %3748  ;;  %3760 = vpow2.f32 %v2255_v57  ;;  %v2269_v57 = vmul.f32 1.442695, %v2238_v43 }
 0xbf4   : > { %v4858_v11 = vpop.eup %3750  ;;  %3762 = vpow2.f32 %v2257_v39 }
 0xbf5   : > { %v2272_v26 = vadd.f32 %v4853_v36, %v2271_v9  ;;  %v4862_v50 = vpop.eup %3752  ;;  %3764 = vpow2.f32 %v2259_v55  ;;  %v2265_v9 = vmul.f32 1.442695, %v2236_v24 }
 0xbf6   : > { %v3755_v15 = vpop.eup %3754  ;;  %3766 = vpow2.f32 %v2261_v6 }
 0xbf7   : > { %v2273_v4 = vadd.f32 %v4858_v11, %v2272_v26  ;;  %v3757_v41 = vpop.eup %3756  ;;  %3768 = vpow2.f32 %v2263_v63 }
 0xbf8   : > { %v3759_v38 = vpop.eup %3758  ;;  %3770 = vpow2.f32 %v2265_v9 }
 0xbf9   : > { %v2274_v3 = vadd.f32 %v4862_v50, %v2273_v4  ;;  %v3761_v12 = vpop.eup %3760  ;;  %3772 = vpow2.f32 %v2267_v8 }
 0xbfa   : > { %v3763_v1 = vpop.eup %3762  ;;  %3774 = vpow2.f32 %v2269_v57 }
 0xbfb   : > { %v2275_v59 = vadd.f32 %v3755_v15, %v2274_v3  ;;  %v3765_v61 = vpop.eup %3764 }
 0xbfc   : > { %v3767_v35 = vpop.eup %3766 }
 0xbfd   : > { %v2276_v19 = vadd.f32 %v3757_v41, %v2275_v59  ;;  %v3769_v39 = vpop.eup %3768 }
 0xbfe   : > { %v3771_v22 = vpop.eup %3770 }
 0xbff   : > { %v2277_v47 = vadd.f32 %v3759_v38, %v2276_v19  ;;  %v3773_v51 = vpop.eup %3772 }
 0xc00   : > { %v3775_v59 = vpop.eup %3774 }
 0xc01   : > { %v2278_v18 = vadd.f32 %v3761_v12, %v2277_v47 }
 0xc03   : > { %v2279_v26 = vadd.f32 %v3763_v1, %v2278_v18 }
 0xc05   : > { %v2280_v4 = vadd.f32 %v3765_v61, %v2279_v26 }
 0xc07   : > { %v2281_v2 = vadd.f32 %v3767_v35, %v2280_v4 }
 0xc09   : > { %v2282_v3 = vadd.f32 %v3769_v39, %v2281_v2 }
 0xc0b   : > { %v2283_v55 = vadd.f32 %v3771_v22, %v2282_v3 }
 0xc0d   : > { %v2284_v37 = vadd.f32 %v3773_v51, %v2283_v55 }
 0xc0f   : > { %v2285_v24 = vadd.f32 %v3775_v59, %v2284_v37 }
 0xc11   : > { %v2286_v6 = vrot.slane %v2285_v24, 4 }
 0xc13   : > { %v2287_v19 = vadd.f32 %v2286_v6, %v2285_v24 }
 0xc15   : > { %v2288_v49 = vrot.slane %v2287_v19, 2 }
 0xc17   : > { %v2289_v63 = vadd.f32 %v2288_v49, %v2287_v19 }
 0xc19   : > { %v2290_v47 = vrot.slane %v2289_v63, 1 }
 0xc1b   : > { %v2291_v9 = vadd.f32 %v2290_v47, %v2289_v63 }
 0xc1d   : > { %3776 = vrcp.f32 %v2291_v9  ;;  %v5424_v9 = vld [vmem:[#allocation17_spill] sm:$0xff] }
 0xc23   : > { %v3777_v43 = vpop.eup %3776 }
 0xc24   : > { %v2308_v18 = vmul.f32 %v3777_v43, %v3775_v59  ;;  %v2307_v8 = vmul.f32 %v3777_v43, %v3773_v51  ;;  %v2306_v26 = vmul.f32 %v3777_v43, %v3771_v22  ;;  %v2305_v4 = vmul.f32 %v3777_v43, %v3769_v39  ;;  %v765_v22 = vpop.permute.xlu0 %764 }
 0xc25   : > { %v2304_v57 = vmul.f32 %v3777_v43, %v3767_v35  ;;  %v2303_v2 = vmul.f32 %v3777_v43, %v3765_v61  ;;  %v2302_v45 = vmul.f32 %v3777_v43, %v3763_v1  ;;  %v2301_v3 = vmul.f32 %v3777_v43, %v3761_v12 }
 0xc26   : > { %v2324_v55 = vmul.f32 %v2308_v18, %v4493_v42  ;;  %v2323_v37 = vmul.f32 %v2307_v8, %v4516_v16  ;;  %v2300_v24 = vmul.f32 %v3777_v43, %v3759_v38  ;;  %v2299_v6 = vmul.f32 %v3777_v43, %v3757_v41  ;;  %v770_v18 = vpop.permute.xlu1 %769  ;;  %v5425_v8 = vld [vmem:[#allocation19_spill] sm:$0xff] }
 0xc27   : > { %v2298_v19 = vmul.f32 %v3777_v43, %v3755_v15  ;;  %v2297_v49 = vmul.f32 %v3777_v43, %v4862_v50  ;;  %v2296_v63 = vmul.f32 %v3777_v43, %v4858_v11  ;;  %v2295_v51 = vmul.f32 %v3777_v43, %v4853_v36 }
 0xc28   : > { %2325 = vmatpush.msra.mxu3 %v2324_v55  ;;  %v2294_v39 = vmul.f32 %v3777_v43, %v4847_v31  ;;  %v2293_v61 = vmul.f32 %v3777_v43, %v4845_v40  ;;  %v2322_v12 = vmul.f32 %v2306_v26, %v4523_v29  ;;  %v2321_v1 = vmul.f32 %v2305_v4, %v4535_v60  ;;  %v3467_v55 = vld [vmem:[%s5344_s14 + $0x20] sm:$0xff] }
 0xc29   : > { %v2320_v41 = vmul.f32 %v2304_v57, %v4537_v34  ;;  %v2319_v50 = vmul.f32 %v2303_v2, %v4539_v27  ;;  %v2318_v11 = vmul.f32 %v2302_v45, %v4541_v56  ;;  %v2317_v31 = vmul.f32 %v2301_v3, %v4543_v46 }
 0xc2a   : > { %2326 = vmatpush.msra.mxu3 %v2323_v37  ;;  %v2316_v40 = vmul.f32 %v2300_v24, %v4545_v5  ;;  %v2315_v36 = vmul.f32 %v2299_v6, %v4547_v53  ;;  %v2314_v15 = vmul.f32 %v2298_v19, %v4549_v30  ;;  %v2313_v38 = vmul.f32 %v2297_v49, %v4554_v10  ;;  %v3468_v37 = vld [vmem:[%s5344_s14 + $0x28] sm:$0xff]  ;;  %v3469_v24 = vld [vmem:[%s5344_s14 + $0x30] sm:$0xff]  ;;  %v3470_v6 = vld [vmem:[%s5344_s14 + $0x38] sm:$0xff] }
 0xc2b   : > { %v2312_v35 = vmul.f32 %v2296_v63, %v4557_v33  ;;  %v2311_v45 = vmul.f32 %v2295_v51, %v4565_v17  ;;  %v2310_v59 = vmul.f32 %v2294_v39, %v4569_v48  ;;  %v2309_v47 = vmul.f32 %v2293_v61, %v4579_v0 }
 0xc2c   : > { %2327 = vmatpush.msra.mxu3 %v2322_v12  ;;  %v825_v43 = vadd.f32 %v5424_v9, %v765_v22  ;;  %v828_v26 = vadd.f32 %v5425_v8, %v770_v18  ;;  %v2368_v63 = vpop.permute.xlu0 %2367  ;;  %v3475_v9 = vld [vmem:[%s5346_s16 + $0x20] sm:$0xff] }
 0xc2e   : > { %2328 = vmatpush.msra.mxu3 %v2321_v1  ;;  %v2363_v51 = vpop.permute.xlu1 %2362 }
 0xc30   : > { %2329 = vmatpush.msra.mxu3 %v2320_v41 }
 0xc32   : > { %2330 = vmatpush.msra.mxu3 %v2319_v50 }
 0xc34   : > { %2331 = vmatpush.msra.mxu3 %v2318_v11  ;;  %v2358_v12 = vpop.permute.xlu0 %2357 }
 0xc36   : > { %2332 = vmatpush.msra.mxu3 %v2317_v31  ;;  %v2353_v11 = vpop.permute.xlu1 %2352 }
 0xc38   : > { %2333 = vmatpush.msra.mxu3 %v2316_v40  ;;  %v4915_v40 = vld [vmem:[%s4089_s20] ss:$0 sm:$0xff] }
 0xc3a   : > { %2334 = vmatpush.msra.mxu3 %v2315_v36 }
 0xc3c   : > { %2335 = vmatpush.msra.mxu3 %v2314_v15 }
 0xc3e   : > { %2336 = vmatpush.msra.mxu3 %v2313_v38 }
 0xc40   : > { %2337 = vmatpush.msra.mxu3 %v2312_v35 }
 0xc42   : > { %2338 = vmatpush.msra.mxu3 %v2311_v45 }
 0xc44   : > { %2339 = vmatpush.msra.mxu3 %v2310_v59 }
 0xc46   : > { %2340 = vmatpush.msra.mxu3 %v2309_v47 }
 0xc47   : > { %2341 = vmatmul.f32.vlgmr.msra.gmra.mxu3 %v825_v43 }
 0xc4f   : > { %2344 = vmatmul.f32.gmra.mxu3 %v828_v26 }
 0xcca   : > { %v2342_v4 = vpop.f32.mrf.mxu3 }
 0xccb   : > { %v2348_v3 = vmax.f32 %v2342_v4, 0.0 }
 0xcd2   : > { %v2345_v57 = vpop.f32.mrf.mxu3 }
 0xcd3   : > { %v2349_v2 = vmax.f32 %v2345_v57, 0.0 }
 0xcd5   : > { %2396 = vmatpush.msrb.mxu3 %v2349_v2  ;;  %v2432_v2 = vpop.permute.xlu1 %2431 }
 0xcd7   : > { %2397 = vmatpush.msrb.mxu3 %v2348_v3 }
 0xcd8   : > { %3509 = vmatmul.msk.f32.vlgmr.msrb.gmra.mxu3 %vm1296_vm2, %v3467_v55 }
 0xce0   : > { %3510 = vmatmul.msk.f32.gmra.mxu3 %vm1296_vm2, %v3468_v37 }
 0xce8   : > { %3511 = vmatmul.msk.f32.gmra.mxu3 %vm1296_vm2, %v3469_v24 }
 0xcf0   : > { %3512 = vmatmul.msk.f32.gmra.mxu3 %vm1296_vm2, %v3470_v6 }
 0xd5b   : > { %v2399_v19 = vpop.f32.mrf.mxu3 }
 0xd5c   : > { %v2400_v31 = vadd.f32 %v2399_v19, %v2353_v11 }
 0xd5e   : > { %v2411_v45 = vmul.f32 %v4915_v40, %v2400_v31 }
 0xd60   : > { %v2415_v47 = vadd.f32 %v2411_v45, %v4683_v54  ;;  %v3478_v54 = vld [vmem:[%s5346_s16 + $0x38] sm:$0xff] }
 0xd63   : > { %v2402_v49 = vpop.f32.mrf.mxu3 }
 0xd64   : > { %v2403_v41 = vadd.f32 %v2402_v49, %v2358_v12  ;;  %v2422_v49 = vpop.permute.xlu1 %2421  ;;  %v3521_v12 = vld [vmem:[%s5339_s9 + $0x40] sm:$0xff] }
 0xd66   : > { %v2412_v38 = vmul.f32 %v4915_v40, %v2403_v41 }
 0xd68   : > { %v2416_v59 = vadd.f32 %v2412_v38, %v4689_v62  ;;  %v2437_v62 = vpop.permute.xlu0 %2436 }
 0xd6b   : > { %v2405_v39 = vpop.f32.mrf.mxu3 }
 0xd6c   : > { %v2406_v61 = vadd.f32 %v2405_v39, %v2363_v51 }
 0xd6e   : > { %v2413_v36 = vmul.f32 %v4915_v40, %v2406_v61  ;;  %v3522_v61 = vld [vmem:[%s5339_s9 + $0x48] sm:$0xff] }
 0xd70   : > { %v2417_v22 = vadd.f32 %v2413_v36, %v4680_v25  ;;  %v3477_v25 = vld [vmem:[%s5346_s16 + $0x30] sm:$0xff]  ;;  %v2427_v18 = vpop.permute.xlu0 %2426 }
 0xd73   : > { %v2408_v1 = vpop.f32.mrf.mxu3 }
 0xd74   : > { %v2409_v50 = vadd.f32 %v2408_v1, %v2368_v63  ;;  %v3550_v1 = vsel %vm2531_vm6, 1.0, %v5419_v21 }
 0xd76   : > { %v2414_v15 = vmul.f32 %v4915_v40, %v2409_v50 }
 0xd78   : > { %v2418_v35 = vadd.f32 %v2414_v15, %v4685_v32  ;;  %v3476_v32 = vld [vmem:[%s5346_s16 + $0x28] sm:$0xff] }
 0xd7a   : > { %2463 = vmatpush.msra.mxu0 %v2418_v35 }
 0xd7c   : > { %2464 = vmatpush.msra.mxu0 %v2417_v22  ;;  %v3549_v22 = vsel %vm2528_vm7, 1.0, %v5419_v21  ;;  %v3518_v21 = vld [vmem:[%s5338_s8 + $0x48] sm:$0xff] }
 0xd7e   : > { %2465 = vmatpush.msra.mxu0 %v2416_v59 }
 0xd80   : > { %2466 = vmatpush.msra.mxu0 %v2415_v47 }
 0xd81   : > { %3513 = vmatmul.msk.f32.vlgmr.msra.gmra.mxu0 %vm782_vm5, %v3475_v9 }
 0xd89   : > { %3514 = vmatmul.msk.f32.gmra.mxu0 %vm782_vm5, %v3476_v32 }
 0xd91   : > { %3515 = vmatmul.msk.f32.gmra.mxu0 %vm782_vm5, %v3477_v25 }
 0xd99   : > { %3516 = vmatmul.msk.f32.gmra.mxu0 %vm782_vm5, %v3478_v54 }
 0xdfe   : > { %v2468_v43 = vpop.f32.mrf.mxu0 }
 0xdff   : > { %v2469_v63 = vadd.f32 %v2468_v43, %v2422_v49  ;;  %v3519_v43 = vld [vmem:[%s5338_s8 + $0x50] sm:$0xff] }
 0xe06   : > { %v2471_v8 = vpop.f32.mrf.mxu0 }
 0xe07   : > { %v2472_v26 = vadd.f32 %v2471_v8, %v2427_v18  ;;  %v3520_v18 = vld [vmem:[%s5338_s8 + $0x58] sm:$0xff] }
 0xe09   : > { %v2481_v4 = vadd.f32 %v2472_v26, %v4637_v58 }
 0xe0b   : > { %v4943_v57 = vmul.f32 %v4915_v40, %v2481_v4 }
 0xe0d   : > { %2548 = vrot.lane.b32.xlu2 %v4943_v57, %s3925_s18 }
 0xe0e   : > { %v2474_v3 = vpop.f32.mrf.mxu0 }
 0xe0f   : > { %v2475_v55 = vadd.f32 %v2474_v3, %v2432_v2 }
 0xe11   : > { %v2482_v37 = vadd.f32 %v2475_v55, %v4625_v44  ;;  %v2480_v44 = vadd.f32 %v2469_v63, %v4630_v20  ;;  %v3523_v20 = vld [vmem:[%s5339_s9 + $0x50] sm:$0xff] }
 0xe13   : > { %v4948_v24 = vmul.f32 %v4915_v40, %v2482_v37  ;;  %v4959_v39 = vmul.f32 %v4915_v40, %v2480_v44 }
 0xe15   : > { %2550 = vrot.lane.b32.xlu1 %v4948_v24, %s3925_s18 }
 0xe16   : > { %v2477_v6 = vpop.f32.mrf.mxu0 }
 0xe17   : > { %v2478_v19 = vadd.f32 %v2477_v6, %v2437_v62 }
 0xe19   : > { %v2483_v58 = vadd.f32 %v2478_v19, %v4632_v23  ;;  %v3524_v23 = vld [vmem:[%s5339_s9 + $0x58] sm:$0xff] }
 0xe1b   : > { %v4953_v51 = vmul.f32 %v4915_v40, %v2483_v58 }
 0xe1d   : > { %2552 = vrot.lane.b32.xlu0 %v4953_v51, %s3925_s18  ;;  %2540 = vrot.lane.b32.xlu1 %v4953_v51, %s3926_s19 }
 0xe25   : > { %2536 = vrot.lane.b32.xlu1 %v4943_v57, %s3926_s19  ;;  %2546 = vrot.lane.b32.xlu0 %v4959_v39, %s3925_s18 }
 0xe2d   : > { %2575 = vperm.xlu1 %3657, %v3524_v23   ;;  %2538 = vrot.lane.b32.xlu0 %v4948_v24, %s3926_s19 }
 0xe35   : > { %2565 = vperm.xlu1 %3657, %v3522_v61   ;;  %2534 = vrot.lane.b32.xlu0 %v4959_v39, %s3926_s19  ;;  %s5443_s19 = sld [smem:[#allocation40_spill]] }
 0xe3b   : > { %s3264_s24 = scalar_lea.hbm %s5443_s19, %s3593_s22 }
 0xe3c   : > { %s3267_s27 = sshll.u32 %s3264_s24, 4  ;;  %s3268_s27 = int_to_ptr.hbm [resolvable:$true] %s3267_s27 }
 0xe3d   : > { %2570 = vperm.xlu0 %3656, %v3523_v20   ;;  %s3836_s28 = sshra.s32 %s3268_s27, 4  ;;  %s3837_s28 = int_to_ptr.hbm [resolvable:$true] %s3836_s28 }
 0xe3e   : > { %s3838_s23 = scalar_lea.hbm %s3837_s28, 32  ;;  %p3843_p0 = scmp.lt.s32.totalorder %s3837_s28, %s5443_s19 }
 0xe3f   : > { %p3839_p11 = scmp.ne.s32.totalorder %s3837_s28, %s3838_s23 }
 0xe41   : > { %p3840_p12 = pnand %p3839_p11, %p4067_p5 }
 0xe43   : > { %p3841_p13 = pneg %p3840_p12 }
 0xe45   : > { %2560 = vperm.xlu0 %3656, %v3521_v12  }
 0xe67   : > { %v2549_v31 = vpop.permute.xlu2 %2548 }
 0xe68   : > { %v2555_v15 = vmul.f32 %v3550_v1, %v2549_v31 }
 0xe87   : > { %v2551_v41 = vpop.permute.xlu1 %2550 }
 0xe88   : > { %v2556_v36 = vmul.f32 %v3550_v1, %v2551_v41 }
 0xe8f   : > { %v2553_v50 = vpop.permute.xlu0 %2552  ;;  %v2541_v45 = vpop.permute.xlu1 %2540 }
 0xe90   : > { %v2557_v11 = vmul.f32 %v3550_v1, %v2553_v50  ;;  %v2545_v47 = vmul.f32 %v3549_v22, %v2541_v45 }
 0xe92   : > { %2594 = vmatpush.msra.mxu3 %v2557_v11 }
 0xe94   : > { %2595 = vmatpush.msra.mxu3 %v2556_v36 }
 0xe96   : > { %2596 = vmatpush.msra.mxu3 %v2555_v15 }
 0xe97   : > { %v2547_v38 = vpop.permute.xlu0 %2546  ;;  %v2537_v9 = vpop.permute.xlu1 %2536 }
 0xe98   : > { %v2554_v35 = vmul.f32 %v3550_v1, %v2547_v38  ;;  %v2543_v25 = vmul.f32 %v3549_v22, %v2537_v9  ;;  %v5426_v1 = vld [vmem:[#allocation14_spill] sm:$0xff] }
 0xe9a   : > { %2597 = vmatpush.msra.mxu3 %v2554_v35 }
 0xe9c   : > { %2598 = vmatpush.msra.mxu3 %v4953_v51 }
 0xe9e   : > { %2599 = vmatpush.msra.mxu3 %v4948_v24 }
 0xe9f   : > { %v2539_v59 = vpop.permute.xlu0 %2538  ;;  %v2576_v37 = vpop.permute.xlu1 %2575 }
 0xea0   : > { %2600 = vmatpush.msra.mxu3 %v4943_v57  ;;  %v2544_v32 = vmul.f32 %v3549_v22, %v2539_v59 }
 0xea2   : > { %2601 = vmatpush.msra.mxu3 %v4959_v39 }
 0xea4   : > { %2602 = vmatpush.msra.mxu3 %v2545_v47 }
 0xea6   : > { %2603 = vmatpush.msra.mxu3 %v2544_v32 }
 0xea7   : > { %v2535_v54 = vpop.permute.xlu0 %2534  ;;  %v2566_v23 = vpop.permute.xlu1 %2565 }
 0xea8   : > { %v2542_v62 = vmul.f32 %v3549_v22, %v2535_v54  ;;  %2604 = vmatpush.msra.mxu3 %v2543_v25  ;;  %v3532_v54 = vld [vmem:[%s5341_s11 + $0x58] sm:$0xff] }
 0xeaa   : > { %2605 = vmatpush.msra.mxu3 %v2542_v62  ;;  %v3529_v62 = vld [vmem:[%s5341_s11 + $0x40] sm:$0xff] }
 0xeab   : > { %3551 = vmatmul.msk.f32.vlgmr.msra.gmra.mxu3 %vm988_vm3, %v3517_v28  ;;  %v3531_v28 = vld [vmem:[%s5341_s11 + $0x50] sm:$0xff] }
 0xeaf   : > { %v2571_v4 = vpop.permute.xlu0 %2570 }
 0xeb3   : > { %3552 = vmatmul.msk.f32.gmra.mxu3 %vm988_vm3, %v3518_v21  ;;  %v750_v21 = vld [vmem:[%s5343_s13 + $0x20] sm:$0xff] }
 0xeb7   : > { %v2561_v6 = vpop.permute.xlu0 %2560 }
 0xebb   : > { %3553 = vmatmul.msk.f32.gmra.mxu3 %vm988_vm3, %v3519_v43  ;;  %v3530_v43 = vld [vmem:[%s5341_s11 + $0x48] sm:$0xff] }
 0xec3   : > { %3554 = vmatmul.msk.f32.gmra.mxu3 %vm988_vm3, %v3520_v18  ;;  %v751_v18 = vld [vmem:[%s5343_s13 + $0x28] sm:$0xff] }
 0xf2e   : > { %v2607_v8 = vpop.f32.mrf.mxu3 }
 0xf2f   : > { %v2608_v19 = vadd.f32 %v2607_v8, %v2561_v6  ;;  %v3540_v8 = vld [vmem:[%s5345_s15 + $0x58] sm:$0xff]  ;;  %v3545_v6 = vld [vmem:[%s5347_s17 + $0x40] sm:$0xff] }
 0xf31   : > { %v5004_v63 = vmax.f32 %v2608_v19, 0.0  ;;  %v3202_v19 = vld [vmem:[%s5427_s7] sm:$0xff] }
 0xf36   : > { %v2610_v26 = vpop.f32.mrf.mxu3 }
 0xf37   : > { %v2611_v61 = vadd.f32 %v2610_v26, %v2566_v23  ;;  %v3539_v26 = vld [vmem:[%s5345_s15 + $0x50] sm:$0xff] }
 0xf39   : > { %v5010_v20 = vmax.f32 %v2611_v61, 0.0 }
 0xf3e   : > { %v2613_v2 = vpop.f32.mrf.mxu3 }
 0xf3f   : > { %v2614_v3 = vadd.f32 %v2613_v2, %v2571_v4  ;;  %v3538_v4 = vld [vmem:[%s5345_s15 + $0x48] sm:$0xff]  ;;  %v3537_v2 = vld [vmem:[%s5345_s15 + $0x40] sm:$0xff] }
 0xf41   : > { %v5001_v55 = vmax.f32 %v2614_v3, 0.0  ;;  %v3548_v3 = vld [vmem:[%s5347_s17 + $0x58] sm:$0xff] }
 0xf43   : > { %2627 = vadd.xlane.f32.xlu0 %v5001_v55 }
 0xf46   : > { %v2616_v58 = vpop.f32.mrf.mxu3 }
 0xf47   : > { %v2617_v49 = vadd.f32 %v2616_v58, %v2576_v37  ;;  %v3547_v37 = vld [vmem:[%s5347_s17 + $0x50] sm:$0xff] }
 0xf49   : > { %v5006_v44 = vmax.f32 %v2617_v49, 0.0 }
 0xf4b   : > { %2623 = vadd.xlane.f32.xlu0 %v5004_v63  ;;  %2629 = vadd.xlane.f32.xlu1 %v5006_v44 }
 0xf53   : > { %2625 = vadd.xlane.f32.xlu1 %v5010_v20 }
 0xfb6   : > { %v2628_v12 = vpop.xlane.xlu0 %2627 }
 0xfb7   : > { %v2633_v41 = vmul.f32 %v2628_v12, %v5426_v1 }
 0xfb9   : > { %v5015_v50 = vsub.f32 %v5001_v55, %v2633_v41 }
 0xfbb   : > { %v2641_v11 = vmul.f32 %v5015_v50, %v5015_v50 }
 0xfbd   : > { %2647 = vadd.xlane.f32.xlu0 %v2641_v11 }
 0xfbe   : > { %v2624_v31 = vpop.xlane.xlu0 %2623  ;;  %v2630_v36 = vpop.xlane.xlu1 %2629 }
 0xfbf   : > { %v2631_v15 = vmul.f32 %v2624_v31, %v5426_v1  ;;  %v2634_v38 = vmul.f32 %v2630_v36, %v5426_v1 }
 0xfc1   : > { %v5022_v35 = vsub.f32 %v5004_v63, %v2631_v15  ;;  %v5025_v45 = vsub.f32 %v5006_v44, %v2634_v38 }
 0xfc3   : > { %v2639_v22 = vmul.f32 %v5022_v35, %v5022_v35  ;;  %v2642_v59 = vmul.f32 %v5025_v45, %v5025_v45 }
 0xfc5   : > { %2643 = vadd.xlane.f32.xlu0 %v2639_v22  ;;  %2649 = vadd.xlane.f32.xlu1 %v2642_v59 }
 0xfc6   : > { %v2626_v47 = vpop.xlane.xlu1 %2625 }
 0xfc7   : > { %v2632_v9 = vmul.f32 %v2626_v47, %v5426_v1 }
 0xfc9   : > { %v5033_v32 = vsub.f32 %v5010_v20, %v2632_v9 }
 0xfcb   : > { %v2640_v25 = vmul.f32 %v5033_v32, %v5033_v32 }
 0xfcd   : > { %2645 = vadd.xlane.f32.xlu1 %v2640_v25 }
 0xfd9   : > { %2720 = vperm.xlu0 %3656, %v3532_v54  }
 0xfe1   : > { %2705 = vperm.xlu0 %3656, %v3529_v62  }
 0xfe6   : > { %2715 = vperm.xlu1 %3657, %v3531_v28  }
 0xfe9   : > { %774 = vperm.xlu0 %3656, %v750_v21  }
 0xfee   : > { %2710 = vperm.xlu1 %3657, %v3530_v43  }
 0xff1   : > { %779 = vperm.xlu0 %3656, %v751_v18  }
 0xff9   : > { %3076 = vperm.xlu0 %3656, %v3540_v8  }
0x1001   : > { %3071 = vperm.xlu0 %3656, %v3539_v26  }
0x1009   : > { %3066 = vperm.xlu0 %3656, %v3538_v4  }
0x1011   : > { %3061 = vperm.xlu0 %3656, %v3537_v2  }
0x1019   : > { %3145 = vperm.xlu0 %3656, %v3548_v3  }
0x1021   : > { %3140 = vperm.xlu0 %3656, %v3547_v37  }
0x1029   : > { %3130 = vperm.xlu0 %3656, %v3545_v6  }
0x1030   : > { %v2648_v58 = vpop.xlane.xlu0 %2647 }
0x1031   : > { %v2653_v49 = vmul.f32 %v2648_v58, %v5426_v1  ;;  %3205 = vperm.xlu0 %3656, %v3202_v19  }
0x1033   : > { %v2657_v23 = vadd.f32 1e-05, %v2653_v49 }
0x1035   : > { %3778 = vrsqrt.f32 %v2657_v23  ;;  %vm2685_vm9 = vweird.f32 %v2657_v23 }
0x1038   : > { %v2644_v61 = vpop.xlane.xlu0 %2643  ;;  %v2650_v12 = vpop.xlane.xlu1 %2649 }
0x1039   : > { %v2651_v41 = vmul.f32 %v2644_v61, %v5426_v1  ;;  %v2654_v11 = vmul.f32 %v2650_v12, %v5426_v1 }
0x103b   : > { %v3779_v31 = vpop.eup %3778  ;;  %v2655_v36 = vadd.f32 1e-05, %v2651_v41  ;;  %v2658_v15 = vadd.f32 1e-05, %v2654_v11 }
0x103c   : > { %v2680_v38 = vmul.f32 %v3779_v31, %v2657_v23  ;;  %vm2686_vm3 = vweird.f32 %v3779_v31 }
0x103d   : > { %3780 = vrsqrt.f32 %v2655_v36  ;;  %vm2687_vm10 = vmor %vm2685_vm9, %vm2686_vm3  ;;  %vm2695_vm11 = vweird.f32 %v2658_v15  ;;  %vm2665_vm15 = vweird.f32 %v2655_v36 }
0x103e   : > { %3782 = vrsqrt.f32 %v2658_v15  ;;  %v2681_v22 = vmul.f32 %v3779_v31, %v2680_v38 }
0x1040   : > { %v2646_v59 = vpop.xlane.xlu1 %2645  ;;  %v2682_v25 = vmul.f32 0.5, %v2681_v22 }
0x1041   : > { %v2652_v47 = vmul.f32 %v2646_v59, %v5426_v1 }
0x1042   : > { %v2683_v18 = vsub.f32 1.5, %v2682_v25 }
0x1043   : > { %v3781_v9 = vpop.eup %3780  ;;  %v2656_v54 = vadd.f32 1e-05, %v2652_v47  ;;  %v3525_v47 = vld [vmem:[%s5340_s10 + $0x40] sm:$0xff] }
0x1044   : > { %v3783_v62 = vpop.eup %3782  ;;  %v2660_v28 = vmul.f32 %v3781_v9, %v2655_v36  ;;  %v2684_v37 = vmul.f32 %v3779_v31, %v2683_v18  ;;  %vm2666_vm13 = vweird.f32 %v3781_v9 }
0x1045   : > { %v2690_v21 = vmul.f32 %v3783_v62, %v2658_v15  ;;  %3784 = vrsqrt.f32 %v2656_v54  ;;  %vm2696_vm8 = vweird.f32 %v3783_v62  ;;  %vm2667_vm0 = vmor %vm2665_vm15, %vm2666_vm13  ;;  %vm2675_vm1 = vweird.f32 %v2656_v54 }
0x1046   : > { %v2661_v43 = vmul.f32 %v3781_v9, %v2660_v28  ;;  %vm2697_vm12 = vmor %vm2695_vm11, %vm2696_vm8  ;;  %v2688_v61 = vsel %vm2687_vm10, %v3779_v31, %v2684_v37 }
0x1047   : > { %v2691_v8 = vmul.f32 %v3783_v62, %v2690_v21  ;;  %v2701_v38 = vmul.f32 %v2688_v61, %v5015_v50  ;;  %v3526_v50 = vld [vmem:[%s5340_s10 + $0x48] sm:$0xff] }
0x1048   : > { %v2662_v4 = vmul.f32 0.5, %v2661_v43  ;;  %v3546_v61 = vld [vmem:[%s5347_s17 + $0x48] sm:$0xff] }
0x1049   : > { %v2692_v26 = vmul.f32 0.5, %v2691_v8 }
0x104a   : > { %v2663_v19 = vsub.f32 1.5, %v2662_v4 }
0x104b   : > { %v3785_v2 = vpop.eup %3784  ;;  %v2693_v3 = vsub.f32 1.5, %v2692_v26  ;;  %v2721_v36 = vpop.permute.xlu0 %2720 }
0x104c   : > { %v2670_v6 = vmul.f32 %v3785_v2, %v2656_v54  ;;  %vm2676_vm14 = vweird.f32 %v3785_v2  ;;  %v2664_v22 = vmul.f32 %v3781_v9, %v2663_v19 }
0x104d   : > { %v2694_v1 = vmul.f32 %v3783_v62, %v2693_v3  ;;  %vm2677_vm4 = vmor %vm2675_vm1, %vm2676_vm14 }
0x104e   : > { %v2671_v58 = vmul.f32 %v3785_v2, %v2670_v6  ;;  %v2668_v59 = vsel %vm2667_vm0, %v3781_v9, %v2664_v22 }
0x104f   : > { %v2698_v49 = vsel %vm2697_vm12, %v3783_v62, %v2694_v1 }
0x1050   : > { %v2672_v12 = vmul.f32 0.5, %v2671_v58  ;;  %v2702_v41 = vmul.f32 %v2698_v49, %v5025_v45  ;;  %v2699_v45 = vmul.f32 %v2668_v59, %v5022_v35  ;;  %v3528_v35 = vld [vmem:[%s5340_s10 + $0x58] sm:$0xff] }
0x1052   : > { %v2673_v11 = vsub.f32 1.5, %v2672_v12  ;;  %2747 = vmatpush.msrb.mxu0 %v2702_v41 }
0x1053   : > { %v2706_v54 = vpop.permute.xlu0 %2705 }
0x1054   : > { %2748 = vmatpush.msrb.mxu0 %v2701_v38  ;;  %v2674_v23 = vmul.f32 %v3785_v2, %v2673_v11 }
0x1056   : > { %v2678_v15 = vsel %vm2677_vm4, %v3785_v2, %v2674_v23 }
0x1057   : > { %v2700_v31 = vmul.f32 %v2678_v15, %v5033_v32  ;;  %v3527_v32 = vld [vmem:[%s5340_s10 + $0x50] sm:$0xff] }
0x1058   : > { %v2716_v9 = vpop.permute.xlu1 %2715 }
0x1059   : > { %2749 = vmatpush.msrb.mxu0 %v2700_v31 }
0x105b   : > { %2750 = vmatpush.msrb.mxu0 %v2699_v45 }
0x105c   : > { %3555 = vmatmul.msk.f32.vlgmr.msrb.gmra.mxu0 %vm782_vm5, %v3525_v47 }
0x1060   : > { %v2711_v62 = vpop.permute.xlu1 %2710 }
0x1064   : > { %3556 = vmatmul.msk.f32.gmra.mxu0 %vm782_vm5, %v3526_v50 }
0x106c   : > { %3557 = vmatmul.msk.f32.gmra.mxu0 %vm782_vm5, %v3527_v32 }
0x1074   : > { %3558 = vmatmul.msk.f32.gmra.mxu0 %vm782_vm5, %v3528_v35 }
0x10d9   : > { %v2752_v25 = vpop.f32.mrf.mxu0 }
0x10da   : > { %v2753_v21 = vadd.f32 %v2752_v25, %v2706_v54 }
0x10dc   : > { %v2764_v8 = vmul.f32 0.25, %v2753_v21 }
0x10e1   : > { %v2755_v28 = vpop.f32.mrf.mxu0 }
0x10e2   : > { %v2756_v43 = vadd.f32 %v2755_v28, %v2711_v62 }
0x10e4   : > { %v2765_v18 = vmul.f32 0.25, %v2756_v43 }
0x10e6   : > { %2860 = vmatpush.msrb.mxu1 %v2765_v18 }
0x10e8   : > { %2861 = vmatpush.msrb.mxu1 %v2764_v8  ;;  %v5428_v8 = vld [vmem:[#allocation16_spill] sm:$0xff] }
0x10e9   : > { %v2758_v26 = vpop.f32.mrf.mxu0 }
0x10ea   : > { %v2759_v4 = vadd.f32 %v2758_v26, %v2716_v9 }
0x10ec   : > { %2766 = vxpose.xlu1.b32.start [1/2] (short) %v2759_v4, 128  ;;  %v5429_v4 = vld [vmem:[#allocation20_spill] sm:$0xff] }
0x10f1   : > { %v2761_v2 = vpop.f32.mrf.mxu0 }
0x10f2   : > { %v2762_v3 = vadd.f32 %v2761_v2, %v2721_v36 }
0x10f4   : > { %2767 = vxpose.xlu1.b32.end [2/2] (short) %v2762_v3, 128 }
0x1190   : > { %v2782_v37 = vpop.trf.xlu1 }
0x1191   : > { %3559 = vmatmul.msk.f32.vlgmr.msrb.gmra.mxu1 %vm1296_vm2, %v2782_v37 }
0x1198   : > { %v2783_v6 = vpop.trf.xlu1 }
0x1199   : > { %3560 = vmatmul.msk.f32.gmra.mxu1 %vm1296_vm2, %v2783_v6 }
0x11a0   : > { %v2784_v1 = vpop.trf.xlu1 }
0x11a1   : > { %3561 = vmatmul.msk.f32.gmra.mxu1 %vm1296_vm2, %v2784_v1 }
0x11a8   : > { %v2785_v19 = vpop.trf.xlu1 }
0x11a9   : > { %3562 = vmatmul.msk.f32.gmra.mxu1 %vm1296_vm2, %v2785_v19 }
0x11b0   : > { %v2786_v58 = vpop.trf.xlu1 }
0x11b1   : > { %3563 = vmatmul.msk.f32.gmra.mxu1 %vm1296_vm2, %v2786_v58 }
0x11b8   : > { %v2787_v49 = vpop.trf.xlu1 }
0x11b9   : > { %3564 = vmatmul.msk.f32.gmra.mxu1 %vm1296_vm2, %v2787_v49 }
0x11be   : > { %3135 = vperm.xlu1 %3657, %v3546_v61   ;;  %v5431_v61 = vld [vmem:[#allocation24_spill] sm:$0xff] }
0x11c0   : > { %v2788_v12 = vpop.trf.xlu1 }
0x11c1   : > { %3565 = vmatmul.msk.f32.gmra.mxu1 %vm1296_vm2, %v2788_v12 }
0x11c8   : > { %v2789_v41 = vpop.trf.xlu1 }
0x11c9   : > { %3566 = vmatmul.msk.f32.gmra.mxu1 %vm1296_vm2, %v2789_v41 }
0x11d0   : > { %v2790_v11 = vpop.trf.xlu1 }
0x11d1   : > { %3567 = vmatmul.msk.f32.gmra.mxu1 %vm1296_vm2, %v2790_v11 }
0x11d8   : > { %v2791_v38 = vpop.trf.xlu1 }
0x11d9   : > { %3568 = vmatmul.msk.f32.gmra.mxu1 %vm1296_vm2, %v2791_v38 }
0x11e0   : > { %v2792_v22 = vpop.trf.xlu1 }
0x11e1   : > { %3569 = vmatmul.msk.f32.gmra.mxu1 %vm1296_vm2, %v2792_v22  ;;  %v5433_v22 = vld [vmem:[#allocation27_spill] sm:$0xff] }
0x11e8   : > { %v2793_v23 = vpop.trf.xlu1 }
0x11e9   : > { %3570 = vmatmul.msk.f32.gmra.mxu1 %vm1296_vm2, %v2793_v23 }
0x11f0   : > { %v2794_v15 = vpop.trf.xlu1 }
0x11f1   : > { %3571 = vmatmul.msk.f32.gmra.mxu1 %vm1296_vm2, %v2794_v15 }
0x11f8   : > { %v2795_v59 = vpop.trf.xlu1 }
0x11f9   : > { %3572 = vmatmul.msk.f32.gmra.mxu1 %vm1296_vm2, %v2795_v59 }
0x1200   : > { %v2796_v31 = vpop.trf.xlu1 }
0x1201   : > { %3573 = vmatmul.msk.f32.gmra.mxu1 %vm1296_vm2, %v2796_v31 }
0x1208   : > { %v2797_v45 = vpop.trf.xlu1 }
0x1209   : > { %3574 = vmatmul.msk.f32.gmra.mxu1 %vm1296_vm2, %v2797_v45 }
0x120e   : > { %v2863_v47 = vpop.f32.mrf.mxu1 }
0x120f   : > { %v2864_v9 = vadd.f32 %v2863_v47, %v4395_v14  ;;  %v5434_v47 = vld [vmem:[#allocation22_spill] sm:$0xff] }
0x1216   : > { %v2866_v50 = vpop.f32.mrf.mxu1 }
0x1217   : > { %v2867_v28 = vadd.f32 %v2866_v50, %v4399_v52 }
0x121e   : > { %v2869_v32 = vpop.f32.mrf.mxu1 }
0x121f   : > { %v2870_v26 = vadd.f32 %v2869_v32, %v5428_v8  ;;  %v5435_v32 = vld [vmem:[#allocation18_spill] sm:$0xff] }
0x1220   : > { %v5437_v8 = vld [vmem:[#allocation26_spill] sm:$0xff] }
0x1226   : > { %v2872_v35 = vpop.f32.mrf.mxu1 }
0x122e   : > { %v2875_v36 = vpop.f32.mrf.mxu1 }
0x122f   : > { %v2876_v25 = vadd.f32 %v2875_v36, %v4407_v7  ;;  %v5430_v7 = vld [vmem:[#allocation23_spill] sm:$0xff]  ;;  %v2873_v36 = vadd.f32 %v2872_v35, %v5435_v32 }
0x1231   : > { %v2911_v54 = vmax.f32 %v2864_v9, %v2876_v25 }
0x1236   : > { %v2878_v62 = vpop.f32.mrf.mxu1 }
0x1237   : > { %v2879_v21 = vadd.f32 %v2878_v62, %v4411_v13  ;;  %v5432_v13 = vld [vmem:[#allocation29_spill] sm:$0xff] }
0x1238   : > { %v5436_v62 = vld [vmem:[#allocation25_spill] sm:$0xff] }
0x1239   : > { %v2912_v43 = vmax.f32 %v2867_v28, %v2879_v21 }
0x123e   : > { %v2881_v18 = vpop.f32.mrf.mxu1 }
0x123f   : > { %v2882_v2 = vadd.f32 %v2881_v18, %v5429_v4 }
0x1241   : > { %v2913_v3 = vmax.f32 %v2870_v26, %v2882_v2 }
0x1246   : > { %v2884_v37 = vpop.f32.mrf.mxu1 }
0x1247   : > { %v2885_v50 = vadd.f32 %v2884_v37, %v5434_v47 }
0x124e   : > { %v2887_v6 = vpop.f32.mrf.mxu1 }
0x124f   : > { %v5129_v49 = vadd.f32 %v2887_v6, %v5430_v7 }
0x1251   : > { %v2915_v11 = vmax.f32 %v2911_v54, %v5129_v49  ;;  %v2914_v54 = vmax.f32 %v2873_v36, %v2885_v50 }
0x1256   : > { %v2890_v1 = vpop.f32.mrf.mxu1 }
0x1257   : > { %v5132_v52 = vadd.f32 %v2890_v1, %v5431_v61  ;;  %v5439_v61 = vld [vmem:[#allocation30_spill] sm:$0xff] }
0x1259   : > { %v2916_v38 = vmax.f32 %v2912_v43, %v5132_v52  ;;  %v5438_v43 = vld [vmem:[#allocation28_spill] sm:$0xff] }
0x125e   : > { %v2893_v19 = vpop.f32.mrf.mxu1 }
0x125f   : > { %v2894_v18 = vadd.f32 %v2893_v19, %v5436_v62 }
0x1266   : > { %v2896_v14 = vpop.f32.mrf.mxu1 }
0x1267   : > { %v5148_v4 = vadd.f32 %v2896_v14, %v5437_v8 }
0x1269   : > { %v2918_v7 = vmax.f32 %v2914_v54, %v5148_v4 }
0x126e   : > { %v2899_v58 = vpop.f32.mrf.mxu1 }
0x126f   : > { %v5135_v12 = vadd.f32 %v2899_v58, %v5432_v13  ;;  %v2917_v58 = vmax.f32 %v2913_v3, %v2894_v18 }
0x1271   : > { %v2919_v15 = vmax.f32 %v2915_v11, %v5135_v12 }
0x1276   : > { %v2902_v41 = vpop.f32.mrf.mxu1 }
0x1277   : > { %v5140_v23 = vadd.f32 %v2902_v41, %v5433_v22 }
0x1279   : > { %v2920_v59 = vmax.f32 %v2916_v38, %v5140_v23 }
0x127b   : > { %v2923_v31 = vmax.f32 %v2919_v15, %v2920_v59 }
0x127e   : > { %v2905_v45 = vpop.f32.mrf.mxu1 }
0x127f   : > { %v5151_v6 = vadd.f32 %v2905_v45, %v5438_v43 }
0x1281   : > { %v2921_v37 = vmax.f32 %v2917_v58, %v5151_v6 }
0x1286   : > { %v2908_v1 = vpop.f32.mrf.mxu1 }
0x1287   : > { %v5155_v13 = vadd.f32 %v2908_v1, %v5439_v61 }
0x1289   : > { %v2922_v35 = vmax.f32 %v2918_v7, %v5155_v13 }
0x128b   : > { %v2924_v41 = vmax.f32 %v2921_v37, %v2922_v35 }
0x128d   : > { %v2925_v19 = vmax.f32 %v2923_v31, %v2924_v41 }
0x128f   : > { %v2926_v11 = vrot.slane %v2925_v19, 4 }
0x1291   : > { %v2927_v14 = vmax.f32 %v2925_v19, %v2926_v11 }
0x1293   : > { %v2928_v38 = vrot.slane %v2927_v14, 2 }
0x1295   : > { %v2929_v22 = vmax.f32 %v2927_v14, %v2928_v38 }
0x1297   : > { %v2930_v15 = vrot.slane %v2929_v22, 1 }
0x1299   : > { %v5159_v59 = vmax.f32 %v2929_v22, %v2930_v15 }
0x129b   : > { %v2932_v3 = vsub.f32 %v2864_v9, %v5159_v59  ;;  %v2933_v45 = vsub.f32 %v2867_v28, %v5159_v59  ;;  %v2934_v47 = vsub.f32 %v2870_v26, %v5159_v59  ;;  %v2935_v32 = vsub.f32 %v2873_v36, %v5159_v59 }
0x129c   : > { %v2936_v62 = vsub.f32 %v2876_v25, %v5159_v59  ;;  %v2937_v8 = vsub.f32 %v2879_v21, %v5159_v59  ;;  %v2938_v31 = vsub.f32 %v2882_v2, %v5159_v59  ;;  %v2939_v28 = vsub.f32 %v2885_v50, %v5159_v59 }
0x129d   : > { %v2948_v54 = vmul.f32 1.442695, %v2932_v3  ;;  %v2950_v43 = vmul.f32 1.442695, %v2933_v45  ;;  %v2952_v1 = vmul.f32 1.442695, %v2934_v47  ;;  %v2940_v25 = vsub.f32 %v5129_v49, %v5159_v59 }
0x129e   : > { %v2954_v58 = vmul.f32 1.442695, %v2935_v32  ;;  %v2956_v9 = vmul.f32 1.442695, %v2936_v62  ;;  %v2958_v26 = vmul.f32 1.442695, %v2937_v8  ;;  %v2941_v37 = vsub.f32 %v5132_v52, %v5159_v59 }
0x129f   : > { %3786 = vpow2.f32 %v2948_v54  ;;  %v2960_v21 = vmul.f32 1.442695, %v2938_v31  ;;  %v2962_v50 = vmul.f32 1.442695, %v2939_v28  ;;  %v2942_v19 = vsub.f32 %v2894_v18, %v5159_v59 }
0x12a0   : > { %3788 = vpow2.f32 %v2950_v43  ;;  %v2964_v49 = vmul.f32 1.442695, %v2940_v25  ;;  %v2943_v38 = vsub.f32 %v5148_v4, %v5159_v59  ;;  %v2966_v22 = vmul.f32 1.442695, %v2941_v37 }
0x12a1   : > { %3790 = vpow2.f32 %v2952_v1  ;;  %v2944_v3 = vsub.f32 %v5135_v12, %v5159_v59  ;;  %v2968_v45 = vmul.f32 1.442695, %v2942_v19  ;;  %v2945_v32 = vsub.f32 %v5140_v23, %v5159_v59 }
0x12a2   : > { %3792 = vpow2.f32 %v2954_v58  ;;  %v2970_v62 = vmul.f32 1.442695, %v2943_v38  ;;  %v2946_v4 = vsub.f32 %v5151_v6, %v5159_v59  ;;  %v2947_v12 = vsub.f32 %v5155_v13, %v5159_v59 }
0x12a3   : > { %3794 = vpow2.f32 %v2956_v9  ;;  %v2972_v54 = vmul.f32 1.442695, %v2944_v3  ;;  %v2974_v58 = vmul.f32 1.442695, %v2945_v32 }
0x12a4   : > { %3796 = vpow2.f32 %v2958_v26  ;;  %v2976_v23 = vmul.f32 1.442695, %v2946_v4 }
0x12a5   : > { %v5169_v7 = vpop.eup %3786  ;;  %3798 = vpow2.f32 %v2960_v21  ;;  %v2978_v21 = vmul.f32 1.442695, %v2947_v12 }
0x12a6   : > { %v5171_v36 = vpop.eup %3788  ;;  %3800 = vpow2.f32 %v2962_v50 }
0x12a7   : > { %v2980_v2 = vadd.f32 %v5171_v36, %v5169_v7  ;;  %v5177_v61 = vpop.eup %3790  ;;  %3802 = vpow2.f32 %v2964_v49 }
0x12a8   : > { %v5182_v41 = vpop.eup %3792  ;;  %3804 = vpow2.f32 %v2966_v22 }
0x12a9   : > { %v2981_v35 = vadd.f32 %v5177_v61, %v2980_v2  ;;  %v5186_v14 = vpop.eup %3794  ;;  %3806 = vpow2.f32 %v2968_v45 }
0x12aa   : > { %v3797_v15 = vpop.eup %3796  ;;  %3808 = vpow2.f32 %v2970_v62 }
0x12ab   : > { %v2982_v11 = vadd.f32 %v5182_v41, %v2981_v35  ;;  %v3799_v47 = vpop.eup %3798  ;;  %3810 = vpow2.f32 %v2972_v54 }
0x12ac   : > { %v3801_v31 = vpop.eup %3800  ;;  %3812 = vpow2.f32 %v2974_v58 }
0x12ad   : > { %v2983_v52 = vadd.f32 %v5186_v14, %v2982_v11  ;;  %v3803_v1 = vpop.eup %3802  ;;  %3814 = vpow2.f32 %v2976_v23 }
0x12ae   : > { %v3805_v28 = vpop.eup %3804  ;;  %3816 = vpow2.f32 %v2978_v21 }
0x12af   : > { %v2984_v18 = vadd.f32 %v3797_v15, %v2983_v52  ;;  %v3807_v25 = vpop.eup %3806 }
0x12b0   : > { %v3809_v37 = vpop.eup %3808 }
0x12b1   : > { %v2985_v8 = vadd.f32 %v3799_v47, %v2984_v18  ;;  %v3811_v50 = vpop.eup %3810 }
0x12b2   : > { %v3813_v19 = vpop.eup %3812 }
0x12b3   : > { %v2986_v43 = vadd.f32 %v3801_v31, %v2985_v8  ;;  %v3815_v13 = vpop.eup %3814 }
0x12b4   : > { %v3817_v11 = vpop.eup %3816 }
0x12b5   : > { %v2987_v9 = vadd.f32 %v3803_v1, %v2986_v43 }
0x12b7   : > { %v2988_v26 = vadd.f32 %v3805_v28, %v2987_v9 }
0x12b9   : > { %v2989_v2 = vadd.f32 %v3807_v25, %v2988_v26 }
0x12bb   : > { %v2990_v6 = vadd.f32 %v3809_v37, %v2989_v2 }
0x12bd   : > { %v2991_v35 = vadd.f32 %v3811_v50, %v2990_v6 }
0x12bf   : > { %v2992_v49 = vadd.f32 %v3813_v19, %v2991_v35 }
0x12c1   : > { %v2993_v59 = vadd.f32 %v3815_v13, %v2992_v49 }
0x12c3   : > { %v2994_v38 = vadd.f32 %v3817_v11, %v2993_v59 }
0x12c5   : > { %v2995_v22 = vrot.slane %v2994_v38, 4 }
0x12c7   : > { %v2996_v52 = vadd.f32 %v2995_v22, %v2994_v38 }
0x12c9   : > { %v2997_v3 = vrot.slane %v2996_v52, 2 }
0x12cb   : > { %v2998_v45 = vadd.f32 %v2997_v3, %v2996_v52 }
0x12cd   : > { %v2999_v18 = vrot.slane %v2998_v45, 1 }
0x12cf   : > { %v3000_v32 = vadd.f32 %v2999_v18, %v2998_v45 }
0x12d1   : > { %3818 = vrcp.f32 %v3000_v32 }
0x12d7   : > { %v3819_v62 = vpop.eup %3818 }
0x12d8   : > { %v3017_v8 = vmul.f32 %v3819_v62, %v3817_v11  ;;  %v3016_v4 = vmul.f32 %v3819_v62, %v3815_v13  ;;  %v3015_v54 = vmul.f32 %v3819_v62, %v3813_v19  ;;  %v3014_v43 = vmul.f32 %v3819_v62, %v3811_v50  ;;  %v3536_v19 = vld [vmem:[%s5344_s14 + $0x58] sm:$0xff] }
0x12d9   : > { %v3013_v12 = vmul.f32 %v3819_v62, %v3809_v37  ;;  %v3012_v58 = vmul.f32 %v3819_v62, %v3807_v25  ;;  %v3011_v9 = vmul.f32 %v3819_v62, %v3805_v28  ;;  %v3010_v23 = vmul.f32 %v3819_v62, %v3803_v1 }
0x12da   : > { %v3033_v26 = vmul.f32 %v3017_v8, %v4493_v42  ;;  %v3032_v21 = vmul.f32 %v3016_v4, %v4516_v16  ;;  %v3009_v2 = vmul.f32 %v3819_v62, %v3801_v31  ;;  %v3008_v6 = vmul.f32 %v3819_v62, %v3799_v47  ;;  %v5441_v47 = vld [vmem:[#allocation15_spill] sm:$0xff] }
0x12db   : > { %v3007_v35 = vmul.f32 %v3819_v62, %v3797_v15  ;;  %v3006_v49 = vmul.f32 %v3819_v62, %v5186_v14  ;;  %v3005_v59 = vmul.f32 %v3819_v62, %v5182_v41  ;;  %v3004_v13 = vmul.f32 %v3819_v62, %v5177_v61  ;;  %v775_v61 = vpop.permute.xlu0 %774 }
0x12dc   : > { %3034 = vmatpush.msrb.mxu3 %v3033_v26  ;;  %v3003_v50 = vmul.f32 %v3819_v62, %v5171_v36  ;;  %v3002_v25 = vmul.f32 %v3819_v62, %v5169_v7  ;;  %v3031_v1 = vmul.f32 %v3015_v54, %v4523_v29  ;;  %v3030_v42 = vmul.f32 %v3014_v43, %v4535_v60 }
0x12dd   : > { %v3029_v16 = vmul.f32 %v3013_v12, %v4537_v34  ;;  %v3028_v14 = vmul.f32 %v3012_v58, %v4539_v27  ;;  %v3027_v41 = vmul.f32 %v3011_v9, %v4541_v56  ;;  %v3026_v36 = vmul.f32 %v3010_v23, %v4543_v46  ;;  %v5241_v58 = vld [vmem:[%s4089_s20] ss:$0 sm:$0xff] }
0x12de   : > { %3035 = vmatpush.msrb.mxu3 %v3032_v21  ;;  %v3025_v7 = vmul.f32 %v3009_v2, %v4545_v5  ;;  %v3024_v29 = vmul.f32 %v3008_v6, %v4547_v53  ;;  %v3023_v60 = vmul.f32 %v3007_v35, %v4549_v30  ;;  %v3022_v34 = vmul.f32 %v3006_v49, %v4554_v10  ;;  %v5440_v53 = vld [vmem:[#allocation21_spill] sm:$0xff] }
0x12df   : > { %v3021_v27 = vmul.f32 %v3005_v59, %v4557_v33  ;;  %v3020_v56 = vmul.f32 %v3004_v13, %v4565_v17  ;;  %v3019_v46 = vmul.f32 %v3003_v50, %v4569_v48  ;;  %v3018_v5 = vmul.f32 %v3002_v25, %v4579_v0  ;;  %v3533_v17 = vld [vmem:[%s5344_s14 + $0x40] sm:$0xff]  ;;  %v3534_v48 = vld [vmem:[%s5344_s14 + $0x48] sm:$0xff]  ;;  %v3535_v0 = vld [vmem:[%s5344_s14 + $0x50] sm:$0xff] }
0x12e0   : > { %3036 = vmatpush.msrb.mxu3 %v3031_v1  ;;  %v831_v15 = vadd.f32 %v5440_v53, %v775_v61  ;;  %v3136_v1 = vpop.permute.xlu1 %3135 }
0x12e2   : > { %3037 = vmatpush.msrb.mxu3 %v3030_v42 }
0x12e3   : > { %v780_v30 = vpop.permute.xlu0 %779 }
0x12e4   : > { %3038 = vmatpush.msrb.mxu3 %v3029_v16  ;;  %v834_v10 = vadd.f32 %v5441_v47, %v780_v30 }
0x12e6   : > { %3039 = vmatpush.msrb.mxu3 %v3028_v14 }
0x12e8   : > { %3040 = vmatpush.msrb.mxu3 %v3027_v41 }
0x12ea   : > { %3041 = vmatpush.msrb.mxu3 %v3026_v36 }
0x12eb   : > { %v3077_v11 = vpop.permute.xlu0 %3076 }
0x12ec   : > { %3042 = vmatpush.msrb.mxu3 %v3025_v7 }
0x12ee   : > { %3043 = vmatpush.msrb.mxu3 %v3024_v29 }
0x12f0   : > { %3044 = vmatpush.msrb.mxu3 %v3023_v60 }
0x12f2   : > { %3045 = vmatpush.msrb.mxu3 %v3022_v34 }
0x12f3   : > { %v3072_v22 = vpop.permute.xlu0 %3071 }
0x12f4   : > { %3046 = vmatpush.msrb.mxu3 %v3021_v27 }
0x12f6   : > { %3047 = vmatpush.msrb.mxu3 %v3020_v56 }
0x12f8   : > { %3048 = vmatpush.msrb.mxu3 %v3019_v46 }
0x12fa   : > { %3049 = vmatpush.msrb.mxu3 %v3018_v5 }
0x12fb   : > { %3050 = vmatmul.f32.vlgmr.msrb.gmra.mxu3 %v831_v15  ;;  %v3067_v3 = vpop.permute.xlu0 %3066 }
0x1303   : > { %3053 = vmatmul.f32.gmra.mxu3 %v834_v10  ;;  %v3062_v4 = vpop.permute.xlu0 %3061 }
0x137e   : > { %v3051_v31 = vpop.f32.mrf.mxu3 }
0x137f   : > { %v3057_v37 = vmax.f32 %v3051_v31, 0.0 }
0x1386   : > { %v3054_v33 = vpop.f32.mrf.mxu3 }
0x1387   : > { %v3058_v28 = vmax.f32 %v3054_v33, 0.0 }
0x1389   : > { %3105 = vmatpush.msra.mxu0 %v3058_v28 }
0x138b   : > { %3106 = vmatpush.msra.mxu0 %v3057_v37 }
0x138c   : > { %3575 = vmatmul.msk.f32.vlgmr.msra.gmra.mxu0 %vm1296_vm2, %v3533_v17 }
0x1394   : > { %3576 = vmatmul.msk.f32.gmra.mxu0 %vm1296_vm2, %v3534_v48 }
0x139c   : > { %3577 = vmatmul.msk.f32.gmra.mxu0 %vm1296_vm2, %v3535_v0 }
0x13a4   : > { %3578 = vmatmul.msk.f32.gmra.mxu0 %vm1296_vm2, %v3536_v19 }
0x1409   : > { %v3108_v38 = vpop.f32.mrf.mxu0 }
0x140a   : > { %v3109_v54 = vadd.f32 %v3108_v38, %v3062_v4 }
0x140c   : > { %v3120_v26 = vmul.f32 %v5241_v58, %v3109_v54 }
0x140e   : > { %v3124_v6 = vadd.f32 %v3120_v26, %v5004_v63  ;;  %v3544_v63 = vld [vmem:[%s5346_s16 + $0x58] sm:$0xff] }
0x1411   : > { %v3111_v52 = vpop.f32.mrf.mxu0 }
0x1412   : > { %v3112_v62 = vadd.f32 %v3111_v52, %v3067_v3 }
0x1414   : > { %v3121_v9 = vmul.f32 %v5241_v58, %v3112_v62 }
0x1416   : > { %v3125_v2 = vadd.f32 %v3121_v9, %v5010_v20  ;;  %v3146_v20 = vpop.permute.xlu0 %3145 }
0x1419   : > { %v3114_v45 = vpop.f32.mrf.mxu0 }
0x141a   : > { %v3115_v18 = vadd.f32 %v3114_v45, %v3072_v22 }
0x141c   : > { %v3122_v43 = vmul.f32 %v4915_v40, %v3115_v18 }
0x141e   : > { %v3126_v21 = vadd.f32 %v3122_v43, %v5001_v55  ;;  %v3543_v55 = vld [vmem:[%s5346_s16 + $0x50] sm:$0xff]  ;;  %v3141_v35 = vpop.permute.xlu0 %3140 }
0x1421   : > { %v3117_v32 = vpop.f32.mrf.mxu0 }
0x1422   : > { %v3118_v8 = vadd.f32 %v3117_v32, %v3077_v11 }
0x1424   : > { %v3123_v12 = vmul.f32 %v4915_v40, %v3118_v8  ;;  %v3541_v40 = vld [vmem:[%s5346_s16 + $0x40] sm:$0xff] }
0x1426   : > { %v3127_v23 = vadd.f32 %v3123_v12, %v5006_v44  ;;  %v3542_v44 = vld [vmem:[%s5346_s16 + $0x48] sm:$0xff]  ;;  %v3131_v49 = vpop.permute.xlu0 %3130 }
0x1428   : > { %3172 = vmatpush.msra.mxu3 %v3127_v23 }
0x142a   : > { %3173 = vmatpush.msra.mxu3 %v3126_v21 }
0x142c   : > { %3174 = vmatpush.msra.mxu3 %v3125_v2 }
0x142e   : > { %3175 = vmatpush.msra.mxu3 %v3124_v6 }
0x142f   : > { %3579 = vmatmul.msk.f32.vlgmr.msra.gmra.mxu3 %vm782_vm5, %v3541_v40 }
0x1437   : > { %3580 = vmatmul.msk.f32.gmra.mxu3 %vm782_vm5, %v3542_v44 }
0x143f   : > { %3581 = vmatmul.msk.f32.gmra.mxu3 %vm782_vm5, %v3543_v55 }
0x1447   : > { %3582 = vmatmul.msk.f32.gmra.mxu3 %vm782_vm5, %v3544_v63 }
0x14b2   : > { %v3177_v59 = vpop.f32.mrf.mxu3 }
0x14b3   : > { %v3178_v13 = vadd.f32 %v3177_v59, %v3131_v49 }
0x14b5   : > { %v3189_v50 = vadd.f32 %v3178_v13, %v4959_v39 }
0x14b7   : > { %v3193_v25 = vmul.f32 %v5241_v58, %v3189_v50 }
0x14b9   : > { %3197 = vst [vmem:[%s647_s21] sm:$0xff] %v3193_v25 }
0x14ba   : > { %v3180_v42 = vpop.f32.mrf.mxu3 }
0x14bb   : > { %v3181_v16 = vadd.f32 %v3180_v42, %v3136_v1 }
0x14bd   : > { %v3190_v14 = vadd.f32 %v3181_v16, %v4943_v57  ;;  %v3201_v57 = vld [vmem:[%s5442_s6] sm:$0xff] }
0x14bf   : > { %v3194_v41 = vmul.f32 %v5241_v58, %v3190_v14 }
0x14c1   : > { %3198 = vst [vmem:[%s647_s21 + $0x8] sm:$0xff] %v3194_v41 }
0x14c2   : > { %v3183_v36 = vpop.f32.mrf.mxu3 }
0x14c3   : > { %v3184_v7 = vadd.f32 %v3183_v36, %v3141_v35 }
0x14c5   : > { %v3191_v29 = vadd.f32 %v3184_v7, %v4948_v24 }
0x14c7   : > { %v3195_v60 = vmul.f32 %v5241_v58, %v3191_v29 }
0x14c9   : > { %3199 = vst [vmem:[%s647_s21 + $0x10] sm:$0xff] %v3195_v60 }
0x14ca   : > { %v3186_v39 = vpop.f32.mrf.mxu3 }
0x14cb   : > { %v3187_v34 = vadd.f32 %v3186_v39, %v3146_v20 }
0x14cd   : > { %v3192_v27 = vadd.f32 %v3187_v34, %v4953_v51 }
0x14cf   : > { %v3196_v61 = vmul.f32 %v5241_v58, %v3192_v27 }
0x14d1   : > { %3200 = vst [vmem:[%s647_s21 + $0x18] sm:$0xff] %v3196_v61  ;;  %3223 = vmatpush.msra.mxu2 %v3196_v61  ;;  %s3842_s21 = scalar_lea.hbm %s5443_s19, 64 }
0x14d2   : > { %p3844_p1 = scmp.lt.s32.totalorder %s3842_s21, %s3838_s23 }
0x14d3   : > { %3224 = vmatpush.msra.mxu2 %v3195_v60 }
0x14d4   : > { %p3845_p2 = por %p3844_p1, %p3843_p0 }
0x14d5   : > { %3225 = vmatpush.msra.mxu2 %v3194_v41 }
0x14d6   : > { %p3846_p3 = pnand %p3845_p2, %p3841_p13 }
0x14d7   : > { %3226 = vmatpush.msra.mxu2 %v3193_v25 }
0x14d8   : > { %3583 = vmatmul.msk.f32.vlgmr.msra.gmra.mxu2 %vm782_vm5, %v3201_v57 }
0x14d9   : > { %3849 = shalt.err (!%p3846_p3)
}
0x14da   : > { %s3927_s22 = smov 128   ;;  %s3928_s18 = smov 8   ;;  %v3206_v24 = vpop.permute.xlu0 %3205 }
0x14db   : > { %3602 = dma.vmem_to_hbm [thread:$0]  (%p4067_p5), %s3266_s0, 512, %s3268_s27, %s3239_s29, %s3927_s22, %s3927_s22, %s3928_s18  }
0x14dc   : > { %s3400_s20 = sshll.u32 %s5266_s25, 3  ;;  %s3586_s24 = sshll.u32 %s4050_s1, 3 }
0x14dd   : > { %s5444_s6 = sld [smem:[#allocation39_spill]]  ;;  %s640_s4 = scalar_lea.vmem [#allocation2], %s3400_s20 }
0x14de   : > { %s3251_s5 = sshll.u32 %s640_s4, 4  ;;  %s3234_s23 = scalar_lea.sflag [#allocation3], %s5266_s25  ;;  %s3252_s5 = int_to_ptr.vmem [resolvable:$true] %s3251_s5 }
0x14e3   : > { %s3249_s7 = scalar_lea.hbm %s5444_s6, %s3586_s24  ;;  %s3870_s21 = scalar_lea.hbm %s5444_s6, 16 }
0x14e4   : > { %s3253_s28 = sshll.u32 %s3249_s7, 4  ;;  %s3254_s28 = int_to_ptr.hbm [resolvable:$true] %s3253_s28 }
0x14e5   : > { %s3864_s0 = sshra.s32 %s3254_s28, 4  ;;  %s3865_s0 = int_to_ptr.hbm [resolvable:$true] %s3864_s0 }
0x14e6   : > { %s3866_s1 = scalar_lea.hbm %s3865_s0, 8  ;;  %p3871_p9 = scmp.lt.s32.totalorder %s3865_s0, %s5444_s6 }
0x14e7   : > { %p3867_p4 = scmp.ne.s32.totalorder %s3865_s0, %s3866_s1  ;;  %p3872_p10 = scmp.lt.s32.totalorder %s3870_s21, %s3866_s1 }
0x14e9   : > { %p3868_p7 = pnand %p3867_p4, %p4067_p5  ;;  %p3873_p11 = por %p3872_p10, %p3871_p9 }
0x14eb   : > { %p3869_p8 = pneg %p3868_p7 }
0x14ed   : > { %p3874_p12 = pnand %p3873_p11, %p3869_p8 }
0x155b   : > { %v3228_v51 = vpop.f32.mrf.mxu2 }
0x155c   : > { %v3229_v56 = vadd.f32 %v3228_v51, %v3206_v24 }
0x155e   : > { %v3231_v46 = vmul.f32 %v5241_v58, %v3229_v56 }
0x1560   : > { %3232 = vst [vmem:[%s640_s4] sm:$0xff] %v3231_v46 }
0x1561   : > { %3877 = shalt.err (!%p3874_p12)
}
0x1562   : > { %3601 = dma.vmem_to_hbm [thread:$0]  (%p4067_p5), %s3252_s5, 128, %s3254_s28, %s3234_s23  }
0x1563 PF: > { %s5445_s25 = sld [smem:[#allocation10_spill]] }
0x1564   : > { %s5446_s18 = sld [smem:[#allocation8_spill]] }
0x1569   : > { %p3612_p13 = scmp.ge.s32.totalorder %s5445_s25, 2 }
0x156a   : > { %s3282_s24 = sand.u32 1, %s5446_s18  }
0x156b   : > { %p3606_p0 = pnand %p3612_p13, %p4071_p6  ;;  %s3283_s2 = scalar_lea.sflag [#allocation3], %s3282_s24 }
0x156d   : > { %p3607_p1 = pneg %p3606_p0 }
0x156f   : > { %3895 = dma.done.wait (%p3607_p1), %s3283_s2, 128  }
0x1570   : > { %3897 = vsyncadd (%p3607_p1), %s3283_s2, 4294967168  ;;  %s3293_s26 = scalar_lea.sflag [#allocation5], %s3282_s24 }
0x1571   : > { %3899 = dma.done.wait (%p3607_p1), %s3293_s26, 512  }
0x1572   : > { %3901 = vsyncadd (%p3607_p1), %s3293_s26, 4294966784  ;;  %s5448_s21 = sld [smem:[#allocation11_spill]]  ;;  %s5451_s0 = smov %s3908_s30 }
0x1573   : > { %s5449_s4 = sld [smem:[#allocation9_spill]] }
0x1574   : > { %s5450_s20 = sld [smem:[#allocation12_spill]] }
0x1578   : > { %p33_p5 = scmp.ge.s32.totalorder %s5448_s21, 4  }
0x1579   : > { %s5452_s30 = smov %s5449_s4 }
0x157a   :  { %35 = sbr.rel (!%p33_p5) target bundleno = 16 (0x10), region = 169 }
0x157f   :  { %3299 = vsyncpa [#allocation3], 1 }
0x1580   :  { %3301 = vsyncpa [#allocation3 + $0x1], 1 }
0x1581   :  { %3302 = vsyncpa [#allocation5], 1 }
0x1582   :  { %3304 = vsyncpa [#allocation5 + $0x1], 1 }

</bundles_post_ra>
